<compile_context>
chip_gen: v6e
topology: v6e:2x2x1
jax: 0.10.0
libtpu: 0.0.40
codegen_flags: <defaults>
</compile_context>

<pallas_src>
import functools

import jax
import jax.numpy as jnp
import numpy as np
from jax.experimental import pallas as pl
from jax.experimental.pallas import tpu as pltpu


LANE = 128


def _round_up(v, m):
    return ((v + m - 1) // m) * m


# ----------------------------------------------------------------------------
# Kernel 1: masked batch-norm statistics (tiled reduction over B and T tiles)
# ----------------------------------------------------------------------------

def _bn_stats_kernel(len_ref, x_ref, stats_ref, sum_s, sq_s, cnt_s, *, t_tile, eps):
    f32 = jnp.float32
    b = pl.program_id(0)
    tt = pl.program_id(1)

    @pl.when(jnp.logical_and(b == 0, tt == 0))
    def _():
        sum_s[...] = jnp.zeros_like(sum_s)
        sq_s[...] = jnp.zeros_like(sq_s)
        cnt_s[...] = jnp.zeros_like(cnt_s)

    x = x_ref[...].astype(f32)                                        # [t_tile, C]
    t0 = tt * t_tile
    ridx = t0 + jax.lax.broadcasted_iota(jnp.int32, (t_tile, 1), 0)   # [t_tile, 1]
    m = (ridx < len_ref[b]).astype(f32)                               # [t_tile, 1]
    xm = x * m
    sum_s[...] += jnp.sum(xm, axis=0, keepdims=True)
    sq_s[...] += jnp.sum(xm * x, axis=0, keepdims=True)
    cnt_s[...] += jnp.sum(m, axis=0, keepdims=True)                   # [1, 1]

    @pl.when(jnp.logical_and(b == pl.num_programs(0) - 1,
                             tt == pl.num_programs(1) - 1))
    def _():
        cnt = jnp.maximum(cnt_s[...], 1.0)                            # [1, 1]
        mean = sum_s[...] / cnt                                       # [1, C]
        var = jnp.maximum(sq_s[...] / cnt - mean * mean, 0.0)
        inv = jax.lax.rsqrt(var + eps)
        stats_ref[pl.ds(0, 1), :] = mean
        stats_ref[pl.ds(1, 1), :] = inv


def bn_stats(x_pad, mel_lengths, eps=1e-5):
    """x_pad: [B, T, CPAD] (lane-padded mel).  Returns [2, CPAD]: (mean, inv_std)."""
    B, T, C = x_pad.shape
    t_tile = T
    for cand in (512, 256, 128, 64, 32, 16, 8):
        if T % cand == 0:
            t_tile = cand
            break
    grid = (B, T // t_tile)
    kern = functools.partial(_bn_stats_kernel, t_tile=t_tile, eps=eps)
    return pl.pallas_call(
        kern,
        out_shape=jax.ShapeDtypeStruct((2, C), jnp.float32),
        grid_spec=pltpu.PrefetchScalarGridSpec(
            num_scalar_prefetch=1,
            grid=grid,
            in_specs=[pl.BlockSpec((None, t_tile, C), lambda b, t, lens: (b, t, 0))],
            out_specs=pl.BlockSpec((2, C), lambda b, t, lens: (0, 0)),
            scratch_shapes=[pltpu.VMEM((1, C), jnp.float32),
                            pltpu.VMEM((1, C), jnp.float32),
                            pltpu.VMEM((1, 1), jnp.float32)],
        ),
        compiler_params=pltpu.CompilerParams(
            dimension_semantics=("arbitrary", "arbitrary")),
    )(mel_lengths, x_pad)


# ----------------------------------------------------------------------------
# Kernel 2: fully fused encoder (normalize -> pre conv -> all WN layers ->
#           end conv -> mask -> log_softmax).  Grid over batch ("parallel").
# ----------------------------------------------------------------------------

def _encoder_kernel(len_ref,
                    x_ref, stats_ref,
                    pre_w_ref, pre_b_ref,
                    wt_ref, ws_ref, bt_ref, bs_ref,
                    wr_ref, wk_ref, br_ref, bk_ref,
                    end_w_ref, end_b_ref,
                    lat_ref, lp_ref,
                    xpad_ref,
                    *, T, K, HALO, n_layers, n_total, n_symbols):
    f32 = jnp.float32
    b = pl.program_id(0)

    # Valid-frame mask for this batch element.
    t_idx = jax.lax.broadcasted_iota(jnp.int32, (T, 1), 0)
    tmask = (t_idx < len_ref[b]).astype(f32)                          # [T, 1]

    # SmoothedBatchNorm1d (affine=False) over valid frames (stats precomputed).
    mean = stats_ref[pl.ds(0, 1), :]                                  # [1, C]
    inv = stats_ref[pl.ds(1, 1), :]                                   # [1, C]
    x0 = (x_ref[...].astype(f32) - mean) * inv * tmask                # [T, C]
    # F.dropout(p=mel_dropout) is identity at inference.

    # Zero the halo once; the interior [HALO:HALO+T) is fully rewritten each
    # layer, so the halo stays zero for all dilated convs ('same' padding).
    xpad_ref[...] = jnp.zeros_like(xpad_ref)
    xpad_ref[pl.ds(HALO, T), :] = x0

    # Pre conv (k=3, dilation=1).
    x = jnp.dot(xpad_ref[pl.ds(HALO - 1, T), :], pre_w_ref[0],
                preferred_element_type=f32)
    for k in range(1, K):
        x = x + jnp.dot(xpad_ref[pl.ds(HALO - 1 + k, T), :], pre_w_ref[k],
                        preferred_element_type=f32)
    x = x + pre_b_ref[...].astype(f32)                                # [T, H]

    skip = jnp.zeros_like(x)

    # Gated dilated layers; weights resident in VMEM, activations never leave VMEM.
    for li in range(n_total):
        d = 2 ** (li % n_layers)
        xpad_ref[pl.ds(HALO, T), :] = x
        xs = xpad_ref[pl.ds(HALO - d, T), :]
        zt = jnp.dot(xs, wt_ref[li * K], preferred_element_type=f32)
        zs = jnp.dot(xs, ws_ref[li * K], preferred_element_type=f32)
        for k in range(1, K):
            xs = xpad_ref[pl.ds(HALO + (k - 1) * d, T), :]
            zt = zt + jnp.dot(xs, wt_ref[li * K + k], preferred_element_type=f32)
            zs = zs + jnp.dot(xs, ws_ref[li * K + k], preferred_element_type=f32)
        zt = zt + bt_ref[li].astype(f32)
        zs = zs + bs_ref[li].astype(f32)
        a = jnp.tanh(zt) * jax.nn.sigmoid(zs)                         # [T, H]
        # 1x1 res/skip conv; rezero alpha is pre-folded into wr/wk/br/bk.
        x = x + jnp.dot(a, wr_ref[li], preferred_element_type=f32) + br_ref[li].astype(f32)
        skip = skip + jnp.dot(a, wk_ref[li], preferred_element_type=f32) + bk_ref[li].astype(f32)

    # End 1x1 conv -> mask -> log_softmax over the valid symbol lanes.
    lat = (jnp.dot(skip, end_w_ref[...], preferred_element_type=f32)
           + end_b_ref[...].astype(f32)) * tmask                      # [T, S_pad]
    s_idx = jax.lax.broadcasted_iota(jnp.int32, lat.shape, 1)
    valid = s_idx < n_symbols
    mx = jnp.max(jnp.where(valid, lat, -jnp.inf), axis=-1, keepdims=True)
    ex = jnp.where(valid, jnp.exp(lat - mx), 0.0)
    lse = jnp.log(jnp.sum(ex, axis=-1, keepdims=True)) + mx
    lat_ref[...] = lat.astype(lat_ref.dtype)
    lp_ref[...] = (lat - lse).astype(lp_ref.dtype)


def encoder_fused(x_pad, stats, mel_lengths, pp, *, n_layers, n_total, n_symbols, K=3):
    B, T, CPAD = x_pad.shape
    maxpad = 2 ** (n_layers - 1)
    HALO = max(8, _round_up(maxpad, 8))
    LK = pp["wt"].shape[0]
    L = pp["wr"].shape[0]

    def full(shape):
        return pl.BlockSpec(shape, lambda b, lens, _n=len(shape): (0,) * _n)

    kern = functools.partial(_encoder_kernel, T=T, K=K, HALO=HALO,
                             n_layers=n_layers, n_total=n_total,
                             n_symbols=n_symbols)

    grid_spec = pltpu.PrefetchScalarGridSpec(
        num_scalar_prefetch=1,
        grid=(B,),
        in_specs=[
            pl.BlockSpec((None, T, CPAD), lambda b, lens: (b, 0, 0)),   # x (padded mel)
            full((2, CPAD)),                                            # stats
            full((K, CPAD, CPAD)),                                      # pre_w
            full((1, CPAD)),                                            # pre_b
            full((LK, CPAD, CPAD)),                                     # wt (tanh half)
            full((LK, CPAD, CPAD)),                                     # ws (sigmoid half)
            full((L, 1, CPAD)),                                         # bt
            full((L, 1, CPAD)),                                         # bs
            full((L, CPAD, CPAD)),                                      # wr (res, alpha folded)
            full((L, CPAD, CPAD)),                                      # wk (skip, alpha folded)
            full((L, 1, CPAD)),                                         # br
            full((L, 1, CPAD)),                                         # bk
            full((CPAD, CPAD)),                                         # end_w
            full((1, CPAD)),                                            # end_b
        ],
        out_specs=[
            pl.BlockSpec((None, T, CPAD), lambda b, lens: (b, 0, 0)),
            pl.BlockSpec((None, T, CPAD), lambda b, lens: (b, 0, 0)),
        ],
        scratch_shapes=[pltpu.VMEM((T + 2 * HALO, CPAD), jnp.float32)],
    )

    lat, lp = pl.pallas_call(
        kern,
        out_shape=(jax.ShapeDtypeStruct((B, T, CPAD), jnp.float32),
                   jax.ShapeDtypeStruct((B, T, CPAD), jnp.float32)),
        grid_spec=grid_spec,
        compiler_params=pltpu.CompilerParams(dimension_semantics=("parallel",)),
    )(mel_lengths, x_pad, stats,
      pp["pre_w"], pp["pre_b"], pp["wt"], pp["ws"], pp["bt"], pp["bs"],
      pp["wr"], pp["wk"], pp["br"], pp["bk"], pp["end_w"], pp["end_b"])
    return lat, lp


# ----------------------------------------------------------------------------
# Parameters (deterministic synthetic init) + lane-padded packing
# ----------------------------------------------------------------------------

def init_params(key, n_mel, n_symbols, H, n_blocks, n_layers, K=3):
    n_layer_keys = 2 * n_blocks * n_layers
    keys = jax.random.split(key, 2 + n_layer_keys)

    def w_init(k, shape, fan_in):
        return jax.random.normal(k, shape, jnp.float32) / jnp.sqrt(float(fan_in))

    params = {
        "pre_w": w_init(keys[0], (K, n_mel, H), K * n_mel),
        "pre_b": jnp.zeros((H,), jnp.float32),
        "end_w": w_init(keys[1], (1, H, n_symbols), H),
        "end_b": 0.01 * jnp.arange(n_symbols, dtype=jnp.float32),
        "layers": [],
    }
    ki = 2
    for _b in range(n_blocks):
        for _l in range(n_layers):
            params["layers"].append(dict(
                in_w=w_init(keys[ki], (K, H, 2 * H), K * H),
                in_b=jnp.zeros((2 * H,), jnp.float32),
                rs_w=w_init(keys[ki + 1], (1, H, 2 * H), H),
                rs_b=jnp.zeros((2 * H,), jnp.float32),
                # rezero gain (nominally 0-init; 0.1 so the residual path is exercised)
                alpha=jnp.float32(0.1),
            ))
            ki += 2
    return params


def prepare_padded_params(params, h, CPAD):
    K, n_mel, H = params["pre_w"].shape
    S = params["end_w"].shape[2]

    def pad2(w):
        return jnp.pad(w, ((0, CPAD - w.shape[0]), (0, CPAD - w.shape[1])))

    def padb(v):
        return jnp.pad(v, (0, CPAD - v.shape[0])).reshape(1, CPAD)

    pre_w = jnp.pad(params["pre_w"], ((0, 0), (0, CPAD - n_mel), (0, CPAD - H)))
    pre_b = padb(params["pre_b"])

    wt, ws, bt, bs, wr, wk, br, bk = [], [], [], [], [], [], [], []
    for p in params["layers"]:
        iw = p["in_w"]                                               # [K, H, 2H]
        wt.append(jnp.pad(iw[:, :, :H], ((0, 0), (0, CPAD - H), (0, CPAD - H))))
        ws.append(jnp.pad(iw[:, :, H:], ((0, 0), (0, CPAD - H), (0, CPAD - H))))
        bt.append(padb(p["in_b"][:H]))
        bs.append(padb(p["in_b"][H:]))
        a = p["alpha"]
        rw = p["rs_w"][0]                                            # [H, 2H]
        wr.append(pad2(a * rw[:, :H]))
        wk.append(pad2(a * rw[:, H:]))
        br.append(padb(a * p["rs_b"][:H]))
        bk.append(padb(a * p["rs_b"][H:]))

    return dict(
        pre_w=pre_w, pre_b=pre_b,
        wt=jnp.concatenate(wt, axis=0),                              # [L*K, CPAD, CPAD]
        ws=jnp.concatenate(ws, axis=0),
        bt=jnp.stack(bt, axis=0),                                    # [L, 1, CPAD]
        bs=jnp.stack(bs, axis=0),
        wr=jnp.stack(wr, axis=0),                                    # [L, CPAD, CPAD]
        wk=jnp.stack(wk, axis=0),
        br=jnp.stack(br, axis=0),
        bk=jnp.stack(bk, axis=0),
        end_w=pad2(params["end_w"][0]),                              # [CPAD, CPAD]
        end_b=padb(params["end_b"]),
    )


# ----------------------------------------------------------------------------
# Model forward (Generator.forward, inference mode)
# ----------------------------------------------------------------------------

def model_forward(params, gt_mel, mel_lengths, text, text_lengths,
                  speaker_id, speaker_f0_meanstd, speaker_slyps_meanstd, *, h):
    # text / speaker inputs are accepted but unused, exactly like the reference forward.
    del text, text_lengths, speaker_id, speaker_f0_meanstd, speaker_slyps_meanstd

    B, n_mel, T = gt_mel.shape
    H = h["wn_dim"]
    S = h["n_symbols"]
    n_layers = h["wn_n_layers"]
    n_total = h["wn_n_blocks"] * n_layers
    CPAD = _round_up(max(n_mel, H, S), LANE)

    lengths = mel_lengths.astype(jnp.int32)

    # NCT -> NTC, lane-pad channels to CPAD (single input-staging copy).
    x = jnp.transpose(gt_mel, (0, 2, 1)).astype(jnp.float32)
    x = jnp.pad(x, ((0, 0), (0, 0), (0, CPAD - n_mel)))

    # Masked batch statistics (SmoothedBatchNorm1d, affine=False).
    stats = bn_stats(x, lengths)

    pp = prepare_padded_params(params, h, CPAD)

    lat_p, lp_p = encoder_fused(x, stats, lengths, pp,
                                n_layers=n_layers, n_total=n_total,
                                n_symbols=S, K=3)
    latents = lat_p[:, :, :S]
    log_probs = lp_p[:, :, :S]
    return {"log_probs": log_probs, "latents": latents}


# ----------------------------------------------------------------------------
# Pure-JAX reference (for correctness check)
# ----------------------------------------------------------------------------

def reference_forward(params, gt_mel, mel_lengths, h):
    f32 = jnp.float32
    hp = jax.lax.Precision.HIGHEST
    x = jnp.transpose(gt_mel, (0, 2, 1)).astype(f32)                  # [B, T, n_mel]
    B, T, _ = x.shape
    mask = (jnp.arange(T)[None, :] < mel_lengths[:, None]).astype(f32)[..., None]
    cnt = jnp.maximum(jnp.sum(mask), 1.0)
    mean = jnp.sum(x * mask, axis=(0, 1)) / cnt
    sq = jnp.sum(x * x * mask, axis=(0, 1)) / cnt
    var = jnp.maximum(sq - mean * mean, 0.0)
    inv = jax.lax.rsqrt(var + 1e-5)
    x = (x - mean) * inv * mask

    def conv(z, w, b, d):
        K = w.shape[0]
        pad = (K - 1) // 2 * d
        zp = jnp.pad(z, ((0, 0), (pad, pad), (0, 0)))
        acc = None
        for k in range(K):
            t = jnp.einsum("btc,cd->btd", zp[:, k * d:k * d + T], w[k], precision=hp)
            acc = t if acc is None else acc + t
        return acc + b

    H = h["wn_dim"]
    x = conv(x, params["pre_w"], params["pre_b"], 1)
    skip = jnp.zeros_like(x)
    for li, p in enumerate(params["layers"]):
        d = 2 ** (li % h["wn_n_layers"])
        z = conv(x, p["in_w"], p["in_b"], d)
        a = jnp.tanh(z[..., :H]) * jax.nn.sigmoid(z[..., H:])
        rs = conv(a, p["rs_w"], p["rs_b"], 1)
        x = x + p["alpha"] * rs[..., :H]
        skip = skip + p["alpha"] * rs[..., H:]
    lat = conv(skip, params["end_w"], params["end_b"], 1) * mask
    lp = jax.nn.log_softmax(lat, axis=-1)
    return lat, lp


# ----------------------------------------------------------------------------
# Demo
# ----------------------------------------------------------------------------

if __name__ == "__main__":
    h = dict(n_mel_channels=16, n_symbols=16, wn_dim=32,
             wn_n_blocks=1, wn_n_layers=2, mel_dropout=0.2, fp16_run=False)

    B, T = 2, 32
    key = jax.random.PRNGKey(0)
    k_mel, _ = jax.random.split(key)

    gt_mel = jax.random.normal(k_mel, (B, h["n_mel_channels"], T), jnp.float32)  # NCT
    mel_lengths = jnp.array([T, T - 10], jnp.int32)
    text = jnp.zeros((B, 8), jnp.int32)
    text_lengths = jnp.array([8, 6], jnp.int32)
    speaker_id = jnp.zeros((B,), jnp.int32)
    speaker_f0_meanstd = jnp.zeros((B, 2), jnp.float32)
    speaker_slyps_meanstd = jnp.zeros((B, 2), jnp.float32)

    params = init_params(jax.random.PRNGKey(42),
                         n_mel=h["n_mel_channels"], n_symbols=h["n_symbols"],
                         H=h["wn_dim"], n_blocks=h["wn_n_blocks"],
                         n_layers=h["wn_n_layers"], K=3)

    fwd = jax.jit(functools.partial(model_forward, h=h))
    out = fwd(params, gt_mel, mel_lengths, text, text_lengths,
              speaker_id, speaker_f0_meanstd, speaker_slyps_meanstd)

    jax.block_until_ready(out["log_probs"])
    jax.block_until_ready(out["latents"])
    assert out["log_probs"].shape == (B, T, h["n_symbols"])
    assert out["latents"].shape == (B, T, h["n_symbols"])

    # Correctness check against a pure-JAX reference of the same forward math.
    ref_lat, ref_lp = reference_forward(params, gt_mel, mel_lengths, h)
    np.testing.assert_allclose(np.asarray(out["latents"]), np.asarray(ref_lat),
                               rtol=1e-2, atol=1e-2)
    np.testing.assert_allclose(np.asarray(out["log_probs"]), np.asarray(ref_lp),
                               rtol=1e-2, atol=1e-2)

    print("KERNEL_OK")
</pallas_src>

<mosaic_0001>
module attributes {stable_mosaic.version = 11 : i64} {
  func.func @_bn_stats_kernel(%arg0: i32, %arg1: i32, %arg2: memref<2xi32, #tpu.memory_space<smem>>, %arg3: memref<1x32x128xf32, #tpu.memory_space<vmem>>, %arg4: memref<2x128xf32, #tpu.memory_space<vmem>>, %arg5: memref<1x128xf32, #tpu.memory_space<vmem>>, %arg6: memref<1x128xf32, #tpu.memory_space<vmem>>, %arg7: memref<1x1xf32, #tpu.memory_space<vmem>>) attributes {dimension_semantics = [#tpu.dimension_semantics<arbitrary>, #tpu.dimension_semantics<arbitrary>], iteration_bounds = array<i64: 2, 1>, scalar_prefetch = 1 : i64, scratch_operands = 3 : i64, tpu.core_type = #tpu.core_type<tc>, window_params = [{transform_indices = @transform_0, window_bounds = array<i64: 1, 32, 128>}, {pipeline_mode = #tpu.pipeline_mode<synchronous>, transform_indices = @transform_1, window_bounds = array<i64: 2, 128>}]} {
    %c0_i32 = arith.constant 0 : i32
    %0 = arith.cmpi eq, %arg0, %c0_i32 : i32
    %c0_i32_0 = arith.constant 0 : i32
    %1 = arith.cmpi eq, %arg1, %c0_i32_0 : i32
    %2 = arith.andi %0, %1 : i1
    %3 = arith.extui %2 : i1 to i32
    %c0_i32_1 = arith.constant 0 : i32
    %4 = arith.cmpi ne, %3, %c0_i32_1 : i32
    scf.if %4 {
      %cst_20 = arith.constant 0.000000e+00 : f32
      %40 = vector.broadcast %cst_20 : f32 to vector<1x128xf32>
      %c0_21 = arith.constant 0 : index
      %c0_22 = arith.constant 0 : index
      %41 = vector.load %arg5[%c0_21, %c0_22] : memref<1x128xf32, #tpu.memory_space<vmem>>, vector<1x128xf32>
      tpu.vector_store %arg5[%c0_21, %c0_22], %40 {strides = array<i32>} : memref<1x128xf32, #tpu.memory_space<vmem>>, vector<1x128xf32>,
      %cst_23 = arith.constant 0.000000e+00 : f32
      %42 = vector.broadcast %cst_23 : f32 to vector<1x128xf32>
      %c0_24 = arith.constant 0 : index
      %c0_25 = arith.constant 0 : index
      %43 = vector.load %arg6[%c0_24, %c0_25] : memref<1x128xf32, #tpu.memory_space<vmem>>, vector<1x128xf32>
      tpu.vector_store %arg6[%c0_24, %c0_25], %42 {strides = array<i32>} : memref<1x128xf32, #tpu.memory_space<vmem>>, vector<1x128xf32>,
      %cst_26 = arith.constant 0.000000e+00 : f32
      %44 = vector.broadcast %cst_26 : f32 to vector<1x1xf32>
      %c0_27 = arith.constant 0 : index
      %c0_28 = arith.constant 0 : index
      %45 = vector.load %arg7[%c0_27, %c0_28] : memref<1x1xf32, #tpu.memory_space<vmem>>, vector<1x1xf32>
      tpu.vector_store %arg7[%c0_27, %c0_28], %44 {strides = array<i32>} : memref<1x1xf32, #tpu.memory_space<vmem>>, vector<1x1xf32>,
    } else {
    }
    %c0 = arith.constant 0 : index
    %c0_2 = arith.constant 0 : index
    %c0_3 = arith.constant 0 : index
    %5 = vector.load %arg3[%c0, %c0_2, %c0_3] : memref<1x32x128xf32, #tpu.memory_space<vmem>>, vector<1x32x128xf32>
    %6 = vector.shape_cast %5 : vector<1x32x128xf32> to vector<32x128xf32>
    %c32_i32 = arith.constant 32 : i32
    %7 = arith.muli %arg1, %c32_i32 : i32
    %8 = tpu.iota {dimensions = array<i32: 0>} : vector<32x1xi32>
    %9 = vector.broadcast %7 : i32 to vector<32x1xi32>
    %10 = arith.addi %9, %8 : vector<32x1xi32>
    %11 = arith.index_cast %arg0 : i32 to index
    %12 = memref.load %arg2[%11] : memref<2xi32, #tpu.memory_space<smem>>
    %13 = vector.broadcast %12 : i32 to vector<32x1xi32>
    %14 = arith.cmpi slt, %10, %13 : vector<32x1xi32>
    %15 = arith.extui %14 : vector<32x1xi1> to vector<32x1xi32>
    %16 = arith.sitofp %15 : vector<32x1xi32> to vector<32x1xf32>
    %17 = vector.broadcast %16 : vector<32x1xf32> to vector<32x128xf32>
    %18 = arith.mulf %6, %17 : vector<32x128xf32>
    %c0_4 = arith.constant 0 : index
    %c0_5 = arith.constant 0 : index
    %19 = vector.load %arg5[%c0_4, %c0_5] : memref<1x128xf32, #tpu.memory_space<vmem>>, vector<1x128xf32>
    %cst = arith.constant dense<0.000000e+00> : vector<128xf32>
    %20 = vector.multi_reduction <add>, %18, %cst [0] : vector<32x128xf32> to vector<128xf32>
    %21 = vector.shape_cast %20 : vector<128xf32> to vector<1x128xf32>
    %22 = arith.addf %19, %21 : vector<1x128xf32>
    %c0_6 = arith.constant 0 : index
    %c0_7 = arith.constant 0 : index
    %23 = vector.load %arg5[%c0_6, %c0_7] : memref<1x128xf32, #tpu.memory_space<vmem>>, vector<1x128xf32>
    tpu.vector_store %arg5[%c0_6, %c0_7], %22 {strides = array<i32>} : memref<1x128xf32, #tpu.memory_space<vmem>>, vector<1x128xf32>,
    %c0_8 = arith.constant 0 : index
    %c0_9 = arith.constant 0 : index
    %24 = vector.load %arg6[%c0_8, %c0_9] : memref<1x128xf32, #tpu.memory_space<vmem>>, vector<1x128xf32>
    %25 = arith.mulf %18, %6 : vector<32x128xf32>
    %cst_10 = arith.constant dense<0.000000e+00> : vector<128xf32>
    %26 = vector.multi_reduction <add>, %25, %cst_10 [0] : vector<32x128xf32> to vector<128xf32>
    %27 = vector.shape_cast %26 : vector<128xf32> to vector<1x128xf32>
    %28 = arith.addf %24, %27 : vector<1x128xf32>
    %c0_11 = arith.constant 0 : index
    %c0_12 = arith.constant 0 : index
    %29 = vector.load %arg6[%c0_11, %c0_12] : memref<1x128xf32, #tpu.memory_space<vmem>>, vector<1x128xf32>
    tpu.vector_store %arg6[%c0_11, %c0_12], %28 {strides = array<i32>} : memref<1x128xf32, #tpu.memory_space<vmem>>, vector<1x128xf32>,
    %c0_13 = arith.constant 0 : index
    %c0_14 = arith.constant 0 : index
    %30 = vector.load %arg7[%c0_13, %c0_14] : memref<1x1xf32, #tpu.memory_space<vmem>>, vector<1x1xf32>
    %cst_15 = arith.constant dense<0.000000e+00> : vector<1xf32>
    %31 = vector.multi_reduction <add>, %16, %cst_15 [0] : vector<32x1xf32> to vector<1xf32>
    %32 = vector.shape_cast %31 : vector<1xf32> to vector<1x1xf32>
    %33 = arith.addf %30, %32 : vector<1x1xf32>
    %c0_16 = arith.constant 0 : index
    %c0_17 = arith.constant 0 : index
    %34 = vector.load %arg7[%c0_16, %c0_17] : memref<1x1xf32, #tpu.memory_space<vmem>>, vector<1x1xf32>
    tpu.vector_store %arg7[%c0_16, %c0_17], %33 {strides = array<i32>} : memref<1x1xf32, #tpu.memory_space<vmem>>, vector<1x1xf32>,
    %c1_i32 = arith.constant 1 : i32
    %35 = arith.cmpi eq, %arg0, %c1_i32 : i32
    %c0_i32_18 = arith.constant 0 : i32
    %36 = arith.cmpi eq, %arg1, %c0_i32_18 : i32
    %37 = arith.andi %35, %36 : i1
    %38 = arith.extui %37 : i1 to i32
    %c0_i32_19 = arith.constant 0 : i32
    %39 = arith.cmpi ne, %38, %c0_i32_19 : i32
    scf.if %39 {
      %c0_20 = arith.constant 0 : index
      %c0_21 = arith.constant 0 : index
      %40 = vector.load %arg7[%c0_20, %c0_21] : memref<1x1xf32, #tpu.memory_space<vmem>>, vector<1x1xf32>
      %cst_22 = arith.constant 1.000000e+00 : f32
      %41 = vector.broadcast %cst_22 : f32 to vector<1x1xf32>
      %42 = arith.maximumf %40, %41 : vector<1x1xf32>
      %c0_23 = arith.constant 0 : index
      %c0_24 = arith.constant 0 : index
      %43 = vector.load %arg5[%c0_23, %c0_24] : memref<1x128xf32, #tpu.memory_space<vmem>>, vector<1x128xf32>
      %44 = vector.broadcast %42 : vector<1x1xf32> to vector<1x128xf32>
      %45 = arith.divf %43, %44 : vector<1x128xf32>
      %c0_25 = arith.constant 0 : index
      %c0_26 = arith.constant 0 : index
      %46 = vector.load %arg6[%c0_25, %c0_26] : memref<1x128xf32, #tpu.memory_space<vmem>>, vector<1x128xf32>
      %47 = vector.broadcast %42 : vector<1x1xf32> to vector<1x128xf32>
      %48 = arith.divf %46, %47 : vector<1x128xf32>
      %49 = arith.mulf %45, %45 : vector<1x128xf32>
      %50 = arith.subf %48, %49 : vector<1x128xf32>
      %cst_27 = arith.constant 0.000000e+00 : f32
      %51 = vector.broadcast %cst_27 : f32 to vector<1x128xf32>
      %52 = arith.maximumf %50, %51 : vector<1x128xf32>
      %cst_28 = arith.constant 9.99999974E-6 : f32
      %53 = vector.broadcast %cst_28 : f32 to vector<1x128xf32>
      %54 = arith.addf %52, %53 : vector<1x128xf32>
      %55 = math.rsqrt %54 : vector<1x128xf32>
      %c0_29 = arith.constant 0 : index
      %c0_30 = arith.constant 0 : index
      %56 = vector.load %arg4[%c0_29, %c0_30] : memref<2x128xf32, #tpu.memory_space<vmem>>, vector<1x128xf32>
      tpu.vector_store %arg4[%c0_29, %c0_30], %45 {strides = array<i32>} : memref<2x128xf32, #tpu.memory_space<vmem>>, vector<1x128xf32>,
      %c1 = arith.constant 1 : index
      %c0_31 = arith.constant 0 : index
      %57 = vector.load %arg4[%c1, %c0_31] : memref<2x128xf32, #tpu.memory_space<vmem>>, vector<1x128xf32>
      tpu.vector_store %arg4[%c1, %c0_31], %55 {strides = array<i32>} : memref<2x128xf32, #tpu.memory_space<vmem>>, vector<1x128xf32>,
    } else {
    }
    return
  }
  func.func @transform_0(%arg0: i32, %arg1: i32, %arg2: memref<2xi32, #tpu.memory_space<smem>>) -> (i32, i32, i32) {
    %c0_i32 = arith.constant 0 : i32
    %c0_i32_0 = arith.constant 0 : i32
    return %arg0, %arg1, %c0_i32 : i32, i32, i32
  }
  func.func @transform_1(%arg0: i32, %arg1: i32, %arg2: memref<2xi32, #tpu.memory_space<smem>>) -> (i32, i32) {
    %c0_i32 = arith.constant 0 : i32
    %c0_i32_0 = arith.constant 0 : i32
    %c0_i32_1 = arith.constant 0 : i32
    return %c0_i32, %c0_i32_0 : i32, i32
  }
}

module attributes {stable_mosaic.version = 11 : i64} {
  func.func @_encoder_kernel(%arg0: i32, %arg1: memref<2xi32, #tpu.memory_space<smem>>, %arg2: memref<1x32x128xf32, #tpu.memory_space<vmem>>, %arg3: memref<2x128xf32, #tpu.memory_space<vmem>>, %arg4: memref<3x128x128xf32, #tpu.memory_space<vmem>>, %arg5: memref<1x128xf32, #tpu.memory_space<vmem>>, %arg6: memref<6x128x128xf32, #tpu.memory_space<vmem>>, %arg7: memref<6x128x128xf32, #tpu.memory_space<vmem>>, %arg8: memref<2x1x128xf32, #tpu.memory_space<vmem>>, %arg9: memref<2x1x128xf32, #tpu.memory_space<vmem>>, %arg10: memref<2x128x128xf32, #tpu.memory_space<vmem>>, %arg11: memref<2x128x128xf32, #tpu.memory_space<vmem>>, %arg12: memref<2x1x128xf32, #tpu.memory_space<vmem>>, %arg13: memref<2x1x128xf32, #tpu.memory_space<vmem>>, %arg14: memref<128x128xf32, #tpu.memory_space<vmem>>, %arg15: memref<1x128xf32, #tpu.memory_space<vmem>>, %arg16: memref<1x32x128xf32, #tpu.memory_space<vmem>>, %arg17: memref<1x32x128xf32, #tpu.memory_space<vmem>>, %arg18: memref<48x128xf32, #tpu.memory_space<vmem>>) attributes {dimension_semantics = [#tpu.dimension_semantics<parallel>], iteration_bounds = array<i64: 2>, scalar_prefetch = 1 : i64, scratch_operands = 1 : i64, tpu.core_type = #tpu.core_type<tc>, window_params = [{transform_indices = @transform_0, window_bounds = array<i64: 1, 32, 128>}, {pipeline_mode = #tpu.pipeline_mode<synchronous>, transform_indices = @transform_1, window_bounds = array<i64: 2, 128>}, {pipeline_mode = #tpu.pipeline_mode<synchronous>, transform_indices = @transform_2, window_bounds = array<i64: 3, 128, 128>}, {pipeline_mode = #tpu.pipeline_mode<synchronous>, transform_indices = @transform_3, window_bounds = array<i64: 1, 128>}, {pipeline_mode = #tpu.pipeline_mode<synchronous>, transform_indices = @transform_4, window_bounds = array<i64: 6, 128, 128>}, {pipeline_mode = #tpu.pipeline_mode<synchronous>, transform_indices = @transform_5, window_bounds = array<i64: 6, 128, 128>}, {pipeline_mode = #tpu.pipeline_mode<synchronous>, transform_indices = @transform_6, window_bounds = array<i64: 2, 1, 128>}, {pipeline_mode = #tpu.pipeline_mode<synchronous>, transform_indices = @transform_7, window_bounds = array<i64: 2, 1, 128>}, {pipeline_mode = #tpu.pipeline_mode<synchronous>, transform_indices = @transform_8, window_bounds = array<i64: 2, 128, 128>}, {pipeline_mode = #tpu.pipeline_mode<synchronous>, transform_indices = @transform_9, window_bounds = array<i64: 2, 128, 128>}, {pipeline_mode = #tpu.pipeline_mode<synchronous>, transform_indices = @transform_10, window_bounds = array<i64: 2, 1, 128>}, {pipeline_mode = #tpu.pipeline_mode<synchronous>, transform_indices = @transform_11, window_bounds = array<i64: 2, 1, 128>}, {pipeline_mode = #tpu.pipeline_mode<synchronous>, transform_indices = @transform_12, window_bounds = array<i64: 128, 128>}, {pipeline_mode = #tpu.pipeline_mode<synchronous>, transform_indices = @transform_13, window_bounds = array<i64: 1, 128>}, {transform_indices = @transform_14, window_bounds = array<i64: 1, 32, 128>}, {transform_indices = @transform_15, window_bounds = array<i64: 1, 32, 128>}]} {
    %0 = tpu.iota {dimensions = array<i32: 0>} : vector<32x1xi32>
    %1 = arith.index_cast %arg0 : i32 to index
    %2 = memref.load %arg1[%1] : memref<2xi32, #tpu.memory_space<smem>>
    %3 = vector.broadcast %2 : i32 to vector<32x1xi32>
    %4 = arith.cmpi slt, %0, %3 : vector<32x1xi32>
    %5 = arith.extui %4 : vector<32x1xi1> to vector<32x1xi32>
    %6 = arith.sitofp %5 : vector<32x1xi32> to vector<32x1xf32>
    %c0 = arith.constant 0 : index
    %c0_0 = arith.constant 0 : index
    %7 = vector.load %arg3[%c0, %c0_0] : memref<2x128xf32, #tpu.memory_space<vmem>>, vector<1x128xf32>
    %c1 = arith.constant 1 : index
    %c0_1 = arith.constant 0 : index
    %8 = vector.load %arg3[%c1, %c0_1] : memref<2x128xf32, #tpu.memory_space<vmem>>, vector<1x128xf32>
    %c0_2 = arith.constant 0 : index
    %c0_3 = arith.constant 0 : index
    %c0_4 = arith.constant 0 : index
    %9 = vector.load %arg2[%c0_2, %c0_3, %c0_4] : memref<1x32x128xf32, #tpu.memory_space<vmem>>, vector<1x32x128xf32>
    %10 = vector.shape_cast %9 : vector<1x32x128xf32> to vector<32x128xf32>
    %11 = vector.broadcast %7 : vector<1x128xf32> to vector<32x128xf32>
    %12 = arith.subf %10, %11 : vector<32x128xf32>
    %13 = vector.broadcast %8 : vector<1x128xf32> to vector<32x128xf32>
    %14 = arith.mulf %12, %13 : vector<32x128xf32>
    %15 = vector.broadcast %6 : vector<32x1xf32> to vector<32x128xf32>
    %16 = arith.mulf %14, %15 : vector<32x128xf32>
    %cst = arith.constant 0.000000e+00 : f32
    %17 = vector.broadcast %cst : f32 to vector<48x128xf32>
    %c0_5 = arith.constant 0 : index
    %c0_6 = arith.constant 0 : index
    %18 = vector.load %arg18[%c0_5, %c0_6] : memref<48x128xf32, #tpu.memory_space<vmem>>, vector<48x128xf32>
    tpu.vector_store %arg18[%c0_5, %c0_6], %17 {strides = array<i32>} : memref<48x128xf32, #tpu.memory_space<vmem>>, vector<48x128xf32>,
    %c8 = arith.constant 8 : index
    %c0_7 = arith.constant 0 : index
    %19 = vector.load %arg18[%c8, %c0_7] : memref<48x128xf32, #tpu.memory_space<vmem>>, vector<32x128xf32>
    tpu.vector_store %arg18[%c8, %c0_7], %16 {strides = array<i32>} : memref<48x128xf32, #tpu.memory_space<vmem>>, vector<32x128xf32>,
    %c7 = arith.constant 7 : index
    %c0_8 = arith.constant 0 : index
    %20 = vector.load %arg18[%c7, %c0_8] : memref<48x128xf32, #tpu.memory_space<vmem>>, vector<32x128xf32>
    %c0_9 = arith.constant 0 : index
    %c0_10 = arith.constant 0 : index
    %c0_11 = arith.constant 0 : index
    %21 = vector.load %arg4[%c0_9, %c0_10, %c0_11] : memref<3x128x128xf32, #tpu.memory_space<vmem>>, vector<1x128x128xf32>
    %22 = vector.shape_cast %21 : vector<1x128x128xf32> to vector<128x128xf32>
    %cst_12 = arith.constant dense<0.000000e+00> : vector<32x128xf32>
    %23 = tpu.matmul %20, %22, %cst_12 {dimension_numbers = #tpu.dot_dimension_numbers<[1], [0], [0], [1], [0, 0, 1, 1], [], []>} : vector<32x128xf32>, vector<128x128xf32>, vector<32x128xf32> -> vector<32x128xf32>
    %c8_13 = arith.constant 8 : index
    %c0_14 = arith.constant 0 : index
    %24 = vector.load %arg18[%c8_13, %c0_14] : memref<48x128xf32, #tpu.memory_space<vmem>>, vector<32x128xf32>
    %c1_15 = arith.constant 1 : index
    %c0_16 = arith.constant 0 : index
    %c0_17 = arith.constant 0 : index
    %25 = vector.load %arg4[%c1_15, %c0_16, %c0_17] : memref<3x128x128xf32, #tpu.memory_space<vmem>>, vector<1x128x128xf32>
    %26 = vector.shape_cast %25 : vector<1x128x128xf32> to vector<128x128xf32>
    %cst_18 = arith.constant dense<0.000000e+00> : vector<32x128xf32>
    %27 = tpu.matmul %24, %26, %cst_18 {dimension_numbers = #tpu.dot_dimension_numbers<[1], [0], [0], [1], [0, 0, 1, 1], [], []>} : vector<32x128xf32>, vector<128x128xf32>, vector<32x128xf32> -> vector<32x128xf32>
    %28 = arith.addf %23, %27 : vector<32x128xf32>
    %c9 = arith.constant 9 : index
    %c0_19 = arith.constant 0 : index
    %29 = vector.load %arg18[%c9, %c0_19] : memref<48x128xf32, #tpu.memory_space<vmem>>, vector<32x128xf32>
    %c2 = arith.constant 2 : index
    %c0_20 = arith.constant 0 : index
    %c0_21 = arith.constant 0 : index
    %30 = vector.load %arg4[%c2, %c0_20, %c0_21] : memref<3x128x128xf32, #tpu.memory_space<vmem>>, vector<1x128x128xf32>
    %31 = vector.shape_cast %30 : vector<1x128x128xf32> to vector<128x128xf32>
    %cst_22 = arith.constant dense<0.000000e+00> : vector<32x128xf32>
    %32 = tpu.matmul %29, %31, %cst_22 {dimension_numbers = #tpu.dot_dimension_numbers<[1], [0], [0], [1], [0, 0, 1, 1], [], []>} : vector<32x128xf32>, vector<128x128xf32>, vector<32x128xf32> -> vector<32x128xf32>
    %33 = arith.addf %28, %32 : vector<32x128xf32>
    %c0_23 = arith.constant 0 : index
    %c0_24 = arith.constant 0 : index
    %34 = vector.load %arg5[%c0_23, %c0_24] : memref<1x128xf32, #tpu.memory_space<vmem>>, vector<1x128xf32>
    %35 = vector.broadcast %34 : vector<1x128xf32> to vector<32x128xf32>
    %36 = arith.addf %33, %35 : vector<32x128xf32>
    %cst_25 = arith.constant 0.000000e+00 : f32
    %37 = vector.broadcast %cst_25 : f32 to vector<32x128xf32>
    %c8_26 = arith.constant 8 : index
    %c0_27 = arith.constant 0 : index
    %38 = vector.load %arg18[%c8_26, %c0_27] : memref<48x128xf32, #tpu.memory_space<vmem>>, vector<32x128xf32>
    tpu.vector_store %arg18[%c8_26, %c0_27], %36 {strides = array<i32>} : memref<48x128xf32, #tpu.memory_space<vmem>>, vector<32x128xf32>,
    %c7_28 = arith.constant 7 : index
    %c0_29 = arith.constant 0 : index
    %39 = vector.load %arg18[%c7_28, %c0_29] : memref<48x128xf32, #tpu.memory_space<vmem>>, vector<32x128xf32>
    %c0_30 = arith.constant 0 : index
    %c0_31 = arith.constant 0 : index
    %c0_32 = arith.constant 0 : index
    %40 = vector.load %arg6[%c0_30, %c0_31, %c0_32] : memref<6x128x128xf32, #tpu.memory_space<vmem>>, vector<1x128x128xf32>
    %41 = vector.shape_cast %40 : vector<1x128x128xf32> to vector<128x128xf32>
    %cst_33 = arith.constant dense<0.000000e+00> : vector<32x128xf32>
    %42 = tpu.matmul %39, %41, %cst_33 {dimension_numbers = #tpu.dot_dimension_numbers<[1], [0], [0], [1], [0, 0, 1, 1], [], []>} : vector<32x128xf32>, vector<128x128xf32>, vector<32x128xf32> -> vector<32x128xf32>
    %c0_34 = arith.constant 0 : index
    %c0_35 = arith.constant 0 : index
    %c0_36 = arith.constant 0 : index
    %43 = vector.load %arg7[%c0_34, %c0_35, %c0_36] : memref<6x128x128xf32, #tpu.memory_space<vmem>>, vector<1x128x128xf32>
    %44 = vector.shape_cast %43 : vector<1x128x128xf32> to vector<128x128xf32>
    %cst_37 = arith.constant dense<0.000000e+00> : vector<32x128xf32>
    %45 = tpu.matmul %39, %44, %cst_37 {dimension_numbers = #tpu.dot_dimension_numbers<[1], [0], [0], [1], [0, 0, 1, 1], [], []>} : vector<32x128xf32>, vector<128x128xf32>, vector<32x128xf32> -> vector<32x128xf32>
    %c8_38 = arith.constant 8 : index
    %c0_39 = arith.constant 0 : index
    %46 = vector.load %arg18[%c8_38, %c0_39] : memref<48x128xf32, #tpu.memory_space<vmem>>, vector<32x128xf32>
    %c1_40 = arith.constant 1 : index
    %c0_41 = arith.constant 0 : index
    %c0_42 = arith.constant 0 : index
    %47 = vector.load %arg6[%c1_40, %c0_41, %c0_42] : memref<6x128x128xf32, #tpu.memory_space<vmem>>, vector<1x128x128xf32>
    %48 = vector.shape_cast %47 : vector<1x128x128xf32> to vector<128x128xf32>
    %cst_43 = arith.constant dense<0.000000e+00> : vector<32x128xf32>
    %49 = tpu.matmul %46, %48, %cst_43 {dimension_numbers = #tpu.dot_dimension_numbers<[1], [0], [0], [1], [0, 0, 1, 1], [], []>} : vector<32x128xf32>, vector<128x128xf32>, vector<32x128xf32> -> vector<32x128xf32>
    %50 = arith.addf %42, %49 : vector<32x128xf32>
    %c1_44 = arith.constant 1 : index
    %c0_45 = arith.constant 0 : index
    %c0_46 = arith.constant 0 : index
    %51 = vector.load %arg7[%c1_44, %c0_45, %c0_46] : memref<6x128x128xf32, #tpu.memory_space<vmem>>, vector<1x128x128xf32>
    %52 = vector.shape_cast %51 : vector<1x128x128xf32> to vector<128x128xf32>
    %cst_47 = arith.constant dense<0.000000e+00> : vector<32x128xf32>
    %53 = tpu.matmul %46, %52, %cst_47 {dimension_numbers = #tpu.dot_dimension_numbers<[1], [0], [0], [1], [0, 0, 1, 1], [], []>} : vector<32x128xf32>, vector<128x128xf32>, vector<32x128xf32> -> vector<32x128xf32>
    %54 = arith.addf %45, %53 : vector<32x128xf32>
    %c9_48 = arith.constant 9 : index
    %c0_49 = arith.constant 0 : index
    %55 = vector.load %arg18[%c9_48, %c0_49] : memref<48x128xf32, #tpu.memory_space<vmem>>, vector<32x128xf32>
    %c2_50 = arith.constant 2 : index
    %c0_51 = arith.constant 0 : index
    %c0_52 = arith.constant 0 : index
    %56 = vector.load %arg6[%c2_50, %c0_51, %c0_52] : memref<6x128x128xf32, #tpu.memory_space<vmem>>, vector<1x128x128xf32>
    %57 = vector.shape_cast %56 : vector<1x128x128xf32> to vector<128x128xf32>
    %cst_53 = arith.constant dense<0.000000e+00> : vector<32x128xf32>
    %58 = tpu.matmul %55, %57, %cst_53 {dimension_numbers = #tpu.dot_dimension_numbers<[1], [0], [0], [1], [0, 0, 1, 1], [], []>} : vector<32x128xf32>, vector<128x128xf32>, vector<32x128xf32> -> vector<32x128xf32>
    %59 = arith.addf %50, %58 : vector<32x128xf32>
    %c2_54 = arith.constant 2 : index
    %c0_55 = arith.constant 0 : index
    %c0_56 = arith.constant 0 : index
    %60 = vector.load %arg7[%c2_54, %c0_55, %c0_56] : memref<6x128x128xf32, #tpu.memory_space<vmem>>, vector<1x128x128xf32>
    %61 = vector.shape_cast %60 : vector<1x128x128xf32> to vector<128x128xf32>
    %cst_57 = arith.constant dense<0.000000e+00> : vector<32x128xf32>
    %62 = tpu.matmul %55, %61, %cst_57 {dimension_numbers = #tpu.dot_dimension_numbers<[1], [0], [0], [1], [0, 0, 1, 1], [], []>} : vector<32x128xf32>, vector<128x128xf32>, vector<32x128xf32> -> vector<32x128xf32>
    %63 = arith.addf %54, %62 : vector<32x128xf32>
    %c0_58 = arith.constant 0 : index
    %c0_59 = arith.constant 0 : index
    %c0_60 = arith.constant 0 : index
    %64 = vector.load %arg8[%c0_58, %c0_59, %c0_60] : memref<2x1x128xf32, #tpu.memory_space<vmem>>, vector<1x1x128xf32>
    %65 = vector.shape_cast %64 : vector<1x1x128xf32> to vector<1x128xf32>
    %66 = vector.broadcast %65 : vector<1x128xf32> to vector<32x128xf32>
    %67 = arith.addf %59, %66 : vector<32x128xf32>
    %c0_61 = arith.constant 0 : index
    %c0_62 = arith.constant 0 : index
    %c0_63 = arith.constant 0 : index
    %68 = vector.load %arg9[%c0_61, %c0_62, %c0_63] : memref<2x1x128xf32, #tpu.memory_space<vmem>>, vector<1x1x128xf32>
    %69 = vector.shape_cast %68 : vector<1x1x128xf32> to vector<1x128xf32>
    %70 = vector.broadcast %69 : vector<1x128xf32> to vector<32x128xf32>
    %71 = arith.addf %63, %70 : vector<32x128xf32>
    %72 = math.tanh %67 : vector<32x128xf32>
    %73 = arith.negf %71 : vector<32x128xf32>
    %74 = math.exp %73 : vector<32x128xf32>
    %cst_64 = arith.constant 1.000000e+00 : f32
    %75 = vector.broadcast %cst_64 : f32 to vector<32x128xf32>
    %76 = arith.addf %75, %74 : vector<32x128xf32>
    %77 = arith.divf %75, %76 : vector<32x128xf32>
    %78 = arith.mulf %72, %77 : vector<32x128xf32>
    %c0_65 = arith.constant 0 : index
    %c0_66 = arith.constant 0 : index
    %c0_67 = arith.constant 0 : index
    %79 = vector.load %arg10[%c0_65, %c0_66, %c0_67] : memref<2x128x128xf32, #tpu.memory_space<vmem>>, vector<1x128x128xf32>
    %80 = vector.shape_cast %79 : vector<1x128x128xf32> to vector<128x128xf32>
    %cst_68 = arith.constant dense<0.000000e+00> : vector<32x128xf32>
    %81 = tpu.matmul %78, %80, %cst_68 {dimension_numbers = #tpu.dot_dimension_numbers<[1], [0], [0], [1], [0, 0, 1, 1], [], []>} : vector<32x128xf32>, vector<128x128xf32>, vector<32x128xf32> -> vector<32x128xf32>
    %82 = arith.addf %36, %81 : vector<32x128xf32>
    %c0_69 = arith.constant 0 : index
    %c0_70 = arith.constant 0 : index
    %c0_71 = arith.constant 0 : index
    %83 = vector.load %arg12[%c0_69, %c0_70, %c0_71] : memref<2x1x128xf32, #tpu.memory_space<vmem>>, vector<1x1x128xf32>
    %84 = vector.shape_cast %83 : vector<1x1x128xf32> to vector<1x128xf32>
    %85 = vector.broadcast %84 : vector<1x128xf32> to vector<32x128xf32>
    %86 = arith.addf %82, %85 : vector<32x128xf32>
    %c0_72 = arith.constant 0 : index
    %c0_73 = arith.constant 0 : index
    %c0_74 = arith.constant 0 : index
    %87 = vector.load %arg11[%c0_72, %c0_73, %c0_74] : memref<2x128x128xf32, #tpu.memory_space<vmem>>, vector<1x128x128xf32>
    %88 = vector.shape_cast %87 : vector<1x128x128xf32> to vector<128x128xf32>
    %cst_75 = arith.constant dense<0.000000e+00> : vector<32x128xf32>
    %89 = tpu.matmul %78, %88, %cst_75 {dimension_numbers = #tpu.dot_dimension_numbers<[1], [0], [0], [1], [0, 0, 1, 1], [], []>} : vector<32x128xf32>, vector<128x128xf32>, vector<32x128xf32> -> vector<32x128xf32>
    %90 = arith.addf %37, %89 : vector<32x128xf32>
    %c0_76 = arith.constant 0 : index
    %c0_77 = arith.constant 0 : index
    %c0_78 = arith.constant 0 : index
    %91 = vector.load %arg13[%c0_76, %c0_77, %c0_78] : memref<2x1x128xf32, #tpu.memory_space<vmem>>, vector<1x1x128xf32>
    %92 = vector.shape_cast %91 : vector<1x1x128xf32> to vector<1x128xf32>
    %93 = vector.broadcast %92 : vector<1x128xf32> to vector<32x128xf32>
    %94 = arith.addf %90, %93 : vector<32x128xf32>
    %c8_79 = arith.constant 8 : index
    %c0_80 = arith.constant 0 : index
    %95 = vector.load %arg18[%c8_79, %c0_80] : memref<48x128xf32, #tpu.memory_space<vmem>>, vector<32x128xf32>
    tpu.vector_store %arg18[%c8_79, %c0_80], %86 {strides = array<i32>} : memref<48x128xf32, #tpu.memory_space<vmem>>, vector<32x128xf32>,
    %c6 = arith.constant 6 : index
    %c0_81 = arith.constant 0 : index
    %96 = vector.load %arg18[%c6, %c0_81] : memref<48x128xf32, #tpu.memory_space<vmem>>, vector<32x128xf32>
    %c3 = arith.constant 3 : index
    %c0_82 = arith.constant 0 : index
    %c0_83 = arith.constant 0 : index
    %97 = vector.load %arg6[%c3, %c0_82, %c0_83] : memref<6x128x128xf32, #tpu.memory_space<vmem>>, vector<1x128x128xf32>
    %98 = vector.shape_cast %97 : vector<1x128x128xf32> to vector<128x128xf32>
    %cst_84 = arith.constant dense<0.000000e+00> : vector<32x128xf32>
    %99 = tpu.matmul %96, %98, %cst_84 {dimension_numbers = #tpu.dot_dimension_numbers<[1], [0], [0], [1], [0, 0, 1, 1], [], []>} : vector<32x128xf32>, vector<128x128xf32>, vector<32x128xf32> -> vector<32x128xf32>
    %c3_85 = arith.constant 3 : index
    %c0_86 = arith.constant 0 : index
    %c0_87 = arith.constant 0 : index
    %100 = vector.load %arg7[%c3_85, %c0_86, %c0_87] : memref<6x128x128xf32, #tpu.memory_space<vmem>>, vector<1x128x128xf32>
    %101 = vector.shape_cast %100 : vector<1x128x128xf32> to vector<128x128xf32>
    %cst_88 = arith.constant dense<0.000000e+00> : vector<32x128xf32>
    %102 = tpu.matmul %96, %101, %cst_88 {dimension_numbers = #tpu.dot_dimension_numbers<[1], [0], [0], [1], [0, 0, 1, 1], [], []>} : vector<32x128xf32>, vector<128x128xf32>, vector<32x128xf32> -> vector<32x128xf32>
    %c8_89 = arith.constant 8 : index
    %c0_90 = arith.constant 0 : index
    %103 = vector.load %arg18[%c8_89, %c0_90] : memref<48x128xf32, #tpu.memory_space<vmem>>, vector<32x128xf32>
    %c4 = arith.constant 4 : index
    %c0_91 = arith.constant 0 : index
    %c0_92 = arith.constant 0 : index
    %104 = vector.load %arg6[%c4, %c0_91, %c0_92] : memref<6x128x128xf32, #tpu.memory_space<vmem>>, vector<1x128x128xf32>
    %105 = vector.shape_cast %104 : vector<1x128x128xf32> to vector<128x128xf32>
    %cst_93 = arith.constant dense<0.000000e+00> : vector<32x128xf32>
    %106 = tpu.matmul %103, %105, %cst_93 {dimension_numbers = #tpu.dot_dimension_numbers<[1], [0], [0], [1], [0, 0, 1, 1], [], []>} : vector<32x128xf32>, vector<128x128xf32>, vector<32x128xf32> -> vector<32x128xf32>
    %107 = arith.addf %99, %106 : vector<32x128xf32>
    %c4_94 = arith.constant 4 : index
    %c0_95 = arith.constant 0 : index
    %c0_96 = arith.constant 0 : index
    %108 = vector.load %arg7[%c4_94, %c0_95, %c0_96] : memref<6x128x128xf32, #tpu.memory_space<vmem>>, vector<1x128x128xf32>
    %109 = vector.shape_cast %108 : vector<1x128x128xf32> to vector<128x128xf32>
    %cst_97 = arith.constant dense<0.000000e+00> : vector<32x128xf32>
    %110 = tpu.matmul %103, %109, %cst_97 {dimension_numbers = #tpu.dot_dimension_numbers<[1], [0], [0], [1], [0, 0, 1, 1], [], []>} : vector<32x128xf32>, vector<128x128xf32>, vector<32x128xf32> -> vector<32x128xf32>
    %111 = arith.addf %102, %110 : vector<32x128xf32>
    %c10 = arith.constant 10 : index
    %c0_98 = arith.constant 0 : index
    %112 = vector.load %arg18[%c10, %c0_98] : memref<48x128xf32, #tpu.memory_space<vmem>>, vector<32x128xf32>
    %c5 = arith.constant 5 : index
    %c0_99 = arith.constant 0 : index
    %c0_100 = arith.constant 0 : index
    %113 = vector.load %arg6[%c5, %c0_99, %c0_100] : memref<6x128x128xf32, #tpu.memory_space<vmem>>, vector<1x128x128xf32>
    %114 = vector.shape_cast %113 : vector<1x128x128xf32> to vector<128x128xf32>
    %cst_101 = arith.constant dense<0.000000e+00> : vector<32x128xf32>
    %115 = tpu.matmul %112, %114, %cst_101 {dimension_numbers = #tpu.dot_dimension_numbers<[1], [0], [0], [1], [0, 0, 1, 1], [], []>} : vector<32x128xf32>, vector<128x128xf32>, vector<32x128xf32> -> vector<32x128xf32>
    %116 = arith.addf %107, %115 : vector<32x128xf32>
    %c5_102 = arith.constant 5 : index
    %c0_103 = arith.constant 0 : index
    %c0_104 = arith.constant 0 : index
    %117 = vector.load %arg7[%c5_102, %c0_103, %c0_104] : memref<6x128x128xf32, #tpu.memory_space<vmem>>, vector<1x128x128xf32>
    %118 = vector.shape_cast %117 : vector<1x128x128xf32> to vector<128x128xf32>
    %cst_105 = arith.constant dense<0.000000e+00> : vector<32x128xf32>
    %119 = tpu.matmul %112, %118, %cst_105 {dimension_numbers = #tpu.dot_dimension_numbers<[1], [0], [0], [1], [0, 0, 1, 1], [], []>} : vector<32x128xf32>, vector<128x128xf32>, vector<32x128xf32> -> vector<32x128xf32>
    %120 = arith.addf %111, %119 : vector<32x128xf32>
    %c1_106 = arith.constant 1 : index
    %c0_107 = arith.constant 0 : index
    %c0_108 = arith.constant 0 : index
    %121 = vector.load %arg8[%c1_106, %c0_107, %c0_108] : memref<2x1x128xf32, #tpu.memory_space<vmem>>, vector<1x1x128xf32>
    %122 = vector.shape_cast %121 : vector<1x1x128xf32> to vector<1x128xf32>
    %123 = vector.broadcast %122 : vector<1x128xf32> to vector<32x128xf32>
    %124 = arith.addf %116, %123 : vector<32x128xf32>
    %c1_109 = arith.constant 1 : index
    %c0_110 = arith.constant 0 : index
    %c0_111 = arith.constant 0 : index
    %125 = vector.load %arg9[%c1_109, %c0_110, %c0_111] : memref<2x1x128xf32, #tpu.memory_space<vmem>>, vector<1x1x128xf32>
    %126 = vector.shape_cast %125 : vector<1x1x128xf32> to vector<1x128xf32>
    %127 = vector.broadcast %126 : vector<1x128xf32> to vector<32x128xf32>
    %128 = arith.addf %120, %127 : vector<32x128xf32>
    %129 = math.tanh %124 : vector<32x128xf32>
    %130 = arith.negf %128 : vector<32x128xf32>
    %131 = math.exp %130 : vector<32x128xf32>
    %cst_112 = arith.constant 1.000000e+00 : f32
    %132 = vector.broadcast %cst_112 : f32 to vector<32x128xf32>
    %133 = arith.addf %132, %131 : vector<32x128xf32>
    %134 = arith.divf %132, %133 : vector<32x128xf32>
    %135 = arith.mulf %129, %134 : vector<32x128xf32>
    %c1_113 = arith.constant 1 : index
    %c0_114 = arith.constant 0 : index
    %c0_115 = arith.constant 0 : index
    %136 = vector.load %arg11[%c1_113, %c0_114, %c0_115] : memref<2x128x128xf32, #tpu.memory_space<vmem>>, vector<1x128x128xf32>
    %137 = vector.shape_cast %136 : vector<1x128x128xf32> to vector<128x128xf32>
    %cst_116 = arith.constant dense<0.000000e+00> : vector<32x128xf32>
    %138 = tpu.matmul %135, %137, %cst_116 {dimension_numbers = #tpu.dot_dimension_numbers<[1], [0], [0], [1], [0, 0, 1, 1], [], []>} : vector<32x128xf32>, vector<128x128xf32>, vector<32x128xf32> -> vector<32x128xf32>
    %139 = arith.addf %94, %138 : vector<32x128xf32>
    %c1_117 = arith.constant 1 : index
    %c0_118 = arith.constant 0 : index
    %c0_119 = arith.constant 0 : index
    %140 = vector.load %arg13[%c1_117, %c0_118, %c0_119] : memref<2x1x128xf32, #tpu.memory_space<vmem>>, vector<1x1x128xf32>
    %141 = vector.shape_cast %140 : vector<1x1x128xf32> to vector<1x128xf32>
    %142 = vector.broadcast %141 : vector<1x128xf32> to vector<32x128xf32>
    %143 = arith.addf %139, %142 : vector<32x128xf32>
    %c0_120 = arith.constant 0 : index
    %c0_121 = arith.constant 0 : index
    %144 = vector.load %arg14[%c0_120, %c0_121] : memref<128x128xf32, #tpu.memory_space<vmem>>, vector<128x128xf32>
    %cst_122 = arith.constant dense<0.000000e+00> : vector<32x128xf32>
    %145 = tpu.matmul %143, %144, %cst_122 {dimension_numbers = #tpu.dot_dimension_numbers<[1], [0], [0], [1], [0, 0, 1, 1], [], []>} : vector<32x128xf32>, vector<128x128xf32>, vector<32x128xf32> -> vector<32x128xf32>
    %c0_123 = arith.constant 0 : index
    %c0_124 = arith.constant 0 : index
    %146 = vector.load %arg15[%c0_123, %c0_124] : memref<1x128xf32, #tpu.memory_space<vmem>>, vector<1x128xf32>
    %147 = vector.broadcast %146 : vector<1x128xf32> to vector<32x128xf32>
    %148 = arith.addf %145, %147 : vector<32x128xf32>
    %149 = vector.broadcast %6 : vector<32x1xf32> to vector<32x128xf32>
    %150 = arith.mulf %148, %149 : vector<32x128xf32>
    %151 = tpu.iota {dimensions = array<i32: 1>} : vector<32x128xi32>
    %c16_i32 = arith.constant 16 : i32
    %152 = vector.broadcast %c16_i32 : i32 to vector<32x128xi32>
    %153 = arith.cmpi slt, %151, %152 : vector<32x128xi32>
    %cst_125 = arith.constant 0xFF800000 : f32
    %154 = vector.broadcast %cst_125 : f32 to vector<32x128xf32>
    %155 = arith.select %153, %150, %154 : vector<32x128xi1>, vector<32x128xf32>
    %cst_126 = arith.constant dense<0xFF800000> : vector<32xf32>
    %156 = vector.multi_reduction <maximumf>, %155, %cst_126 [1] : vector<32x128xf32> to vector<32xf32>
    %157 = vector.shape_cast %156 : vector<32xf32> to vector<32x1xf32>
    %158 = vector.broadcast %157 : vector<32x1xf32> to vector<32x128xf32>
    %159 = arith.subf %150, %158 : vector<32x128xf32>
    %160 = math.exp %159 : vector<32x128xf32>
    %cst_127 = arith.constant 0.000000e+00 : f32
    %161 = vector.broadcast %cst_127 : f32 to vector<32x128xf32>
    %162 = arith.select %153, %160, %161 : vector<32x128xi1>, vector<32x128xf32>
    %cst_128 = arith.constant dense<0.000000e+00> : vector<32xf32>
    %163 = vector.multi_reduction <add>, %162, %cst_128 [1] : vector<32x128xf32> to vector<32xf32>
    %164 = vector.shape_cast %163 : vector<32xf32> to vector<32x1xf32>
    %165 = math.log %164 : vector<32x1xf32>
    %166 = arith.addf %165, %157 : vector<32x1xf32>
    %c0_129 = arith.constant 0 : index
    %c0_130 = arith.constant 0 : index
    %c0_131 = arith.constant 0 : index
    %167 = vector.load %arg16[%c0_129, %c0_130, %c0_131] : memref<1x32x128xf32, #tpu.memory_space<vmem>>, vector<1x32x128xf32>
    %168 = vector.shape_cast %167 : vector<1x32x128xf32> to vector<32x128xf32>
    %169 = vector.shape_cast %150 : vector<32x128xf32> to vector<1x32x128xf32>
    tpu.vector_store %arg16[%c0_129, %c0_130, %c0_131], %169 {strides = array<i32>} : memref<1x32x128xf32, #tpu.memory_space<vmem>>, vector<1x32x128xf32>,
    %170 = vector.broadcast %166 : vector<32x1xf32> to vector<32x128xf32>
    %171 = arith.subf %150, %170 : vector<32x128xf32>
    %c0_132 = arith.constant 0 : index
    %c0_133 = arith.constant 0 : index
    %c0_134 = arith.constant 0 : index
    %172 = vector.load %arg17[%c0_132, %c0_133, %c0_134] : memref<1x32x128xf32, #tpu.memory_space<vmem>>, vector<1x32x128xf32>
    %173 = vector.shape_cast %172 : vector<1x32x128xf32> to vector<32x128xf32>
    %174 = vector.shape_cast %171 : vector<32x128xf32> to vector<1x32x128xf32>
    tpu.vector_store %arg17[%c0_132, %c0_133, %c0_134], %174 {strides = array<i32>} : memref<1x32x128xf32, #tpu.memory_space<vmem>>, vector<1x32x128xf32>,
    return
  }
  func.func @transform_0(%arg0: i32, %arg1: memref<2xi32, #tpu.memory_space<smem>>) -> (i32, i32, i32) {
    %c0_i32 = arith.constant 0 : i32
    %c0_i32_0 = arith.constant 0 : i32
    %c0_i32_1 = arith.constant 0 : i32
    return %arg0, %c0_i32, %c0_i32_0 : i32, i32, i32
  }
  func.func @transform_1(%arg0: i32, %arg1: memref<2xi32, #tpu.memory_space<smem>>) -> (i32, i32) {
    %c0_i32 = arith.constant 0 : i32
    %c0_i32_0 = arith.constant 0 : i32
    %c0_i32_1 = arith.constant 0 : i32
    return %c0_i32, %c0_i32_0 : i32, i32
  }
  func.func @transform_2(%arg0: i32, %arg1: memref<2xi32, #tpu.memory_space<smem>>) -> (i32, i32, i32) {
    %c0_i32 = arith.constant 0 : i32
    %c0_i32_0 = arith.constant 0 : i32
    %c0_i32_1 = arith.constant 0 : i32
    %c0_i32_2 = arith.constant 0 : i32
    return %c0_i32, %c0_i32_0, %c0_i32_1 : i32, i32, i32
  }
  func.func @transform_3(%arg0: i32, %arg1: memref<2xi32, #tpu.memory_space<smem>>) -> (i32, i32) {
    %c0_i32 = arith.constant 0 : i32
    %c0_i32_0 = arith.constant 0 : i32
    %c0_i32_1 = arith.constant 0 : i32
    return %c0_i32, %c0_i32_0 : i32, i32
  }
  func.func @transform_4(%arg0: i32, %arg1: memref<2xi32, #tpu.memory_space<smem>>) -> (i32, i32, i32) {
    %c0_i32 = arith.constant 0 : i32
    %c0_i32_0 = arith.constant 0 : i32
    %c0_i32_1 = arith.constant 0 : i32
    %c0_i32_2 = arith.constant 0 : i32
    return %c0_i32, %c0_i32_0, %c0_i32_1 : i32, i32, i32
  }
  func.func @transform_5(%arg0: i32, %arg1: memref<2xi32, #tpu.memory_space<smem>>) -> (i32, i32, i32) {
    %c0_i32 = arith.constant 0 : i32
    %c0_i32_0 = arith.constant 0 : i32
    %c0_i32_1 = arith.constant 0 : i32
    %c0_i32_2 = arith.constant 0 : i32
    return %c0_i32, %c0_i32_0, %c0_i32_1 : i32, i32, i32
  }
  func.func @transform_6(%arg0: i32, %arg1: memref<2xi32, #tpu.memory_space<smem>>) -> (i32, i32, i32) {
    %c0_i32 = arith.constant 0 : i32
    %c0_i32_0 = arith.constant 0 : i32
    %c0_i32_1 = arith.constant 0 : i32
    %c0_i32_2 = arith.constant 0 : i32
    return %c0_i32, %c0_i32_0, %c0_i32_1 : i32, i32, i32
  }
  func.func @transform_7(%arg0: i32, %arg1: memref<2xi32, #tpu.memory_space<smem>>) -> (i32, i32, i32) {
    %c0_i32 = arith.constant 0 : i32
    %c0_i32_0 = arith.constant 0 : i32
    %c0_i32_1 = arith.constant 0 : i32
    %c0_i32_2 = arith.constant 0 : i32
    return %c0_i32, %c0_i32_0, %c0_i32_1 : i32, i32, i32
  }
  func.func @transform_8(%arg0: i32, %arg1: memref<2xi32, #tpu.memory_space<smem>>) -> (i32, i32, i32) {
    %c0_i32 = arith.constant 0 : i32
    %c0_i32_0 = arith.constant 0 : i32
    %c0_i32_1 = arith.constant 0 : i32
    %c0_i32_2 = arith.constant 0 : i32
    return %c0_i32, %c0_i32_0, %c0_i32_1 : i32, i32, i32
  }
  func.func @transform_9(%arg0: i32, %arg1: memref<2xi32, #tpu.memory_space<smem>>) -> (i32, i32, i32) {
    %c0_i32 = arith.constant 0 : i32
    %c0_i32_0 = arith.constant 0 : i32
    %c0_i32_1 = arith.constant 0 : i32
    %c0_i32_2 = arith.constant 0 : i32
    return %c0_i32, %c0_i32_0, %c0_i32_1 : i32, i32, i32
  }
  func.func @transform_10(%arg0: i32, %arg1: memref<2xi32, #tpu.memory_space<smem>>) -> (i32, i32, i32) {
    %c0_i32 = arith.constant 0 : i32
    %c0_i32_0 = arith.constant 0 : i32
    %c0_i32_1 = arith.constant 0 : i32
    %c0_i32_2 = arith.constant 0 : i32
    return %c0_i32, %c0_i32_0, %c0_i32_1 : i32, i32, i32
  }
  func.func @transform_11(%arg0: i32, %arg1: memref<2xi32, #tpu.memory_space<smem>>) -> (i32, i32, i32) {
    %c0_i32 = arith.constant 0 : i32
    %c0_i32_0 = arith.constant 0 : i32
    %c0_i32_1 = arith.constant 0 : i32
    %c0_i32_2 = arith.constant 0 : i32
    return %c0_i32, %c0_i32_0, %c0_i32_1 : i32, i32, i32
  }
  func.func @transform_12(%arg0: i32, %arg1: memref<2xi32, #tpu.memory_space<smem>>) -> (i32, i32) {
    %c0_i32 = arith.constant 0 : i32
    %c0_i32_0 = arith.constant 0 : i32
    %c0_i32_1 = arith.constant 0 : i32
    return %c0_i32, %c0_i32_0 : i32, i32
  }
  func.func @transform_13(%arg0: i32, %arg1: memref<2xi32, #tpu.memory_space<smem>>) -> (i32, i32) {
    %c0_i32 = arith.constant 0 : i32
    %c0_i32_0 = arith.constant 0 : i32
    %c0_i32_1 = arith.constant 0 : i32
    return %c0_i32, %c0_i32_0 : i32, i32
  }
  func.func @transform_14(%arg0: i32, %arg1: memref<2xi32, #tpu.memory_space<smem>>) -> (i32, i32, i32) {
    %c0_i32 = arith.constant 0 : i32
    %c0_i32_0 = arith.constant 0 : i32
    %c0_i32_1 = arith.constant 0 : i32
    return %arg0, %c0_i32, %c0_i32_0 : i32, i32, i32
  }
  func.func @transform_15(%arg0: i32, %arg1: memref<2xi32, #tpu.memory_space<smem>>) -> (i32, i32, i32) {
    %c0_i32 = arith.constant 0 : i32
    %c0_i32_0 = arith.constant 0 : i32
    %c0_i32_1 = arith.constant 0 : i32
    return %arg0, %c0_i32, %c0_i32_0 : i32, i32, i32
  }
}

</mosaic_0001>

<bundles_post_ra>
// kernel: model_forward.2
= control target key start
LH: loop header
LB: loop body
LE: loop exit
PB: predicated region body
PF: predicated region fallthrough
CT: control target
= control target key end

     0   :  { %s453_s0 = inlined_call_operand.vmem [shape: s32[2], index: 0, kind: input, shape index: {}]   ;;  %s454_s1 = inlined_call_operand.vmem [shape: f32[2,32,128], index: 1, kind: input, shape index: {}]   ;;  %s455_s2 = inlined_call_operand.vmem [shape: f32[2,128], index: 2, kind: output, shape index: {}]  }
   0x1   :  { %s7_s11 = sshll.u32 %s453_s0, 4  ;;  %s8_s11 = int_to_ptr.vmem [resolvable:$true] %s7_s11 }
   0x2   :  { %s341_s12 = scalar_lea.vmem %s8_s11, 16  ;;  %p346_p1 = scmp.lt.s32.totalorder %s8_s11, %s8_s11 }
   0x3   :  { %p342_p0 = scmp.ne.s32.totalorder %s8_s11, %s341_s12  ;;  %p347_p2 = scmp.lt.s32.totalorder %s341_s12, %s341_s12 }
   0x5   :  { %p348_p3 = por %p347_p2, %p346_p1 }
   0x7   :  { %p349_p4 = pnand %p348_p3, %p342_p0 }
   0x9   :  { %352 = shalt.err (!%p349_p4)  }
   0xa   :  { %s379_s13 = smov [#allocation6]  }
   0xb   :  { %10 = dma.vmem_to_smem %s8_s11, 16, %s379_s13, [#allocation5] }
   0xc   :  { %365 = dma.done.wait [#allocation5], 16 }
   0xd   :  { %366 = vsyncadd [#allocation5], 4294967280 }
   0xe   :  { %12 = sfence }
   0xf   :  { %s401_s14 = smov 0   ;;  %s403_s15 = smov 0  }
  0x10   :  { %s405_s16 = smov 0  }
  0x11 LB: > { %s30_s0 = sadd.s32 1, %s373_s15  ;;  %p294_p5 = scmp.ge.s32.totalorder %s377_s16, 1  ;;  %s377_s16 = sphi %s405_s16, %s18_s16   ;;  %s373_s15 = sphi %s403_s15, %s457_s15   ;;  %s369_s14 = sphi %s401_s14, %s456_s14  }
  0x12   : > { %p32_p6 = scmp.ge.s32.totalorder %s30_s0, 2  ;;  %p108_p7 = scmp.lt.s32.totalorder %s377_s16, 3 }
  0x14   : > { %s459_s0 = smov (%p32_p6, %s30_s0), 0  ;;  %p109_p8 = pnand %p294_p5, %p108_p7 }
  0x15   : > { %p128_p9 = scmp.lt.s32.totalorder (!%p109_p8), %s369_s14, 1  ;;  %p137_p10 = scmp.eq.s32.totalorder (!%p109_p8), %s369_s14, 0 }
  0x16   : > { %112 = sbr.rel (%p109_p8) target bundleno = 238 (0xee), region = 24 }
  0x1b   : > { %s129_s17 = scalar_select %p128_p9, %s369_s14, 1  ;;  %vm145_vm0 = vcmask (%p137_p10), 0   ;;  %v380_v0 = vmov (%p137_p10), 0.0  }
  0x1c   : > { %142 = sbr.rel (!%p137_p10) target bundleno = 33 (0x21), region = 28  ;;  %143 = vst [vmem:[#allocation2] sm:$0x1] (%p137_p10), %v380_v0  ;;  %144 = vst [vmem:[#allocation3] sm:$0x1] (%p137_p10), %v380_v0 }
  0x1d   : > { %s305_s18 = sshll.u32 %s129_s17, 5  ;;  %146 = vst.msk [vmem:[#allocation4] sm:$0x1] (%p137_p10), %vm145_vm0, %v380_v0 }
  0x1e   : > { %s135_s21 = scalar_lea.vmem %s454_s1, %s305_s18 }
  0x21 PF: > { %v152_v1 = vlaneseq  ;;  %s162_s22 = sld [smem:[#allocation6 + %s369_s14]]  ;;  %p221_p11 = scmp.eq.s32.totalorder %s369_s14, 1  ;;  %v147_v6 = vld [vmem:[%s135_s21] sm:$0xff]  ;;  %v148_v7 = vld [vmem:[%s135_s21 + $0x8] sm:$0xff]  ;;  %v149_v8 = vld [vmem:[%s135_s21 + $0x10] sm:$0xff]  ;;  %v381_v11 = vmov 0.0  }
  0x22   : > { %v150_v9 = vld [vmem:[%s135_s21 + $0x18] sm:$0xff]  ;;  %vm219_vm5 = vcmask 0   ;;  %v382_v58 = vmov (%p221_p11), 0  }
  0x23   : > { %v429_v2 = vshrl.u32 %v152_v1, 7  ;;  %v180_v48 = vld [vmem:[#allocation2] sm:$0x1]  ;;  %v192_v52 = vld [vmem:[#allocation3] sm:$0x1]  ;;  %336 = vset.pattern.permute.xlu0 (%p221_p11), %v382_v58 }
  0x24   : > { %v208_v47 = vld [vmem:[#allocation4] sm:$0x1] }
  0x25   : > { %v154_v3 = vadd.s32 8, %v429_v2  ;;  %v155_v4 = vadd.s32 16, %v429_v2  ;;  %v156_v5 = vadd.s32 24, %v429_v2  ;;  %v236_v60 = vsub.s32 (%p221_p11), 0, %v429_v2 }
  0x27   : > { %v163_v10 = vstv %s162_s22 }
  0x28   : > { %vm164_vm1 = vcmp.lt.s32.totalorder %v429_v2, %v163_v10  ;;  %vm165_vm2 = vcmp.lt.s32.totalorder %v154_v3, %v163_v10  ;;  %vm166_vm3 = vcmp.lt.s32.totalorder %v155_v4, %v163_v10  ;;  %vm167_vm4 = vcmp.lt.s32.totalorder %v156_v5, %v163_v10 }
  0x29   : > { %v298_v12 = vsel %vm164_vm1, 1.0, %v381_v11  ;;  %v299_v13 = vsel %vm165_vm2, 1.0, %v381_v11  ;;  %v300_v14 = vsel %vm166_vm3, 1.0, %v381_v11  ;;  %v301_v15 = vsel %vm167_vm4, 1.0, %v381_v11 }
  0x2a   : > { %v176_v16 = vmul.f32 %v298_v12, %v147_v6  ;;  %v177_v17 = vmul.f32 %v299_v13, %v148_v7  ;;  %v178_v18 = vmul.f32 %v300_v14, %v149_v8  ;;  %v179_v19 = vmul.f32 %v301_v15, %v150_v9 }
  0x2b   : > { %v209_v20 = vadd.f32 %v299_v13, %v298_v12 }
  0x2c   : > { %v181_v21 = vadd.f32 %v177_v17, %v176_v16  ;;  %v193_v22 = vmul.f32 %v176_v16, %v147_v6  ;;  %v194_v23 = vmul.f32 %v177_v17, %v148_v7  ;;  %v195_v24 = vmul.f32 %v178_v18, %v149_v8 }
  0x2d   : > { %v210_v25 = vadd.f32 %v300_v14, %v209_v20  ;;  %v196_v27 = vmul.f32 %v179_v19, %v150_v9 }
  0x2e   : > { %v182_v26 = vadd.f32 %v181_v21, %v178_v18  ;;  %v197_v28 = vadd.f32 %v194_v23, %v193_v22 }
  0x2f   : > { %v211_v29 = vadd.f32 %v301_v15, %v210_v25 }
  0x30   : > { %v183_v30 = vadd.f32 %v182_v26, %v179_v19  ;;  %v198_v31 = vadd.f32 %v197_v28, %v195_v24 }
  0x31   : > { %v212_v32 = vrot.slane %v211_v29, 4 }
  0x32   : > { %v184_v33 = vrot.slane %v183_v30, 4  ;;  %v199_v34 = vadd.f32 %v198_v31, %v196_v27 }
  0x33   : > { %v213_v35 = vadd.f32 %v212_v32, %v211_v29 }
  0x34   : > { %v185_v36 = vadd.f32 %v184_v33, %v183_v30  ;;  %v200_v37 = vrot.slane %v199_v34, 4 }
  0x35   : > { %v214_v38 = vrot.slane %v213_v35, 2 }
  0x36   : > { %v186_v39 = vrot.slane %v185_v36, 2  ;;  %v201_v40 = vadd.f32 %v200_v37, %v199_v34 }
  0x37   : > { %v215_v41 = vadd.f32 %v214_v38, %v213_v35 }
  0x38   : > { %v187_v42 = vadd.f32 %v186_v39, %v185_v36  ;;  %v202_v43 = vrot.slane %v201_v40, 2 }
  0x39   : > { %v216_v44 = vrot.slane %v215_v41, 1 }
  0x3a   : > { %v188_v45 = vrot.slane %v187_v42, 1  ;;  %v203_v46 = vadd.f32 %v202_v43, %v201_v40 }
  0x3b   : > { %v217_v49 = vadd.f32 %v216_v44, %v215_v41 }
  0x3c   : > { %v189_v50 = vadd.f32 %v188_v45, %v187_v42  ;;  %v204_v51 = vrot.slane %v203_v46, 1 }
  0x3d   : > { %v218_v53 = vadd.f32 %v217_v49, %v208_v47 }
  0x3e   : > { %v190_v54 = vadd.f32 %v189_v50, %v180_v48  ;;  %v205_v55 = vadd.f32 %v204_v51, %v203_v46  ;;  %225 = sbr.rel (!%p221_p11) target bundleno = 238 (0xee), region = 32 }
  0x3f   : > { %220 = vst.msk [vmem:[#allocation4] sm:$0x1] %vm219_vm5, %v218_v53 }
  0x40   : > { %191 = vst [vmem:[#allocation2] sm:$0x1] %v190_v54  ;;  %v206_v56 = vadd.f32 %v205_v55, %v192_v52 }
  0x42   : > { %207 = vst [vmem:[#allocation3] sm:$0x1] %v206_v56 }
  0x46   : > { %v226_v57 = vld [vmem:[#allocation4] sm:$0x1] }
  0x47   : > { %v227_v59 = vmax.f32 %v226_v57, 1.0  ;;  %v228_v63 = vld [vmem:[#allocation2] sm:$0x1] }
  0x49   : > { %231 = vperm.xlu0 %336, %v227_v59   ;;  %v240_v1 = vld [vmem:[#allocation3] sm:$0x1] }
  0xc4   : > { %v232_v61 = vpop.permute.xlu0 %231 }
  0xc5   : > { %v237_v62 = vrot.slane %v232_v61, %v236_v60 }
  0xc7   : > { %337 = vrcp.f32 %v237_v62 }
  0xd4   : > { %v338_v0 = vpop.eup %337 }
  0xd5   : > { %v239_v3 = vmul.f32 %v338_v0, %v228_v63  ;;  %v241_v4 = vmul.f32 %v338_v0, %v240_v1 }
  0xd7   : > { %v242_v5 = vmul.f32 %v239_v3, %v239_v3  ;;  %247 = vst [vmem:[%s455_s2] sm:$0x1] %v239_v3 }
  0xd9   : > { %v243_v6 = vsub.f32 %v241_v4, %v242_v5 }
  0xdb   : > { %v244_v7 = vmax.f32 %v243_v6, 0.0 }
  0xdd   : > { %v245_v8 = vadd.f32 1e-05, %v244_v7 }
  0xdf   : > { %339 = vrsqrt.f32 %v245_v8 }
  0xec   : > { %v340_v9 = vpop.eup %339 }
  0xed   : > { %248 = vst [vmem:[%s455_s2 + $0x1] sm:$0x1] %v340_v9 }
  0xee PF: > { %s18_s16 = sadd.s32 1, %s377_s16   ;;  %s456_s14 = smov %s373_s15 }
  0xef   : > { %p15_p12 = scmp.ge.s32.totalorder %s18_s16, 4   ;;  %s457_s15 = smov %s459_s0 }
  0xf1   :  { %17 = sbr.rel (!%p15_p12) target bundleno = 17 (0x11), region = 58 }

// kernel: model_forward.3
= control target key start
LH: loop header
LB: loop body
LE: loop exit
PB: predicated region body
PF: predicated region fallthrough
CT: control target
= control target key end

     0   :  { %s5641_s0 = inlined_call_operand.vmem [shape: s32[2], index: 0, kind: input, shape index: {}]   ;;  %s5642_s1 = inlined_call_operand.vmem [shape: f32[2,32,128], index: 1, kind: input, shape index: {}]   ;;  %s5643_s2 = inlined_call_operand.vmem [shape: f32[2,128], index: 2, kind: input, shape index: {}]   ;;  %s5644_s3 = inlined_call_operand.vmem [shape: f32[3,128,128], index: 3, kind: input, shape index: {}]   ;;  %s5645_s4 = inlined_call_operand.vmem [shape: f32[1,128], index: 4, kind: input, shape index: {}]   ;;  %s5646_s5 = inlined_call_operand.vmem [shape: f32[6,128,128], index: 5, kind: input, shape index: {}]   ;;  %s5647_s6 = inlined_call_operand.vmem [shape: f32[6,128,128], index: 6, kind: input, shape index: {}]   ;;  %s5648_s7 = inlined_call_operand.vmem [shape: f32[2,1,128], index: 7, kind: input, shape index: {}]   ;;  %s5649_s8 = inlined_call_operand.vmem [shape: f32[2,1,128], index: 8, kind: input, shape index: {}]   ;;  %s5650_s9 = inlined_call_operand.vmem [shape: f32[2,128,128], index: 9, kind: input, shape index: {}]   ;;  %s5651_s10 = inlined_call_operand.vmem [shape: f32[2,128,128], index: 10, kind: input, shape index: {}]   ;;  %s5652_s11 = inlined_call_operand.vmem [shape: f32[2,1,128], index: 11, kind: input, shape index: {}]   ;;  %s5653_s12 = inlined_call_operand.vmem [shape: f32[2,1,128], index: 12, kind: input, shape index: {}]   ;;  %s5654_s13 = inlined_call_operand.vmem [shape: f32[128,128], index: 13, kind: input, shape index: {}]   ;;  %s5655_s14 = inlined_call_operand.vmem [shape: f32[1,128], index: 14, kind: input, shape index: {}]   ;;  %s5656_s15 = inlined_call_operand.vmem [shape: f32[2,32,128], index: 15, kind: output, shape index: {0}]   ;;  %s5657_s16 = inlined_call_operand.vmem [shape: f32[2,32,128], index: 16, kind: output, shape index: {1}]  }
   0x1   :  { %5659 = sst [smem:[#allocation6_spill]] %s5641_s0 }
   0x2   :  { %5660 = sst [smem:[#allocation7_spill]] %s5648_s7 }
   0x3   :  { %s5661_s23 = sld [smem:[#allocation6_spill]] }
   0x9   :  { %s22_s7 = sshll.u32 %s5661_s23, 4  ;;  %s23_s7 = int_to_ptr.vmem [resolvable:$true] %s22_s7 }
   0xa   :  { %s4349_s24 = scalar_lea.vmem %s23_s7, 16  ;;  %p4354_p1 = scmp.lt.s32.totalorder %s23_s7, %s23_s7 }
   0xb   :  { %p4350_p0 = scmp.ne.s32.totalorder %s23_s7, %s4349_s24  ;;  %p4355_p2 = scmp.lt.s32.totalorder %s4349_s24, %s4349_s24 }
   0xd   :  { %p4356_p3 = por %p4355_p2, %p4354_p1 }
   0xf   :  { %p4357_p4 = pnand %p4356_p3, %p4350_p0 }
  0x11   :  { %4360 = shalt.err (!%p4357_p4)  }
  0x12   :  { %s4371_s25 = smov [#allocation4]  }
  0x13   :  { %25 = dma.vmem_to_smem %s23_s7, 16, %s4371_s25, [#allocation3] }
  0x14   :  { %4365 = dma.done.wait [#allocation3], 16 }
  0x15   :  { %4366 = vsyncadd [#allocation3], 4294967280 }
  0x16   :  { %27 = sfence }
  0x17   :  { %s4461_s26 = smov 0  }
  0x18 LB: > { %s2887_s27 = sadd.s32 4294967295, %s4369_s26   ;;  %p2891_p5 = scmp.ge.s32.totalorder %s4369_s26, 1  ;;  %s4369_s26 = sphi %s4461_s26, %s33_s26  }
  0x19   : > { %p447_p6 = scmp.lt.s32.totalorder %s4369_s26, 3 }
  0x1b   : > { %p448_p7 = pnand %p2891_p5, %p447_p6 }
  0x1c   : > { %p500_p8 = scmp.lt.s32.totalorder (!%p448_p7), %s2887_s27, 1  ;;  %s520_s18 = sld [smem:[#allocation4 + %s2887_s27]] (!%p448_p7) }
  0x1d   : > { %451 = sbr.rel (%p448_p7) target bundleno = 1842 (0x732), region = 76  ;;  %s5662_s21 = sld [smem:[#allocation7_spill]] (!%p448_p7) }
  0x22   : > { %v2919_v0 = vld [vmem:[%s5644_s3 + $0xf8] sm:$0xff]  ;;  %v2918_v2 = vld [vmem:[%s5644_s3 + $0xf0] sm:$0xff]  ;;  %v515_v3 = vlaneseq  ;;  %v4372_v5 = vmov 0.0   ;;  %v2917_v6 = vld [vmem:[%s5644_s3 + $0xe8] sm:$0xff]  ;;  %s5664_s27 = smov (!%p500_p8, %s2887_s27), 1  ;;  %v521_v14 = vstv %s520_s18 }
  0x23   : > { %v589_v1 = vld [vmem:[%s5644_s3 + $0x78] sm:$0xff]  ;;  %3517 = vmatprep.subr.mxu0 %v2919_v0  ;;  %v588_v4 = vld [vmem:[%s5644_s3 + $0x70] sm:$0xff]  ;;  %560 = vst [vmem:[#allocation2] sm:$0xff] %v4372_v5  ;;  %565 = vst [vmem:[#allocation2 + $0x28] sm:$0xff] %v4372_v5  ;;  %s4496_s30 = sshll.u32 %s5664_s27, 5 }
  0x24   : > { %3555 = vmatprep.subr.mxu1 %v589_v1  ;;  %3518 = vmatpush3.msra.mxu0 %v2919_v0  ;;  %v587_v7 = vld [vmem:[%s5644_s3 + $0x68] sm:$0xff]  ;;  %v516_v8 = vshrl.u32 %v515_v3, 7  ;;  %v2916_v9 = vld [vmem:[%s5644_s3 + $0xe0] sm:$0xff]  ;;  %v2915_v11 = vld [vmem:[%s5644_s3 + $0xd8] sm:$0xff]  ;;  %s4514_s28 = scalar_lea.vmem %s5642_s1, %s4496_s30  ;;  %s509_s18 = scalar_lea.vmem %s5656_s15, %s4496_s30 }
  0x25   : > { %3556 = vmatpush3.msra.mxu1 %v589_v1  ;;  %3519 = vmatprep.subr.mxu0 %v2918_v2  ;;  %v586_v10 = vld [vmem:[%s5644_s3 + $0x60] sm:$0xff]  ;;  %v585_v12 = vld [vmem:[%s5644_s3 + $0x58] sm:$0xff]  ;;  %v2914_v15 = vld [vmem:[%s5644_s3 + $0xd0] sm:$0xff]  ;;  %s514_s0 = scalar_lea.vmem %s5657_s16, %s4496_s30 }
  0x26   : > { %3557 = vmatprep.subr.mxu1 %v588_v4  ;;  %3520 = vmatpush3.msra.mxu0 %v2918_v2  ;;  %v517_v13 = vadd.s32 8, %v516_v8  ;;  %v584_v16 = vld [vmem:[%s5644_s3 + $0x50] sm:$0xff]  ;;  %v2913_v17 = vld [vmem:[%s5644_s3 + $0xc8] sm:$0xff]  ;;  %vm522_vm0 = vcmp.lt.s32.totalorder %v516_v8, %v521_v14  ;;  %v2902_v19 = vld [vmem:[%s5643_s2] ss:$0 sm:$0xff]  ;;  %v518_v23 = vadd.s32 16, %v516_v8 }
  0x27   : > { %3558 = vmatpush3.msra.mxu1 %v588_v4  ;;  %3521 = vmatprep.subr.mxu0 %v2917_v6  ;;  %v583_v18 = vld [vmem:[%s5644_s3 + $0x48] sm:$0xff]  ;;  %v2903_v20 = vld [vmem:[%s5643_s2 + $0x1] ss:$0 sm:$0xff]  ;;  %v519_v24 = vadd.s32 24, %v516_v8  ;;  %v4538_v29 = vsel %vm522_vm0, 1.0, %v4372_v5  ;;  %v2911_v31 = vld [vmem:[%s5644_s3 + $0xb8] sm:$0xff] }
  0x28   : > { %3559 = vmatprep.subr.mxu1 %v587_v7  ;;  %3522 = vmatpush3.msra.mxu0 %v2917_v6  ;;  %vm523_vm1 = vcmp.lt.s32.totalorder %v517_v13, %v521_v14  ;;  %v536_v21 = vld [vmem:[%s4514_s28] sm:$0xff]  ;;  %v537_v22 = vld [vmem:[%s4514_s28 + $0x8] sm:$0xff]  ;;  %v581_v32 = vld [vmem:[%s5644_s3 + $0x38] sm:$0xff]  ;;  %vm524_vm2 = vcmp.lt.s32.totalorder %v518_v23, %v521_v14 }
  0x29   : > { %3560 = vmatpush3.msra.mxu1 %v587_v7  ;;  %3523 = vmatprep.subr.mxu0 %v2916_v9  ;;  %v2912_v25 = vld [vmem:[%s5644_s3 + $0xc0] sm:$0xff]  ;;  %v544_v27 = vsub.f32 %v536_v21, %v2902_v19  ;;  %v545_v28 = vsub.f32 %v537_v22, %v2902_v19  ;;  %v4542_v30 = vsel %vm523_vm1, 1.0, %v4372_v5  ;;  %v2910_v35 = vld [vmem:[%s5644_s3 + $0xb0] sm:$0xff]  ;;  %vm525_vm3 = vcmp.lt.s32.totalorder %v519_v24, %v521_v14  ;;  %v539_v40 = vld [vmem:[%s4514_s28 + $0x18] sm:$0xff] }
  0x2a   : > { %3561 = vmatprep.subr.mxu1 %v586_v10  ;;  %3524 = vmatpush3.msra.mxu0 %v2916_v9  ;;  %v582_v26 = vld [vmem:[%s5644_s3 + $0x40] sm:$0xff]  ;;  %v580_v36 = vld [vmem:[%s5644_s3 + $0x30] sm:$0xff]  ;;  %v547_v42 = vsub.f32 %v539_v40, %v2902_v19  ;;  %v2909_v43 = vld [vmem:[%s5644_s3 + $0xa8] sm:$0xff]  ;;  %v4571_v45 = vsel %vm524_vm2, 1.0, %v4372_v5  ;;  %v4575_v46 = vsel %vm525_vm3, 1.0, %v4372_v5 }
  0x2b   : > { %3562 = vmatpush3.msra.mxu1 %v586_v10  ;;  %3525 = vmatprep.subr.mxu0 %v2915_v11  ;;  %v552_v33 = vmul.f32 %v2903_v20, %v544_v27  ;;  %v553_v34 = vmul.f32 %v2903_v20, %v545_v28  ;;  %v538_v39 = vld [vmem:[%s4514_s28 + $0x10] sm:$0xff]  ;;  %v579_v44 = vld [vmem:[%s5644_s3 + $0x28] sm:$0xff]  ;;  %v2908_v49 = vld [vmem:[%s5644_s3 + $0xa0] sm:$0xff] }
  0x2c   : > { %3563 = vmatprep.subr.mxu1 %v585_v12  ;;  %3526 = vmatpush3.msra.mxu0 %v2915_v11  ;;  %v546_v41 = vsub.f32 %v538_v39, %v2902_v19  ;;  %v555_v48 = vmul.f32 %v2903_v20, %v547_v42  ;;  %v578_v50 = vld [vmem:[%s5644_s3 + $0x20] sm:$0xff]  ;;  %v2907_v53 = vld [vmem:[%s5644_s3 + $0x98] sm:$0xff]  ;;  %v2906_v55 = vld [vmem:[%s5644_s3 + $0x90] sm:$0xff] }
  0x2d   : > { %3564 = vmatpush3.msra.mxu1 %v585_v12  ;;  %3527 = vmatprep.subr.mxu0 %v2914_v15  ;;  %v556_v37 = vmul.f32 %v4538_v29, %v552_v33  ;;  %v4558_v38 = vmul.f32 %v4542_v30, %v553_v34  ;;  %v577_v54 = vld [vmem:[%s5644_s3 + $0x18] sm:$0xff]  ;;  %v576_v56 = vld [vmem:[%s5644_s3 + $0x10] sm:$0xff]  ;;  %v2905_v57 = vld [vmem:[%s5644_s3 + $0x88] sm:$0xff] }
  0x2e   : > { %3565 = vmatprep.subr.mxu1 %v584_v16  ;;  %3528 = vmatpush3.msra.mxu0 %v2914_v15  ;;  %v554_v47 = vmul.f32 %v2903_v20, %v546_v41  ;;  %v559_v52 = vmul.f32 %v4575_v46, %v555_v48  ;;  %v575_v58 = vld [vmem:[%s5644_s3 + $0x8] sm:$0xff]  ;;  %v2904_v59 = vld [vmem:[%s5644_s3 + $0x80] sm:$0xff]  ;;  %v2935_v63 = vld [vmem:[%s5644_s3 + $0x178] sm:$0xff] }
  0x2f   : > { %3566 = vmatpush3.msra.mxu1 %v584_v16  ;;  %3529 = vmatprep.subr.mxu0 %v2913_v17  ;;  %566 = vst [vmem:[#allocation2 + $0x8] sm:$0xff] %v556_v37  ;;  %567 = vst [vmem:[#allocation2 + $0x10] sm:$0xff] %v4558_v38  ;;  %v574_v60 = vld [vmem:[%s5644_s3] sm:$0xff]  ;;  %v2934_v1 = vld [vmem:[%s5644_s3 + $0x170] sm:$0xff] }
  0x30   : > { %3567 = vmatprep.subr.mxu1 %v583_v18  ;;  %3530 = vmatpush3.msra.mxu0 %v2913_v17  ;;  %v558_v51 = vmul.f32 %v4571_v45, %v554_v47  ;;  %569 = vst [vmem:[#allocation2 + $0x20] sm:$0xff] %v559_v52  ;;  %v2933_v4 = vld [vmem:[%s5644_s3 + $0x168] sm:$0xff]  ;;  %v2932_v6 = vld [vmem:[%s5644_s3 + $0x160] sm:$0xff]  ;;  %v2931_v7 = vld [vmem:[%s5644_s3 + $0x158] sm:$0xff] }
  0x31   : > { %3568 = vmatpush3.msra.mxu1 %v583_v18  ;;  %3531 = vmatprep.subr.mxu0 %v2912_v25  ;;  %v2930_v8 = vld [vmem:[%s5644_s3 + $0x150] sm:$0xff]  ;;  %v2929_v9 = vld [vmem:[%s5644_s3 + $0x148] sm:$0xff]  ;;  %v2928_v10 = vld [vmem:[%s5644_s3 + $0x140] sm:$0xff] }
  0x32   : > { %3569 = vmatprep.subr.mxu1 %v582_v26  ;;  %3532 = vmatpush3.msra.mxu0 %v2912_v25  ;;  %568 = vst [vmem:[#allocation2 + $0x18] sm:$0xff] %v558_v51  ;;  %v2927_v11 = vld [vmem:[%s5644_s3 + $0x138] sm:$0xff]  ;;  %v2926_v12 = vld [vmem:[%s5644_s3 + $0x130] sm:$0xff]  ;;  %v2925_v13 = vld [vmem:[%s5644_s3 + $0x128] sm:$0xff] }
  0x33   : > { %3570 = vmatpush3.msra.mxu1 %v582_v26  ;;  %3533 = vmatprep.subr.mxu0 %v2911_v31  ;;  %v2924_v14 = vld [vmem:[%s5644_s3 + $0x120] sm:$0xff]  ;;  %v2923_v15 = vld [vmem:[%s5644_s3 + $0x118] sm:$0xff]  ;;  %v2922_v16 = vld [vmem:[%s5644_s3 + $0x110] sm:$0xff] }
  0x34   : > { %3571 = vmatprep.subr.mxu1 %v581_v32  ;;  %3534 = vmatpush3.msra.mxu0 %v2911_v31  ;;  %v2921_v17 = vld [vmem:[%s5644_s3 + $0x108] sm:$0xff]  ;;  %v2920_v18 = vld [vmem:[%s5644_s3 + $0x100] sm:$0xff]  ;;  %v2952_v22 = vld [vmem:[%s5646_s5 + $0xf8] sm:$0xff] }
  0x35   : > { %3572 = vmatpush3.msra.mxu1 %v581_v32  ;;  %3535 = vmatprep.subr.mxu0 %v2910_v35  ;;  %v925_v23 = vld [vmem:[%s5646_s5 + $0x78] sm:$0xff]  ;;  %v2951_v24 = vld [vmem:[%s5646_s5 + $0xf0] sm:$0xff]  ;;  %v2950_v26 = vld [vmem:[%s5646_s5 + $0xe8] sm:$0xff] }
  0x36   : > { %3573 = vmatprep.subr.mxu1 %v580_v36  ;;  %3536 = vmatpush3.msra.mxu0 %v2910_v35  ;;  %v570_v61 = vld [vmem:[#allocation2 + $0x7] sm:$0xff]  ;;  %v571_v62 = vld [vmem:[#allocation2 + $0xf] sm:$0xff]  ;;  %v2948_v32 = vld [vmem:[%s5646_s5 + $0xd8] sm:$0xff] }
  0x37   : > { %3574 = vmatpush3.msra.mxu1 %v580_v36  ;;  %3537 = vmatprep.subr.mxu0 %v2909_v43  ;;  %v781_v5 = vld [vmem:[#allocation2 + $0x9] sm:$0xff]  ;;  %v784_v21 = vld [vmem:[#allocation2 + $0x21] sm:$0xff]  ;;  %v921_v33 = vld [vmem:[%s5646_s5 + $0x58] sm:$0xff] }
  0x38   : > { %3575 = vmatprep.subr.mxu1 %v579_v44  ;;  %3538 = vmatpush3.msra.mxu0 %v2909_v43  ;;  %v924_v25 = vld [vmem:[%s5646_s5 + $0x70] sm:$0xff]  ;;  %v923_v27 = vld [vmem:[%s5646_s5 + $0x68] sm:$0xff]  ;;  %v2949_v28 = vld [vmem:[%s5646_s5 + $0xe0] sm:$0xff] }
  0x39   : > { %3576 = vmatpush3.msra.mxu1 %v579_v44  ;;  %3539 = vmatprep.subr.mxu0 %v2908_v49  ;;  %v572_v0 = vld [vmem:[#allocation2 + $0x17] sm:$0xff]  ;;  %v573_v2 = vld [vmem:[#allocation2 + $0x1f] sm:$0xff]  ;;  %v2946_v36 = vld [vmem:[%s5646_s5 + $0xc8] sm:$0xff] }
  0x3a   : > { %3577 = vmatprep.subr.mxu1 %v578_v50  ;;  %3540 = vmatpush3.msra.mxu0 %v2908_v49  ;;  %v782_v19 = vld [vmem:[#allocation2 + $0x11] sm:$0xff]  ;;  %v783_v20 = vld [vmem:[#allocation2 + $0x19] sm:$0xff]  ;;  %v2942_v43 = vld [vmem:[%s5646_s5 + $0xa8] sm:$0xff] }
  0x3b   : > { %3578 = vmatpush3.msra.mxu1 %v578_v50  ;;  %3541 = vmatprep.subr.mxu0 %v2907_v53  ;;  %v922_v31 = vld [vmem:[%s5646_s5 + $0x60] sm:$0xff]  ;;  %v2947_v34 = vld [vmem:[%s5646_s5 + $0xd0] sm:$0xff]  ;;  %v2944_v40 = vld [vmem:[%s5646_s5 + $0xb8] sm:$0xff] }
  0x3c   : > { %3579 = vmatprep.subr.mxu1 %v577_v54  ;;  %3542 = vmatpush3.msra.mxu0 %v2907_v53  ;;  %v920_v35 = vld [vmem:[%s5646_s5 + $0x50] sm:$0xff]  ;;  %v918_v39 = vld [vmem:[%s5646_s5 + $0x40] sm:$0xff]  ;;  %v917_v41 = vld [vmem:[%s5646_s5 + $0x38] sm:$0xff] }
  0x3d   : > { %3580 = vmatpush3.msra.mxu1 %v577_v54  ;;  %3543 = vmatprep.subr.mxu0 %v2906_v55  ;;  %v2943_v42 = vld [vmem:[%s5646_s5 + $0xb0] sm:$0xff]  ;;  %v2941_v44 = vld [vmem:[%s5646_s5 + $0xa0] sm:$0xff]  ;;  %v2940_v47 = vld [vmem:[%s5646_s5 + $0x98] sm:$0xff] }
  0x3e   : > { %3581 = vmatprep.subr.mxu1 %v576_v56  ;;  %3544 = vmatpush3.msra.mxu0 %v2906_v55  ;;  %v916_v48 = vld [vmem:[%s5646_s5 + $0x30] sm:$0xff]  ;;  %v915_v50 = vld [vmem:[%s5646_s5 + $0x28] sm:$0xff]  ;;  %v2937_v53 = vld [vmem:[%s5646_s5 + $0x80] sm:$0xff] }
  0x3f   : > { %3582 = vmatpush3.msra.mxu1 %v576_v56  ;;  %3545 = vmatprep.subr.mxu0 %v2905_v57  ;;  %v2939_v49 = vld [vmem:[%s5646_s5 + $0x90] sm:$0xff]  ;;  %v913_v54 = vld [vmem:[%s5646_s5 + $0x18] sm:$0xff] }
  0x40   : > { %3583 = vmatprep.subr.mxu1 %v575_v58  ;;  %3546 = vmatpush3.msra.mxu0 %v2905_v57  ;;  %v2968_v55 = vld [vmem:[%s5647_s6 + $0xf8] sm:$0xff]  ;;  %v912_v56 = vld [vmem:[%s5646_s5 + $0x10] sm:$0xff]  ;;  %v911_v57 = vld [vmem:[%s5646_s5 + $0x8] sm:$0xff] }
  0x41   : > { %3584 = vmatpush3.msra.mxu1 %v575_v58  ;;  %3547 = vmatprep.subr.mxu0 %v2904_v59  ;;  %v910_v58 = vld [vmem:[%s5646_s5] sm:$0xff] }
  0x42   : > { %3585 = vmatprep.subr.mxu1 %v574_v60  ;;  %3548 = vmatpush3.msra.mxu0 %v2904_v59  ;;  %v941_v59 = vld [vmem:[%s5647_s6 + $0x78] sm:$0xff] }
  0x43   : > { %3549 = vmatprep.mubr.f32.mxu0 %v556_v37  ;;  %3586 = vmatpush3.msra.mxu1 %v574_v60  ;;  %v919_v37 = vld [vmem:[%s5646_s5 + $0x48] sm:$0xff] }
  0x44   : > { %3587 = vmatprep.mubr.f32.mxu1 %v570_v61  ;;  %3550 = vmatmul.mubr.f32.vlgmr.msra.gmra.mxu0 %v4558_v38  ;;  %v2945_v38 = vld [vmem:[%s5646_s5 + $0xc0] sm:$0xff] }
  0x45   : > { %3588 = vmatmul.mubr.f32.vlgmr.msra.gmra.mxu1 %v571_v62  ;;  %3593 = vmatprep.subr.mxu0 %v2935_v63 }
  0x46   : > { %3552 = vmatprep.mubr.f32.mxu0 %v558_v51  ;;  %3594 = vmatpush3.msra.mxu0 %v2935_v63  ;;  %v2938_v51 = vld [vmem:[%s5646_s5 + $0x88] sm:$0xff] }
  0x47   : > { %3590 = vmatprep.mubr.f32.mxu1 %v572_v0  ;;  %3595 = vmatprep.subr.mxu0 %v2934_v1 }
  0x48   : > { %3596 = vmatpush3.msra.mxu0 %v2934_v1  ;;  %3631 = vmatprep.subr.mxu1 %v2952_v22 }
  0x49   : > { %3591 = vmatmul.mubr.f32.gmra.mxu1 %v573_v2  ;;  %3597 = vmatprep.subr.mxu0 %v2933_v4 }
  0x4a   : > { %3553 = vmatmul.mubr.f32.gmra.mxu0 %v559_v52  ;;  %3632 = vmatpush3.msra.mxu1 %v2952_v22  ;;  %v914_v52 = vld [vmem:[%s5646_s5 + $0x20] sm:$0xff] }
  0x4b   : > { %3598 = vmatpush3.msra.mxu0 %v2933_v4  ;;  %3625 = vmatprep.mubr.f32.mxu0 %v781_v5 }
  0x4c   : > { %3599 = vmatprep.subr.mxu0 %v2932_v6  ;;  %3633 = vmatprep.subr.mxu1 %v2951_v24 }
  0x4d   : > { %3600 = vmatpush3.msra.mxu0 %v2932_v6  ;;  %3634 = vmatpush3.msra.mxu1 %v2951_v24  ;;  %v2936_v6 = vld [vmem:[%s5645_s4] ss:$0 sm:$0xff] }
  0x4e   : > { %3601 = vmatprep.subr.mxu0 %v2931_v7  ;;  %3635 = vmatprep.subr.mxu1 %v2950_v26  ;;  %v2965_v24 = vld [vmem:[%s5647_s6 + $0xe0] sm:$0xff] }
  0x4f   : > { %3602 = vmatpush3.msra.mxu0 %v2931_v7  ;;  %3636 = vmatpush3.msra.mxu1 %v2950_v26 }
  0x50   : > { %3603 = vmatprep.subr.mxu0 %v2930_v8  ;;  %3637 = vmatprep.subr.mxu1 %v2949_v28 }
  0x51   : > { %3604 = vmatpush3.msra.mxu0 %v2930_v8  ;;  %3638 = vmatpush3.msra.mxu1 %v2949_v28  ;;  %v940_v28 = vld [vmem:[%s5647_s6 + $0x70] sm:$0xff] }
  0x52   : > { %3605 = vmatprep.subr.mxu0 %v2929_v9  ;;  %3639 = vmatprep.subr.mxu1 %v2948_v32 }
  0x53   : > { %3606 = vmatpush3.msra.mxu0 %v2929_v9  ;;  %3640 = vmatpush3.msra.mxu1 %v2948_v32  ;;  %v939_v32 = vld [vmem:[%s5647_s6 + $0x68] sm:$0xff] }
  0x54   : > { %3607 = vmatprep.subr.mxu0 %v2928_v10  ;;  %3641 = vmatprep.subr.mxu1 %v2947_v34 }
  0x55   : > { %3608 = vmatpush3.msra.mxu0 %v2928_v10  ;;  %3642 = vmatpush3.msra.mxu1 %v2947_v34 }
  0x56   : > { %3609 = vmatprep.subr.mxu0 %v2927_v11  ;;  %3643 = vmatprep.subr.mxu1 %v2946_v36 }
  0x57   : > { %3610 = vmatpush3.msra.mxu0 %v2927_v11  ;;  %3644 = vmatpush3.msra.mxu1 %v2946_v36  ;;  %v2962_v36 = vld [vmem:[%s5647_s6 + $0xc8] sm:$0xff] }
  0x58   : > { %3611 = vmatprep.subr.mxu0 %v2926_v12  ;;  %3645 = vmatprep.subr.mxu1 %v2945_v38 }
  0x59   : > { %3612 = vmatpush3.msra.mxu0 %v2926_v12  ;;  %3646 = vmatpush3.msra.mxu1 %v2945_v38  ;;  %v2961_v38 = vld [vmem:[%s5647_s6 + $0xc0] sm:$0xff] }
  0x5a   : > { %3613 = vmatprep.subr.mxu0 %v2925_v13  ;;  %3647 = vmatprep.subr.mxu1 %v2944_v40 }
  0x5b   : > { %3614 = vmatpush3.msra.mxu0 %v2925_v13  ;;  %3648 = vmatpush3.msra.mxu1 %v2944_v40  ;;  %v2960_v40 = vld [vmem:[%s5647_s6 + $0xb8] sm:$0xff] }
  0x5c   : > { %3615 = vmatprep.subr.mxu0 %v2924_v14  ;;  %3649 = vmatprep.subr.mxu1 %v2943_v42 }
  0x5d   : > { %3616 = vmatpush3.msra.mxu0 %v2924_v14  ;;  %3650 = vmatpush3.msra.mxu1 %v2943_v42  ;;  %v2959_v42 = vld [vmem:[%s5647_s6 + $0xb0] sm:$0xff] }
  0x5e   : > { %3617 = vmatprep.subr.mxu0 %v2923_v15  ;;  %3651 = vmatprep.subr.mxu1 %v2942_v43 }
  0x5f   : > { %3618 = vmatpush3.msra.mxu0 %v2923_v15  ;;  %3652 = vmatpush3.msra.mxu1 %v2942_v43  ;;  %v934_v43 = vld [vmem:[%s5647_s6 + $0x40] sm:$0xff] }
  0x60   : > { %3619 = vmatprep.subr.mxu0 %v2922_v16  ;;  %3653 = vmatprep.subr.mxu1 %v2941_v44 }
  0x61   : > { %3620 = vmatpush3.msra.mxu0 %v2922_v16  ;;  %3654 = vmatpush3.msra.mxu1 %v2941_v44  ;;  %v2958_v44 = vld [vmem:[%s5647_s6 + $0xa8] sm:$0xff] }
  0x62   : > { %3621 = vmatprep.subr.mxu0 %v2921_v17  ;;  %3655 = vmatprep.subr.mxu1 %v2940_v47 }
  0x63   : > { %3622 = vmatpush3.msra.mxu0 %v2921_v17  ;;  %3656 = vmatpush3.msra.mxu1 %v2940_v47  ;;  %v933_v47 = vld [vmem:[%s5647_s6 + $0x38] sm:$0xff] }
  0x64   : > { %3623 = vmatprep.subr.mxu0 %v2920_v18  ;;  %3657 = vmatprep.subr.mxu1 %v2939_v49 }
  0x65   : > { %3624 = vmatpush3.msra.mxu0 %v2920_v18  ;;  %3658 = vmatpush3.msra.mxu1 %v2939_v49  ;;  %v932_v49 = vld [vmem:[%s5647_s6 + $0x30] sm:$0xff] }
  0x66   : > { %3626 = vmatmul.mubr.f32.vlgmr.msra.gmra.mxu0 %v782_v19  ;;  %3669 = vmatprep.subr.mxu0 %v925_v23 }
  0x67   : > { %3628 = vmatprep.mubr.f32.mxu0 %v783_v20  ;;  %3670 = vmatpush3.msra.mxu0 %v925_v23  ;;  %v2966_v23 = vld [vmem:[%s5647_s6 + $0xe8] sm:$0xff] }
  0x68   : > { %3671 = vmatprep.subr.mxu0 %v924_v25  ;;  %3659 = vmatprep.subr.mxu1 %v2938_v51 }
  0x69   : > { %3672 = vmatpush3.msra.mxu0 %v924_v25  ;;  %3660 = vmatpush3.msra.mxu1 %v2938_v51  ;;  %v2964_v25 = vld [vmem:[%s5647_s6 + $0xd8] sm:$0xff]  ;;  %v931_v51 = vld [vmem:[%s5647_s6 + $0x28] sm:$0xff] }
  0x6a   : > { %3629 = vmatmul.mubr.f32.gmra.mxu0 %v784_v21  ;;  %3673 = vmatprep.subr.mxu0 %v923_v27  ;;  %v2967_v21 = vld [vmem:[%s5647_s6 + $0xf0] sm:$0xff] }
  0x6b   : > { %3674 = vmatpush3.msra.mxu0 %v923_v27  ;;  %3661 = vmatprep.subr.mxu1 %v2937_v53 }
  0x6c   : > { %3675 = vmatprep.subr.mxu0 %v922_v31  ;;  %3662 = vmatpush3.msra.mxu1 %v2937_v53  ;;  %v930_v53 = vld [vmem:[%s5647_s6 + $0x20] sm:$0xff] }
  0x6d   : > { %3676 = vmatpush3.msra.mxu0 %v922_v31  ;;  %3707 = vmatprep.subr.mxu1 %v2968_v55  ;;  %v2963_v31 = vld [vmem:[%s5647_s6 + $0xd0] sm:$0xff] }
  0x6e   : > { %3677 = vmatprep.subr.mxu0 %v921_v33 }
  0x6f   : > { %3678 = vmatpush3.msra.mxu0 %v921_v33 }
  0x70   : > { %3679 = vmatprep.subr.mxu0 %v920_v35 }
  0x71   : > { %3680 = vmatpush3.msra.mxu0 %v920_v35  ;;  %v938_v35 = vld [vmem:[%s5647_s6 + $0x60] sm:$0xff] }
  0x72   : > { %3681 = vmatprep.subr.mxu0 %v919_v37 }
  0x73   : > { %3682 = vmatpush3.msra.mxu0 %v919_v37  ;;  %v937_v37 = vld [vmem:[%s5647_s6 + $0x58] sm:$0xff] }
  0x74   : > { %3683 = vmatprep.subr.mxu0 %v918_v39 }
  0x75   : > { %3684 = vmatpush3.msra.mxu0 %v918_v39  ;;  %v936_v39 = vld [vmem:[%s5647_s6 + $0x50] sm:$0xff] }
  0x76   : > { %3685 = vmatprep.subr.mxu0 %v917_v41 }
  0x77   : > { %3686 = vmatpush3.msra.mxu0 %v917_v41  ;;  %v935_v41 = vld [vmem:[%s5647_s6 + $0x48] sm:$0xff] }
  0x78   : > { %3687 = vmatprep.subr.mxu0 %v916_v48 }
  0x79   : > { %3688 = vmatpush3.msra.mxu0 %v916_v48  ;;  %v2957_v48 = vld [vmem:[%s5647_s6 + $0xa0] sm:$0xff] }
  0x7a   : > { %3689 = vmatprep.subr.mxu0 %v915_v50 }
  0x7b   : > { %3690 = vmatpush3.msra.mxu0 %v915_v50  ;;  %v2956_v50 = vld [vmem:[%s5647_s6 + $0x98] sm:$0xff] }
  0x7c   : > { %3691 = vmatprep.subr.mxu0 %v914_v52 }
  0x7d   : > { %3692 = vmatpush3.msra.mxu0 %v914_v52  ;;  %v2955_v52 = vld [vmem:[%s5647_s6 + $0x90] sm:$0xff] }
  0x7e   : > { %3693 = vmatprep.subr.mxu0 %v913_v54 }
  0x7f   : > { %3694 = vmatpush3.msra.mxu0 %v913_v54  ;;  %v2954_v54 = vld [vmem:[%s5647_s6 + $0x88] sm:$0xff] }
  0x80   : > { %3695 = vmatprep.subr.mxu0 %v912_v56 }
  0x81   : > { %3696 = vmatpush3.msra.mxu0 %v912_v56  ;;  %v2953_v56 = vld [vmem:[%s5647_s6 + $0x80] sm:$0xff] }
  0x82   : > { %3697 = vmatprep.subr.mxu0 %v911_v57 }
  0x83   : > { %3698 = vmatpush3.msra.mxu0 %v911_v57  ;;  %v928_v57 = vld [vmem:[%s5647_s6 + $0x10] sm:$0xff] }
  0x84   : > { %3699 = vmatprep.subr.mxu0 %v910_v58 }
  0x85   : > { %3700 = vmatpush3.msra.mxu0 %v910_v58  ;;  %v927_v58 = vld [vmem:[%s5647_s6 + $0x8] sm:$0xff] }
  0x86   : > { %3745 = vmatprep.subr.mxu0 %v941_v59 }
 0x104   : > { %v3551_v60 = vpop.f32.mrf.mxu0 }
 0x105   : > { %v3589_v61 = vpop.f32.mrf.mxu1 }
 0x106   : > { %v677_v62 = vpop.f32.mrf.mxu0  ;;  %v768_v4 = vadd.f32 %v3589_v61, %v3551_v60  ;;  %v926_v60 = vld [vmem:[%s5647_s6] sm:$0xff]  ;;  %v2983_v61 = vld [vmem:[%s5646_s5 + $0x170] sm:$0xff] }
 0x107   : > { %v762_v0 = vpop.f32.mrf.mxu1 }
 0x108   : > { %v763_v7 = vadd.f32 %v762_v0, %v677_v62  ;;  %v3000_v62 = vld [vmem:[%s5647_s6 + $0x178] sm:$0xff]  ;;  %v2982_v0 = vld [vmem:[%s5646_s5 + $0x168] sm:$0xff] }
 0x109   : > { %v3592_v1 = vpop.f32.mrf.mxu1 }
 0x10a   : > { %v3554_v63 = vpop.f32.mrf.mxu0 }
 0x10b   : > { %v772_v9 = vpop.f32.mrf.mxu1  ;;  %v778_v11 = vadd.f32 %v3592_v1, %v3554_v63  ;;  %v2999_v63 = vld [vmem:[%s5647_s6 + $0x170] sm:$0xff]  ;;  %v2998_v1 = vld [vmem:[%s5647_s6 + $0x168] sm:$0xff] }
 0x10c   : > { %v687_v2 = vpop.f32.mrf.mxu0 }
 0x10d   : > { %v773_v15 = vadd.f32 %v772_v9, %v687_v2  ;;  %v2981_v2 = vld [vmem:[%s5646_s5 + $0x160] sm:$0xff]  ;;  %v2995_v9 = vld [vmem:[%s5647_s6 + $0x150] sm:$0xff] }
 0x126   : > { %v3627_v5 = vpop.f32.mrf.mxu0 }
 0x127   : > { %v888_v8 = vadd.f32 %v3627_v5, %v768_v4  ;;  %v2997_v5 = vld [vmem:[%s5647_s6 + $0x160] sm:$0xff] }
 0x128   : > { %v868_v10 = vpop.f32.mrf.mxu0 }
 0x129   : > { %v4763_v12 = vadd.f32 %v2936_v6, %v888_v8  ;;  %v887_v13 = vadd.f32 %v868_v10, %v763_v7  ;;  %v2996_v7 = vld [vmem:[%s5647_s6 + $0x158] sm:$0xff]  ;;  %v2979_v8 = vld [vmem:[%s5646_s5 + $0x150] sm:$0xff]  ;;  %v2978_v10 = vld [vmem:[%s5646_s5 + $0x148] sm:$0xff] }
 0x12a   : > { %v3630_v14 = vpop.f32.mrf.mxu0 }
 0x12b   : > { %903 = vst [vmem:[#allocation2 + $0x10] sm:$0xff] %v4763_v12  ;;  %v898_v16 = vadd.f32 %v2936_v6, %v887_v13  ;;  %v890_v17 = vadd.f32 %v3630_v14, %v778_v11  ;;  %v2994_v11 = vld [vmem:[%s5647_s6 + $0x148] sm:$0xff]  ;;  %v2993_v13 = vld [vmem:[%s5647_s6 + $0x140] sm:$0xff]  ;;  %v2976_v14 = vld [vmem:[%s5646_s5 + $0x138] sm:$0xff] }
 0x12c   : > { %v878_v18 = vpop.f32.mrf.mxu0 }
 0x12d   : > { %902 = vst [vmem:[#allocation2 + $0x8] sm:$0xff] %v898_v16  ;;  %v4766_v19 = vadd.f32 %v2936_v6, %v890_v17  ;;  %v889_v20 = vadd.f32 %v878_v18, %v773_v15  ;;  %3663 = vmatprep.mubr.f32.mxu1 %v898_v16  ;;  %v2992_v15 = vld [vmem:[%s5647_s6 + $0x138] sm:$0xff]  ;;  %v2991_v17 = vld [vmem:[%s5647_s6 + $0x130] sm:$0xff]  ;;  %v2974_v18 = vld [vmem:[%s5646_s5 + $0x128] sm:$0xff] }
 0x12e   : > { %3664 = vmatmul.mubr.f32.vlgmr.msra.gmra.mxu1 %v4763_v12 }
 0x12f   : > { %905 = vst [vmem:[#allocation2 + $0x20] sm:$0xff] %v4766_v19  ;;  %v4773_v22 = vadd.f32 %v2936_v6, %v889_v20  ;;  %3708 = vmatpush3.msra.mxu1 %v2968_v55  ;;  %v929_v55 = vld [vmem:[%s5647_s6 + $0x18] sm:$0xff]  ;;  %v2973_v20 = vld [vmem:[%s5646_s5 + $0x120] sm:$0xff] }
 0x130   : > { %3709 = vmatprep.subr.mxu1 %v2967_v21  ;;  %v2980_v6 = vld [vmem:[%s5646_s5 + $0x158] sm:$0xff] }
 0x131   : > { %904 = vst [vmem:[#allocation2 + $0x18] sm:$0xff] %v4773_v22  ;;  %3710 = vmatpush3.msra.mxu1 %v2967_v21  ;;  %3666 = vmatprep.mubr.f32.mxu1 %v4773_v22  ;;  %v2989_v21 = vld [vmem:[%s5647_s6 + $0x120] sm:$0xff] }
 0x132   : > { %3711 = vmatprep.subr.mxu1 %v2966_v23  ;;  %3667 = vmatmul.mubr.f32.gmra.mxu1 %v4766_v19 }
 0x133   : > { %3712 = vmatpush3.msra.mxu1 %v2966_v23  ;;  %3739 = vmatprep.mubr.f32.mxu1 %v898_v16  ;;  %v2975_v16 = vld [vmem:[%s5646_s5 + $0x130] sm:$0xff]  ;;  %v2988_v23 = vld [vmem:[%s5647_s6 + $0x118] sm:$0xff] }
 0x134   : > { %v906_v26 = vld [vmem:[#allocation2 + $0x7] sm:$0xff]  ;;  %v4787_v27 = vld [vmem:[#allocation2 + $0xf] sm:$0xff]  ;;  %3713 = vmatprep.subr.mxu1 %v2965_v24 }
 0x135   : > { %3701 = vmatprep.mubr.f32.mxu0 %v906_v26  ;;  %3714 = vmatpush3.msra.mxu1 %v2965_v24  ;;  %v1320_v4 = vld [vmem:[#allocation2 + $0x9] sm:$0xff] }
 0x136   : > { %3702 = vmatmul.mubr.f32.vlgmr.msra.gmra.mxu0 %v4787_v27  ;;  %3715 = vmatprep.subr.mxu1 %v2964_v25  ;;  %v2971_v24 = vld [vmem:[%s5646_s5 + $0x110] sm:$0xff] }
 0x137   : > { %3746 = vmatpush3.msra.mxu0 %v941_v59  ;;  %3716 = vmatpush3.msra.mxu1 %v2964_v25  ;;  %v2984_v59 = vld [vmem:[%s5646_s5 + $0x178] sm:$0xff]  ;;  %v2987_v25 = vld [vmem:[%s5647_s6 + $0x110] sm:$0xff] }
 0x138   : > { %3747 = vmatprep.subr.mxu0 %v940_v28  ;;  %v4799_v33 = vld [vmem:[#allocation2 + $0x17] sm:$0xff]  ;;  %v4801_v34 = vld [vmem:[#allocation2 + $0x1f] sm:$0xff]  ;;  %3717 = vmatprep.subr.mxu1 %v2963_v31 }
 0x139   : > { %3748 = vmatpush3.msra.mxu0 %v940_v28  ;;  %3704 = vmatprep.mubr.f32.mxu0 %v4799_v33  ;;  %v2969_v28 = vld [vmem:[%s5646_s5 + $0x100] sm:$0xff] }
 0x13a   : > { %3749 = vmatprep.subr.mxu0 %v939_v32  ;;  %3705 = vmatmul.mubr.f32.gmra.mxu0 %v4801_v34 }
 0x13b   : > { %3750 = vmatpush3.msra.mxu0 %v939_v32  ;;  %3777 = vmatprep.mubr.f32.mxu0 %v906_v26  ;;  %v2970_v26 = vld [vmem:[%s5646_s5 + $0x108] sm:$0xff]  ;;  %v1321_v32 = vld [vmem:[#allocation2 + $0x11] sm:$0xff] }
 0x13c   : > { %3751 = vmatprep.subr.mxu0 %v938_v35  ;;  %3718 = vmatpush3.msra.mxu1 %v2963_v31  ;;  %v2985_v31 = vld [vmem:[%s5647_s6 + $0x100] sm:$0xff] }
 0x13d   : > { %3752 = vmatpush3.msra.mxu0 %v938_v35  ;;  %3719 = vmatprep.subr.mxu1 %v2962_v36  ;;  %v1605_v35 = vld [vmem:[%s5650_s9 + $0x78] sm:$0xff] }
 0x13e   : > { %3753 = vmatprep.subr.mxu0 %v937_v37  ;;  %3720 = vmatpush3.msra.mxu1 %v2962_v36  ;;  %v1721_v36 = vld [vmem:[%s5651_s10 + $0x78] sm:$0xff] }
 0x13f   : > { %3754 = vmatpush3.msra.mxu0 %v937_v37  ;;  %3721 = vmatprep.subr.mxu1 %v2961_v38  ;;  %v1604_v37 = vld [vmem:[%s5650_s9 + $0x70] sm:$0xff] }
 0x140   : > { %3755 = vmatprep.subr.mxu0 %v936_v39  ;;  %3722 = vmatpush3.msra.mxu1 %v2961_v38  ;;  %v1720_v38 = vld [vmem:[%s5651_s10 + $0x70] sm:$0xff] }
 0x141   : > { %3756 = vmatpush3.msra.mxu0 %v936_v39  ;;  %3723 = vmatprep.subr.mxu1 %v2960_v40  ;;  %v1603_v39 = vld [vmem:[%s5650_s9 + $0x68] sm:$0xff] }
 0x142   : > { %3757 = vmatprep.subr.mxu0 %v935_v41  ;;  %3724 = vmatpush3.msra.mxu1 %v2960_v40  ;;  %v1719_v40 = vld [vmem:[%s5651_s10 + $0x68] sm:$0xff] }
 0x143   : > { %3758 = vmatpush3.msra.mxu0 %v935_v41  ;;  %3725 = vmatprep.subr.mxu1 %v2959_v42  ;;  %v1602_v41 = vld [vmem:[%s5650_s9 + $0x60] sm:$0xff] }
 0x144   : > { %3759 = vmatprep.subr.mxu0 %v934_v43  ;;  %3726 = vmatpush3.msra.mxu1 %v2959_v42  ;;  %v1718_v42 = vld [vmem:[%s5651_s10 + $0x60] sm:$0xff] }
 0x145   : > { %3760 = vmatpush3.msra.mxu0 %v934_v43  ;;  %3727 = vmatprep.subr.mxu1 %v2958_v44  ;;  %v1601_v43 = vld [vmem:[%s5650_s9 + $0x58] sm:$0xff] }
 0x146   : > { %3761 = vmatprep.subr.mxu0 %v933_v47  ;;  %3728 = vmatpush3.msra.mxu1 %v2958_v44  ;;  %v1717_v44 = vld [vmem:[%s5651_s10 + $0x58] sm:$0xff] }
 0x147   : > { %3762 = vmatpush3.msra.mxu0 %v933_v47  ;;  %3729 = vmatprep.subr.mxu1 %v2957_v48  ;;  %v1600_v47 = vld [vmem:[%s5650_s9 + $0x50] sm:$0xff] }
 0x148   : > { %3763 = vmatprep.subr.mxu0 %v932_v49  ;;  %3730 = vmatpush3.msra.mxu1 %v2957_v48  ;;  %v1716_v48 = vld [vmem:[%s5651_s10 + $0x50] sm:$0xff] }
 0x149   : > { %3764 = vmatpush3.msra.mxu0 %v932_v49  ;;  %3731 = vmatprep.subr.mxu1 %v2956_v50  ;;  %v1599_v49 = vld [vmem:[%s5650_s9 + $0x48] sm:$0xff] }
 0x14a   : > { %3765 = vmatprep.subr.mxu0 %v931_v51  ;;  %3732 = vmatpush3.msra.mxu1 %v2956_v50  ;;  %v1715_v50 = vld [vmem:[%s5651_s10 + $0x48] sm:$0xff] }
 0x14b   : > { %3766 = vmatpush3.msra.mxu0 %v931_v51  ;;  %3733 = vmatprep.subr.mxu1 %v2955_v52  ;;  %v1598_v51 = vld [vmem:[%s5650_s9 + $0x40] sm:$0xff] }
 0x14c   : > { %3767 = vmatprep.subr.mxu0 %v930_v53  ;;  %3734 = vmatpush3.msra.mxu1 %v2955_v52  ;;  %v1714_v52 = vld [vmem:[%s5651_s10 + $0x40] sm:$0xff] }
 0x14d   : > { %3768 = vmatpush3.msra.mxu0 %v930_v53  ;;  %3735 = vmatprep.subr.mxu1 %v2954_v54  ;;  %v1597_v53 = vld [vmem:[%s5650_s9 + $0x38] sm:$0xff] }
 0x14e   : > { %3769 = vmatprep.subr.mxu0 %v929_v55  ;;  %3736 = vmatpush3.msra.mxu1 %v2954_v54  ;;  %v1713_v54 = vld [vmem:[%s5651_s10 + $0x38] sm:$0xff] }
 0x14f   : > { %3770 = vmatpush3.msra.mxu0 %v929_v55  ;;  %3737 = vmatprep.subr.mxu1 %v2953_v56  ;;  %v1596_v55 = vld [vmem:[%s5650_s9 + $0x30] sm:$0xff] }
 0x150   : > { %3771 = vmatprep.subr.mxu0 %v928_v57  ;;  %3738 = vmatpush3.msra.mxu1 %v2953_v56  ;;  %v1712_v56 = vld [vmem:[%s5651_s10 + $0x30] sm:$0xff] }
 0x151   : > { %3772 = vmatpush3.msra.mxu0 %v928_v57  ;;  %3740 = vmatmul.mubr.f32.vlgmr.msra.gmra.mxu1 %v4763_v12  ;;  %v2977_v12 = vld [vmem:[%s5646_s5 + $0x140] sm:$0xff]  ;;  %v1595_v57 = vld [vmem:[%s5650_s9 + $0x28] sm:$0xff] }
 0x152   : > { %3773 = vmatprep.subr.mxu0 %v927_v58  ;;  %3783 = vmatprep.subr.mxu1 %v2984_v59 }
 0x153   : > { %3774 = vmatpush3.msra.mxu0 %v927_v58  ;;  %3742 = vmatprep.mubr.f32.mxu1 %v4773_v22  ;;  %v2972_v22 = vld [vmem:[%s5646_s5 + $0x118] sm:$0xff]  ;;  %v1711_v58 = vld [vmem:[%s5651_s10 + $0x28] sm:$0xff] }
 0x154   : > { %3775 = vmatprep.subr.mxu0 %v926_v60  ;;  %3784 = vmatpush3.msra.mxu1 %v2984_v59  ;;  %v1594_v59 = vld [vmem:[%s5650_s9 + $0x20] sm:$0xff] }
 0x155   : > { %3776 = vmatpush3.msra.mxu0 %v926_v60  ;;  %3785 = vmatprep.subr.mxu1 %v2983_v61  ;;  %v1710_v60 = vld [vmem:[%s5651_s10 + $0x20] sm:$0xff] }
 0x156   : > { %3778 = vmatmul.mubr.f32.vlgmr.msra.gmra.mxu0 %v4787_v27  ;;  %3821 = vmatprep.subr.mxu0 %v3000_v62  ;;  %v2986_v27 = vld [vmem:[%s5647_s6 + $0x108] sm:$0xff] }
 0x157   : > { %3780 = vmatprep.mubr.f32.mxu0 %v4799_v33  ;;  %3822 = vmatpush3.msra.mxu0 %v3000_v62  ;;  %v1322_v33 = vld [vmem:[#allocation2 + $0x19] sm:$0xff] }
 0x158   : > { %3823 = vmatprep.subr.mxu0 %v2999_v63  ;;  %3786 = vmatpush3.msra.mxu1 %v2983_v61  ;;  %v1593_v61 = vld [vmem:[%s5650_s9 + $0x18] sm:$0xff] }
 0x159   : > { %3824 = vmatpush3.msra.mxu0 %v2999_v63  ;;  %3743 = vmatmul.mubr.f32.gmra.mxu1 %v4766_v19  ;;  %v2990_v19 = vld [vmem:[%s5647_s6 + $0x128] sm:$0xff]  ;;  %v1709_v62 = vld [vmem:[%s5651_s10 + $0x18] sm:$0xff]  ;;  %v1592_v63 = vld [vmem:[%s5650_s9 + $0x10] sm:$0xff] }
 0x15a   : > { %3781 = vmatmul.mubr.f32.gmra.mxu0 %v4801_v34  ;;  %3787 = vmatprep.subr.mxu1 %v2982_v0  ;;  %v1323_v34 = vld [vmem:[#allocation2 + $0x21] sm:$0xff] }
 0x15b   : > { %3825 = vmatprep.subr.mxu0 %v2998_v1  ;;  %3788 = vmatpush3.msra.mxu1 %v2982_v0  ;;  %v1708_v0 = vld [vmem:[%s5651_s10 + $0x10] sm:$0xff] }
 0x15c   : > { %3815 = vmatprep.mubr.f32.mxu1 %v1320_v4  ;;  %3826 = vmatpush3.msra.mxu0 %v2998_v1  ;;  %v1591_v1 = vld [vmem:[%s5650_s9 + $0x8] sm:$0xff] }
 0x15d   : > { %3853 = vmatprep.mubr.f32.mxu0 %v1320_v4  ;;  %3789 = vmatprep.subr.mxu1 %v2981_v2  ;;  %v1590_v4 = vld [vmem:[%s5650_s9] sm:$0xff] }
 0x15e   : > { %3827 = vmatprep.subr.mxu0 %v2997_v5  ;;  %3790 = vmatpush3.msra.mxu1 %v2981_v2  ;;  %v1707_v2 = vld [vmem:[%s5651_s10 + $0x8] sm:$0xff] }
 0x15f   : > { %3828 = vmatpush3.msra.mxu0 %v2997_v5  ;;  %3791 = vmatprep.subr.mxu1 %v2980_v6  ;;  %v1706_v5 = vld [vmem:[%s5651_s10] sm:$0xff] }
 0x160   : > { %3829 = vmatprep.subr.mxu0 %v2996_v7  ;;  %3792 = vmatpush3.msra.mxu1 %v2980_v6  ;;  %v5075_v6 = vld [vmem:[%s5646_s5 + $0x278] sm:$0xff] }
 0x161   : > { %3830 = vmatpush3.msra.mxu0 %v2996_v7  ;;  %3793 = vmatprep.subr.mxu1 %v2979_v8  ;;  %v5080_v7 = vld [vmem:[%s5646_s5 + $0x1f8] sm:$0xff] }
 0x162   : > { %3831 = vmatprep.subr.mxu0 %v2995_v9  ;;  %3794 = vmatpush3.msra.mxu1 %v2979_v8 }
 0x163   : > { %3832 = vmatpush3.msra.mxu0 %v2995_v9  ;;  %3795 = vmatprep.subr.mxu1 %v2978_v10 }
 0x164   : > { %3833 = vmatprep.subr.mxu0 %v2994_v11  ;;  %3796 = vmatpush3.msra.mxu1 %v2978_v10 }
 0x165   : > { %3834 = vmatpush3.msra.mxu0 %v2994_v11  ;;  %3797 = vmatprep.subr.mxu1 %v2977_v12 }
 0x166   : > { %3835 = vmatprep.subr.mxu0 %v2993_v13  ;;  %3798 = vmatpush3.msra.mxu1 %v2977_v12 }
 0x167   : > { %3836 = vmatpush3.msra.mxu0 %v2993_v13  ;;  %3799 = vmatprep.subr.mxu1 %v2976_v14 }
 0x168   : > { %3837 = vmatprep.subr.mxu0 %v2992_v15  ;;  %3800 = vmatpush3.msra.mxu1 %v2976_v14 }
 0x169   : > { %3838 = vmatpush3.msra.mxu0 %v2992_v15  ;;  %3801 = vmatprep.subr.mxu1 %v2975_v16 }
 0x16a   : > { %3839 = vmatprep.subr.mxu0 %v2991_v17  ;;  %3802 = vmatpush3.msra.mxu1 %v2975_v16 }
 0x16b   : > { %3840 = vmatpush3.msra.mxu0 %v2991_v17  ;;  %3803 = vmatprep.subr.mxu1 %v2974_v18 }
 0x16c   : > { %3841 = vmatprep.subr.mxu0 %v2990_v19  ;;  %3804 = vmatpush3.msra.mxu1 %v2974_v18 }
 0x16d   : > { %3842 = vmatpush3.msra.mxu0 %v2990_v19  ;;  %3805 = vmatprep.subr.mxu1 %v2973_v20 }
 0x16e   : > { %3843 = vmatprep.subr.mxu0 %v2989_v21  ;;  %3806 = vmatpush3.msra.mxu1 %v2973_v20 }
 0x16f   : > { %3844 = vmatpush3.msra.mxu0 %v2989_v21  ;;  %3807 = vmatprep.subr.mxu1 %v2972_v22 }
 0x170   : > { %3845 = vmatprep.subr.mxu0 %v2988_v23  ;;  %3808 = vmatpush3.msra.mxu1 %v2972_v22 }
 0x171   : > { %3846 = vmatpush3.msra.mxu0 %v2988_v23  ;;  %3809 = vmatprep.subr.mxu1 %v2971_v24 }
 0x172   : > { %3847 = vmatprep.subr.mxu0 %v2987_v25  ;;  %3810 = vmatpush3.msra.mxu1 %v2971_v24 }
 0x173   : > { %3848 = vmatpush3.msra.mxu0 %v2987_v25  ;;  %3811 = vmatprep.subr.mxu1 %v2970_v26  ;;  %v3002_v25 = vld [vmem:[%s5649_s8] ss:$0 sm:$0xff] }
 0x174   : > { %3849 = vmatprep.subr.mxu0 %v2986_v27  ;;  %3812 = vmatpush3.msra.mxu1 %v2970_v26 }
 0x175   : > { %3850 = vmatpush3.msra.mxu0 %v2986_v27  ;;  %3813 = vmatprep.subr.mxu1 %v2969_v28 }
 0x176   : > { %3851 = vmatprep.subr.mxu0 %v2985_v31  ;;  %3814 = vmatpush3.msra.mxu1 %v2969_v28 }
 0x177   : > { %3852 = vmatpush3.msra.mxu0 %v2985_v31  ;;  %3816 = vmatmul.mubr.f32.vlgmr.msra.gmra.mxu1 %v1321_v32 }
 0x178   : > { %3854 = vmatmul.mubr.f32.vlgmr.msra.gmra.mxu0 %v1321_v32  ;;  %3818 = vmatprep.mubr.f32.mxu1 %v1322_v33 }
 0x179   : > { %3856 = vmatprep.mubr.f32.mxu0 %v1322_v33  ;;  %3859 = vmatprep.subr.mxu1 %v1605_v35 }
 0x17a   : > { %3897 = vmatprep.subr.mxu0 %v1721_v36  ;;  %3860 = vmatpush3.msra.mxu1 %v1605_v35 }
 0x17b   : > { %3819 = vmatmul.mubr.f32.gmra.mxu1 %v1323_v34  ;;  %3898 = vmatpush3.msra.mxu0 %v1721_v36 }
 0x17c   : > { %3857 = vmatmul.mubr.f32.gmra.mxu0 %v1323_v34  ;;  %3861 = vmatprep.subr.mxu1 %v1604_v37 }
 0x17d   : > { %3899 = vmatprep.subr.mxu0 %v1720_v38  ;;  %3862 = vmatpush3.msra.mxu1 %v1604_v37 }
 0x17e   : > { %3900 = vmatpush3.msra.mxu0 %v1720_v38  ;;  %3863 = vmatprep.subr.mxu1 %v1603_v39 }
 0x17f   : > { %3901 = vmatprep.subr.mxu0 %v1719_v40  ;;  %3864 = vmatpush3.msra.mxu1 %v1603_v39 }
 0x180   : > { %3902 = vmatpush3.msra.mxu0 %v1719_v40  ;;  %3865 = vmatprep.subr.mxu1 %v1602_v41 }
 0x181   : > { %3903 = vmatprep.subr.mxu0 %v1718_v42  ;;  %3866 = vmatpush3.msra.mxu1 %v1602_v41 }
 0x182   : > { %3904 = vmatpush3.msra.mxu0 %v1718_v42  ;;  %3867 = vmatprep.subr.mxu1 %v1601_v43 }
 0x183   : > { %3905 = vmatprep.subr.mxu0 %v1717_v44  ;;  %3868 = vmatpush3.msra.mxu1 %v1601_v43 }
 0x184   : > { %3906 = vmatpush3.msra.mxu0 %v1717_v44  ;;  %3869 = vmatprep.subr.mxu1 %v1600_v47 }
 0x185   : > { %3907 = vmatprep.subr.mxu0 %v1716_v48  ;;  %3870 = vmatpush3.msra.mxu1 %v1600_v47 }
 0x186   : > { %3908 = vmatpush3.msra.mxu0 %v1716_v48  ;;  %3871 = vmatprep.subr.mxu1 %v1599_v49 }
 0x187   : > { %3909 = vmatprep.subr.mxu0 %v1715_v50  ;;  %3872 = vmatpush3.msra.mxu1 %v1599_v49 }
 0x188   : > { %3910 = vmatpush3.msra.mxu0 %v1715_v50  ;;  %3873 = vmatprep.subr.mxu1 %v1598_v51 }
 0x189   : > { %3911 = vmatprep.subr.mxu0 %v1714_v52  ;;  %3874 = vmatpush3.msra.mxu1 %v1598_v51 }
 0x18a   : > { %3912 = vmatpush3.msra.mxu0 %v1714_v52  ;;  %3875 = vmatprep.subr.mxu1 %v1597_v53 }
 0x18b   : > { %3913 = vmatprep.subr.mxu0 %v1713_v54  ;;  %3876 = vmatpush3.msra.mxu1 %v1597_v53 }
 0x18c   : > { %3914 = vmatpush3.msra.mxu0 %v1713_v54  ;;  %3877 = vmatprep.subr.mxu1 %v1596_v55 }
 0x18d   : > { %3915 = vmatprep.subr.mxu0 %v1712_v56  ;;  %3878 = vmatpush3.msra.mxu1 %v1596_v55 }
 0x18e   : > { %3916 = vmatpush3.msra.mxu0 %v1712_v56  ;;  %3879 = vmatprep.subr.mxu1 %v1595_v57 }
 0x18f   : > { %3917 = vmatprep.subr.mxu0 %v1711_v58  ;;  %3880 = vmatpush3.msra.mxu1 %v1595_v57 }
 0x190   : > { %3918 = vmatpush3.msra.mxu0 %v1711_v58  ;;  %3881 = vmatprep.subr.mxu1 %v1594_v59  ;;  %v3001_v58 = vld [vmem:[%s5662_s21] ss:$0 sm:$0xff] }
 0x191   : > { %3919 = vmatprep.subr.mxu0 %v1710_v60  ;;  %3882 = vmatpush3.msra.mxu1 %v1594_v59 }
 0x192   : > { %3920 = vmatpush3.msra.mxu0 %v1710_v60  ;;  %3883 = vmatprep.subr.mxu1 %v1593_v61 }
 0x193   : > { %3921 = vmatprep.subr.mxu0 %v1709_v62  ;;  %3884 = vmatpush3.msra.mxu1 %v1593_v61 }
 0x194   : > { %3922 = vmatpush3.msra.mxu0 %v1709_v62  ;;  %3885 = vmatprep.subr.mxu1 %v1592_v63 }
 0x195   : > { %3923 = vmatprep.subr.mxu0 %v1708_v0  ;;  %3886 = vmatpush3.msra.mxu1 %v1592_v63 }
 0x196   : > { %3924 = vmatpush3.msra.mxu0 %v1708_v0  ;;  %3887 = vmatprep.subr.mxu1 %v1591_v1 }
 0x197   : > { %3925 = vmatprep.subr.mxu0 %v1707_v2  ;;  %3888 = vmatpush3.msra.mxu1 %v1591_v1 }
 0x198   : > { %3926 = vmatpush3.msra.mxu0 %v1707_v2  ;;  %3889 = vmatprep.subr.mxu1 %v1590_v4 }
 0x199   : > { %3927 = vmatprep.subr.mxu0 %v1706_v5  ;;  %3890 = vmatpush3.msra.mxu1 %v1590_v4 }
 0x19a   : > { %3928 = vmatpush3.msra.mxu0 %v1706_v5  ;;  %3935 = vmatprep.subr.mxu1 %v5075_v6 }
 0x19b   : > { %3973 = vmatprep.subr.mxu0 %v5080_v7 }
 0x1ee   : > { %v3665_v9 = vpop.f32.mrf.mxu1 }
 0x1f0   : > { %v1029_v11 = vpop.f32.mrf.mxu1 }
 0x1f2   : > { %v3668_v13 = vpop.f32.mrf.mxu1 }
 0x1f4   : > { %v1039_v16 = vpop.f32.mrf.mxu1 }
 0x1f6   : > { %v3703_v8 = vpop.f32.mrf.mxu0 }
 0x1f7   : > { %v1120_v54 = vadd.f32 %v3703_v8, %v3665_v9 }
 0x1f8   : > { %v1114_v10 = vpop.f32.mrf.mxu0 }
 0x1f9   : > { %v1115_v52 = vadd.f32 %v1114_v10, %v1029_v11 }
 0x1fa   : > { %v3706_v12 = vpop.f32.mrf.mxu0 }
 0x1fb   : > { %v1130_v62 = vadd.f32 %v3706_v12, %v3668_v13 }
 0x1fc   : > { %v1124_v14 = vpop.f32.mrf.mxu0 }
 0x1fd   : > { %v1125_v56 = vadd.f32 %v1124_v14, %v1039_v16 }
 0x211   : > { %v3741_v17 = vpop.f32.mrf.mxu1 }
 0x213   : > { %v1216_v19 = vpop.f32.mrf.mxu1 }
 0x216   : > { %v3779_v15 = vpop.f32.mrf.mxu0 }
 0x217   : > { %v1307_v23 = vadd.f32 %v3779_v15, %v3741_v17 }
 0x218   : > { %v1301_v18 = vpop.f32.mrf.mxu0 }
 0x219   : > { %v3744_v21 = vpop.f32.mrf.mxu1  ;;  %v1302_v26 = vadd.f32 %v1301_v18, %v1216_v19 }
 0x21a   : > { %v3782_v20 = vpop.f32.mrf.mxu0 }
 0x21b   : > { %v1226_v28 = vpop.f32.mrf.mxu1  ;;  %v1317_v32 = vadd.f32 %v3782_v20, %v3744_v21  ;;  %v3055_v21 = vld [vmem:[%s5646_s5 + $0x270] sm:$0xff] }
 0x21c   : > { %v1311_v22 = vpop.f32.mrf.mxu0 }
 0x21d   : > { %v1312_v37 = vadd.f32 %v1311_v22, %v1226_v28  ;;  %v3023_v22 = vld [vmem:[%s5646_s5 + $0x1f0] sm:$0xff]  ;;  %v3022_v28 = vld [vmem:[%s5646_s5 + $0x1e8] sm:$0xff] }
 0x237   : > { %v3817_v35 = vpop.f32.mrf.mxu1 }
 0x238   : > { %v3855_v24 = vpop.f32.mrf.mxu0  ;;  %v1427_v57 = vadd.f32 %v3817_v35, %v1120_v54  ;;  %v3050_v35 = vld [vmem:[%s5646_s5 + $0x248] sm:$0xff]  ;;  %v3041_v54 = vld [vmem:[%s5646_s5 + $0x200] sm:$0xff] }
 0x239   : > { %v1533_v27 = vadd.f32 %v3855_v24, %v1307_v23  ;;  %v1407_v47 = vpop.f32.mrf.mxu1 }
 0x23a   : > { %v1513_v31 = vpop.f32.mrf.mxu0  ;;  %v1426_v53 = vadd.f32 %v1407_v47, %v1115_v52  ;;  %v1544_v1 = vadd.f32 %v3001_v58, %v1427_v57  ;;  %v3044_v47 = vld [vmem:[%s5646_s5 + $0x218] sm:$0xff]  ;;  %v3009_v57 = vld [vmem:[%s5646_s5 + $0x180] sm:$0xff] }
 0x23b   : > { %v1555_v33 = vadd.f32 %v3002_v25, %v1533_v27  ;;  %v1532_v34 = vadd.f32 %v1513_v31, %v1302_v26  ;;  %v3820_v51 = vpop.f32.mrf.mxu1  ;;  %v3054_v27 = vld [vmem:[%s5646_s5 + $0x268] sm:$0xff]  ;;  %v3052_v31 = vld [vmem:[%s5646_s5 + $0x258] sm:$0xff] }
 0x23c   : > { %v3858_v36 = vpop.f32.mrf.mxu0  ;;  %v1543_v59 = vadd.f32 %v3001_v58, %v1426_v53  ;;  %v1429_v2 = vadd.f32 %v3820_v51, %v1130_v62  ;;  %v3042_v51 = vld [vmem:[%s5646_s5 + $0x208] sm:$0xff]  ;;  %v3012_v52 = vld [vmem:[%s5646_s5 + $0x198] sm:$0xff]  ;;  %v3011_v53 = vld [vmem:[%s5646_s5 + $0x190] sm:$0xff] }
 0x23d   : > { %v3004_v38 = vmul.f32 -1.442695, %v1555_v33  ;;  %v1554_v39 = vadd.f32 %v3002_v25, %v1532_v34  ;;  %v1535_v40 = vadd.f32 %v3858_v36, %v1317_v32  ;;  %v1417_v55 = vpop.f32.mrf.mxu1  ;;  %v3020_v32 = vld [vmem:[%s5646_s5 + $0x1d8] sm:$0xff]  ;;  %v3051_v33 = vld [vmem:[%s5646_s5 + $0x250] sm:$0xff]  ;;  %v3018_v36 = vld [vmem:[%s5646_s5 + $0x1c8] sm:$0xff] }
 0x23e   : > { %v1523_v41 = vpop.f32.mrf.mxu0  ;;  %v1428_v60 = vadd.f32 %v1417_v55, %v1125_v56  ;;  %v1546_v11 = vadd.f32 %v3001_v58, %v1429_v2  ;;  %v3019_v34 = vld [vmem:[%s5646_s5 + $0x1d0] sm:$0xff]  ;;  %v3010_v55 = vld [vmem:[%s5646_s5 + $0x188] sm:$0xff]  ;;  %v3072_v56 = vld [vmem:[%s5647_s6 + $0x278] sm:$0xff] }
 0x23f   : > { %4281 = vpow2.f32 %v3004_v38  ;;  %v3003_v42 = vmul.f32 -1.442695, %v1554_v39  ;;  %v1557_v43 = vadd.f32 %v3002_v25, %v1535_v40  ;;  %v1534_v44 = vadd.f32 %v1523_v41, %v1312_v37  ;;  %v3049_v37 = vld [vmem:[%s5646_s5 + $0x240] sm:$0xff]  ;;  %v3048_v39 = vld [vmem:[%s5646_s5 + $0x238] sm:$0xff]  ;;  %v3047_v41 = vld [vmem:[%s5646_s5 + $0x230] sm:$0xff] }
 0x240   : > { %v1545_v5 = vadd.f32 %v3001_v58, %v1428_v60  ;;  %v3017_v38 = vld [vmem:[%s5646_s5 + $0x1c0] sm:$0xff]  ;;  %v3016_v40 = vld [vmem:[%s5646_s5 + $0x1b8] sm:$0xff] }
 0x241   : > { %4283 = vpow2.f32 %v3003_v42  ;;  %v3006_v48 = vmul.f32 -1.442695, %v1557_v43  ;;  %v1556_v49 = vadd.f32 %v3002_v25, %v1534_v44  ;;  %v3046_v42 = vld [vmem:[%s5646_s5 + $0x228] sm:$0xff]  ;;  %v3045_v43 = vld [vmem:[%s5646_s5 + $0x220] sm:$0xff]  ;;  %v3015_v44 = vld [vmem:[%s5646_s5 + $0x1b0] sm:$0xff] }
 0x242   : > { %v3040_v58 = vld [vmem:[%s5647_s6 + $0x1f8] sm:$0xff]  ;;  %v3007_v60 = vld [vmem:[%s5652_s11] ss:$0 sm:$0xff] }
 0x243   : > { %4285 = vpow2.f32 %v3006_v48  ;;  %v3005_v50 = vmul.f32 -1.442695, %v1556_v49  ;;  %v3014_v48 = vld [vmem:[%s5646_s5 + $0x1a8] sm:$0xff]  ;;  %v3043_v49 = vld [vmem:[%s5646_s5 + $0x210] sm:$0xff] }
 0x245   : > { %4287 = vpow2.f32 %v3005_v50  ;;  %v3013_v50 = vld [vmem:[%s5646_s5 + $0x1a0] sm:$0xff] }
 0x246   : > { %4289 = vtanh.f32 %v1543_v59 }
 0x24c   : > { %v4282_v61 = vpop.eup %4281 }
 0x24d   : > { %v1575_v63 = vadd.f32 1.0, %v4282_v61  ;;  %v4345_v61 = vld [vmem:[#allocation2 + $0x10] sm:$0xff] }
 0x24e   : > { %v4284_v0 = vpop.eup %4283 }
 0x24f   : > { %v1574_v4 = vadd.f32 1.0, %v4284_v0  ;;  %4291 = vrcp.f32 %v1575_v63 }
 0x250   : > { %v4286_v10 = vpop.eup %4285 }
 0x251   : > { %4293 = vrcp.f32 %v1574_v4  ;;  %v1577_v8 = vadd.f32 1.0, %v4286_v10  ;;  %v4347_v10 = vld [vmem:[#allocation2 + $0x20] sm:$0xff] }
 0x252   : > { %v4288_v9 = vpop.eup %4287  ;;  %4295 = vtanh.f32 %v1544_v1  ;;  %v4346_v1 = vld [vmem:[#allocation2 + $0x8] sm:$0xff] }
 0x253   : > { %4297 = vtanh.f32 %v1545_v5  ;;  %v1576_v14 = vadd.f32 1.0, %v4288_v9  ;;  %v4290_v12 = vpop.eup %4289 }
 0x254   : > { %4299 = vrcp.f32 %v1577_v8 }
 0x255   : > { %4301 = vrcp.f32 %v1576_v14  ;;  %v4348_v14 = vld [vmem:[#allocation2 + $0x18] sm:$0xff] }
 0x256   : > { %4303 = vtanh.f32 %v1546_v11 }
 0x25c   : > { %v4292_v13 = vpop.eup %4291 }
 0x25e   : > { %v4294_v15 = vpop.eup %4293 }
 0x25f   : > { %v4296_v16 = vpop.eup %4295  ;;  %v1586_v17 = vmul.f32 %v4294_v15, %v4290_v12 }
 0x260   : > { %v4298_v18 = vpop.eup %4297  ;;  %v1587_v19 = vmul.f32 %v4296_v16, %v4292_v13  ;;  %v3071_v13 = vld [vmem:[%s5647_s6 + $0x270] sm:$0xff]  ;;  %v3070_v16 = vld [vmem:[%s5647_s6 + $0x268] sm:$0xff] }
 0x261   : > { %v4300_v20 = vpop.eup %4299  ;;  %3891 = vmatprep.mubr.f32.mxu1 %v1586_v17  ;;  %3929 = vmatprep.mubr.f32.mxu0 %v1586_v17  ;;  %v3069_v17 = vld [vmem:[%s5647_s6 + $0x260] sm:$0xff] }
 0x262   : > { %v4302_v23 = vpop.eup %4301  ;;  %3892 = vmatmul.mubr.f32.vlgmr.msra.gmra.mxu1 %v1587_v19  ;;  %3930 = vmatmul.mubr.f32.vlgmr.msra.gmra.mxu0 %v1587_v19 }
 0x263   : > { %v4304_v24 = vpop.eup %4303  ;;  %v1588_v25 = vmul.f32 %v4302_v23, %v4298_v18  ;;  %3936 = vmatpush3.msra.mxu1 %v5075_v6  ;;  %3974 = vmatpush3.msra.mxu0 %v5080_v7  ;;  %v3053_v6 = vld [vmem:[%s5646_s5 + $0x260] sm:$0xff]  ;;  %v3068_v18 = vld [vmem:[%s5647_s6 + $0x258] sm:$0xff]  ;;  %v3038_v23 = vld [vmem:[%s5647_s6 + $0x1e8] sm:$0xff] }
 0x264   : > { %v1589_v26 = vmul.f32 %v4304_v24, %v4300_v20  ;;  %3937 = vmatprep.subr.mxu1 %v3055_v21  ;;  %3975 = vmatprep.subr.mxu0 %v3023_v22  ;;  %v3021_v7 = vld [vmem:[%s5646_s5 + $0x1e0] sm:$0xff] }
 0x265   : > { %3894 = vmatprep.mubr.f32.mxu1 %v1588_v25  ;;  %3932 = vmatprep.mubr.f32.mxu0 %v1588_v25 }
 0x266   : > { %3895 = vmatmul.mubr.f32.gmra.mxu1 %v1589_v26  ;;  %3933 = vmatmul.mubr.f32.gmra.mxu0 %v1589_v26  ;;  %v3037_v26 = vld [vmem:[%s5647_s6 + $0x1e0] sm:$0xff] }
 0x267   : > { %3938 = vmatpush3.msra.mxu1 %v3055_v21  ;;  %3976 = vmatpush3.msra.mxu0 %v3023_v22  ;;  %v3039_v21 = vld [vmem:[%s5647_s6 + $0x1f0] sm:$0xff] }
 0x268   : > { %3939 = vmatprep.subr.mxu1 %v3054_v27  ;;  %3977 = vmatprep.subr.mxu0 %v3022_v28  ;;  %v3067_v22 = vld [vmem:[%s5647_s6 + $0x250] sm:$0xff] }
 0x269   : > { %3940 = vmatpush3.msra.mxu1 %v3054_v27  ;;  %3978 = vmatpush3.msra.mxu0 %v3022_v28  ;;  %v3066_v27 = vld [vmem:[%s5647_s6 + $0x248] sm:$0xff]  ;;  %v3036_v28 = vld [vmem:[%s5647_s6 + $0x1d8] sm:$0xff] }
 0x26a   : > { %3941 = vmatprep.subr.mxu1 %v3053_v6  ;;  %3979 = vmatprep.subr.mxu0 %v3021_v7 }
 0x26b   : > { %3942 = vmatpush3.msra.mxu1 %v3053_v6  ;;  %3980 = vmatpush3.msra.mxu0 %v3021_v7  ;;  %v3065_v6 = vld [vmem:[%s5647_s6 + $0x240] sm:$0xff]  ;;  %v3035_v7 = vld [vmem:[%s5647_s6 + $0x1d0] sm:$0xff] }
 0x26c   : > { %3943 = vmatprep.subr.mxu1 %v3052_v31  ;;  %3981 = vmatprep.subr.mxu0 %v3020_v32 }
 0x26d   : > { %3944 = vmatpush3.msra.mxu1 %v3052_v31  ;;  %3982 = vmatpush3.msra.mxu0 %v3020_v32  ;;  %v3064_v31 = vld [vmem:[%s5647_s6 + $0x238] sm:$0xff]  ;;  %v3034_v32 = vld [vmem:[%s5647_s6 + $0x1c8] sm:$0xff] }
 0x26e   : > { %3945 = vmatprep.subr.mxu1 %v3051_v33  ;;  %3983 = vmatprep.subr.mxu0 %v3019_v34 }
 0x26f   : > { %3946 = vmatpush3.msra.mxu1 %v3051_v33  ;;  %3984 = vmatpush3.msra.mxu0 %v3019_v34  ;;  %v3063_v33 = vld [vmem:[%s5647_s6 + $0x230] sm:$0xff]  ;;  %v3033_v34 = vld [vmem:[%s5647_s6 + $0x1c0] sm:$0xff] }
 0x270   : > { %3947 = vmatprep.subr.mxu1 %v3050_v35  ;;  %3985 = vmatprep.subr.mxu0 %v3018_v36 }
 0x271   : > { %3948 = vmatpush3.msra.mxu1 %v3050_v35  ;;  %3986 = vmatpush3.msra.mxu0 %v3018_v36  ;;  %v3062_v35 = vld [vmem:[%s5647_s6 + $0x228] sm:$0xff]  ;;  %v3032_v36 = vld [vmem:[%s5647_s6 + $0x1b8] sm:$0xff] }
 0x272   : > { %3949 = vmatprep.subr.mxu1 %v3049_v37  ;;  %3987 = vmatprep.subr.mxu0 %v3017_v38 }
 0x273   : > { %3950 = vmatpush3.msra.mxu1 %v3049_v37  ;;  %3988 = vmatpush3.msra.mxu0 %v3017_v38  ;;  %v3061_v37 = vld [vmem:[%s5647_s6 + $0x220] sm:$0xff]  ;;  %v3031_v38 = vld [vmem:[%s5647_s6 + $0x1b0] sm:$0xff] }
 0x274   : > { %3951 = vmatprep.subr.mxu1 %v3048_v39  ;;  %3989 = vmatprep.subr.mxu0 %v3016_v40 }
 0x275   : > { %3952 = vmatpush3.msra.mxu1 %v3048_v39  ;;  %3990 = vmatpush3.msra.mxu0 %v3016_v40  ;;  %v3060_v39 = vld [vmem:[%s5647_s6 + $0x218] sm:$0xff]  ;;  %v3030_v40 = vld [vmem:[%s5647_s6 + $0x1a8] sm:$0xff] }
 0x276   : > { %3953 = vmatprep.subr.mxu1 %v3047_v41  ;;  %3991 = vmatprep.subr.mxu0 %v3015_v44 }
 0x277   : > { %3954 = vmatpush3.msra.mxu1 %v3047_v41  ;;  %3992 = vmatpush3.msra.mxu0 %v3015_v44  ;;  %v3059_v41 = vld [vmem:[%s5647_s6 + $0x210] sm:$0xff]  ;;  %v3028_v44 = vld [vmem:[%s5647_s6 + $0x198] sm:$0xff] }
 0x278   : > { %3955 = vmatprep.subr.mxu1 %v3046_v42  ;;  %3993 = vmatprep.subr.mxu0 %v3014_v48 }
 0x279   : > { %3956 = vmatpush3.msra.mxu1 %v3046_v42  ;;  %3994 = vmatpush3.msra.mxu0 %v3014_v48  ;;  %v3029_v42 = vld [vmem:[%s5647_s6 + $0x1a0] sm:$0xff]  ;;  %v3027_v48 = vld [vmem:[%s5647_s6 + $0x190] sm:$0xff] }
 0x27a   : > { %3957 = vmatprep.subr.mxu1 %v3045_v43  ;;  %3995 = vmatprep.subr.mxu0 %v3013_v50 }
 0x27b   : > { %3958 = vmatpush3.msra.mxu1 %v3045_v43  ;;  %3996 = vmatpush3.msra.mxu0 %v3013_v50  ;;  %v3058_v43 = vld [vmem:[%s5647_s6 + $0x208] sm:$0xff]  ;;  %v3088_v50 = vld [vmem:[%s5646_s5 + $0x2f8] sm:$0xff] }
 0x27c   : > { %3959 = vmatprep.subr.mxu1 %v3044_v47  ;;  %3997 = vmatprep.subr.mxu0 %v3012_v52 }
 0x27d   : > { %3960 = vmatpush3.msra.mxu1 %v3044_v47  ;;  %3998 = vmatpush3.msra.mxu0 %v3012_v52  ;;  %v3057_v47 = vld [vmem:[%s5647_s6 + $0x200] sm:$0xff]  ;;  %v3087_v52 = vld [vmem:[%s5646_s5 + $0x2f0] sm:$0xff] }
 0x27e   : > { %3961 = vmatprep.subr.mxu1 %v3043_v49  ;;  %3999 = vmatprep.subr.mxu0 %v3011_v53 }
 0x27f   : > { %3962 = vmatpush3.msra.mxu1 %v3043_v49  ;;  %4000 = vmatpush3.msra.mxu0 %v3011_v53  ;;  %v3026_v49 = vld [vmem:[%s5647_s6 + $0x188] sm:$0xff]  ;;  %v3104_v53 = vld [vmem:[%s5647_s6 + $0x2f8] sm:$0xff] }
 0x280   : > { %3963 = vmatprep.subr.mxu1 %v3042_v51  ;;  %4001 = vmatprep.subr.mxu0 %v3010_v55 }
 0x281   : > { %3964 = vmatpush3.msra.mxu1 %v3042_v51  ;;  %4002 = vmatpush3.msra.mxu0 %v3010_v55  ;;  %v3025_v51 = vld [vmem:[%s5647_s6 + $0x180] sm:$0xff]  ;;  %v3086_v55 = vld [vmem:[%s5646_s5 + $0x2e8] sm:$0xff] }
 0x282   : > { %3965 = vmatprep.subr.mxu1 %v3041_v54  ;;  %4003 = vmatprep.subr.mxu0 %v3009_v57 }
 0x283   : > { %3966 = vmatpush3.msra.mxu1 %v3041_v54  ;;  %4004 = vmatpush3.msra.mxu0 %v3009_v57  ;;  %v3103_v54 = vld [vmem:[%s5647_s6 + $0x2f0] sm:$0xff]  ;;  %v3085_v57 = vld [vmem:[%s5646_s5 + $0x2e0] sm:$0xff] }
 0x284   : > { %4011 = vmatprep.subr.mxu1 %v3072_v56  ;;  %4049 = vmatprep.subr.mxu0 %v3040_v58 }
 0x322   : > { %v3893_v59 = vpop.f32.mrf.mxu1 }
 0x323   : > { %v1692_v62 = vadd.f32 %v4345_v61, %v3893_v59  ;;  %v3101_v59 = vld [vmem:[%s5647_s6 + $0x2e0] sm:$0xff]  ;;  %v3100_v61 = vld [vmem:[%s5647_s6 + $0x2d8] sm:$0xff] }
 0x324   : > { %v1672_v63 = vpop.f32.mrf.mxu1 }
 0x325   : > { %v5191_v0 = vadd.f32 %v3007_v60, %v1692_v62  ;;  %v1691_v2 = vadd.f32 %v4346_v1, %v1672_v63  ;;  %v3083_v62 = vld [vmem:[%s5646_s5 + $0x2d0] sm:$0xff]  ;;  %v3098_v1 = vld [vmem:[%s5647_s6 + $0x2c8] sm:$0xff] }
 0x326   : > { %v3896_v4 = vpop.f32.mrf.mxu1  ;;  %v3099_v63 = vld [vmem:[%s5647_s6 + $0x2d0] sm:$0xff] }
 0x327   : > { %1815 = vst [vmem:[#allocation2 + $0x10] sm:$0xff] %v5191_v0  ;;  %v1702_v5 = vadd.f32 %v3007_v60, %v1691_v2  ;;  %v1694_v8 = vadd.f32 %v4347_v10, %v3896_v4  ;;  %v3081_v2 = vld [vmem:[%s5646_s5 + $0x2c0] sm:$0xff]  ;;  %v3096_v10 = vld [vmem:[%s5647_s6 + $0x2b8] sm:$0xff] }
 0x328   : > { %v1682_v9 = vpop.f32.mrf.mxu1  ;;  %v3097_v4 = vld [vmem:[%s5647_s6 + $0x2c0] sm:$0xff] }
 0x329   : > { %1814 = vst [vmem:[#allocation2 + $0x8] sm:$0xff] %v1702_v5  ;;  %v5194_v11 = vadd.f32 %v3007_v60, %v1694_v8  ;;  %v1693_v12 = vadd.f32 %v4348_v14, %v1682_v9  ;;  %3967 = vmatprep.mubr.f32.mxu1 %v1702_v5  ;;  %v3079_v8 = vld [vmem:[%s5646_s5 + $0x2b0] sm:$0xff]  ;;  %v3094_v14 = vld [vmem:[%s5647_s6 + $0x2a8] sm:$0xff] }
 0x32a   : > { %3968 = vmatmul.mubr.f32.vlgmr.msra.gmra.mxu1 %v5191_v0  ;;  %v3095_v9 = vld [vmem:[%s5647_s6 + $0x2b0] sm:$0xff] }
 0x32b   : > { %1817 = vst [vmem:[#allocation2 + $0x20] sm:$0xff] %v5194_v11  ;;  %v5201_v15 = vadd.f32 %v3007_v60, %v1693_v12  ;;  %4012 = vmatpush3.msra.mxu1 %v3072_v56  ;;  %v3102_v56 = vld [vmem:[%s5647_s6 + $0x2e8] sm:$0xff]  ;;  %v3084_v60 = vld [vmem:[%s5646_s5 + $0x2d8] sm:$0xff]  ;;  %v3077_v12 = vld [vmem:[%s5646_s5 + $0x2a0] sm:$0xff] }
 0x32c   : > { %4013 = vmatprep.subr.mxu1 %v3071_v13 }
 0x32d   : > { %1816 = vst [vmem:[#allocation2 + $0x18] sm:$0xff] %v5201_v15  ;;  %4014 = vmatpush3.msra.mxu1 %v3071_v13  ;;  %3970 = vmatprep.mubr.f32.mxu1 %v5201_v15  ;;  %v3093_v13 = vld [vmem:[%s5647_s6 + $0x2a0] sm:$0xff] }
 0x32e   : > { %4015 = vmatprep.subr.mxu1 %v3070_v16  ;;  %3971 = vmatmul.mubr.f32.gmra.mxu1 %v5194_v11 }
 0x32f   : > { %4016 = vmatpush3.msra.mxu1 %v3070_v16  ;;  %4043 = vmatprep.mubr.f32.mxu1 %v1702_v5  ;;  %v3080_v5 = vld [vmem:[%s5646_s5 + $0x2b8] sm:$0xff] }
 0x330   : > { %v1818_v19 = vld [vmem:[#allocation2 + $0x6] sm:$0xff]  ;;  %v5215_v20 = vld [vmem:[#allocation2 + $0xe] sm:$0xff]  ;;  %4017 = vmatprep.subr.mxu1 %v3069_v17  ;;  %v3092_v16 = vld [vmem:[%s5647_s6 + $0x298] sm:$0xff] }
 0x331   : > { %4005 = vmatprep.mubr.f32.mxu0 %v1818_v19  ;;  %4018 = vmatpush3.msra.mxu1 %v3069_v17  ;;  %v3075_v17 = vld [vmem:[%s5646_s5 + $0x290] sm:$0xff] }
 0x332   : > { %4006 = vmatmul.mubr.f32.vlgmr.msra.gmra.mxu0 %v5215_v20  ;;  %4019 = vmatprep.subr.mxu1 %v3068_v18 }
 0x333   : > { %4050 = vmatpush3.msra.mxu0 %v3040_v58  ;;  %4020 = vmatpush3.msra.mxu1 %v3068_v18  ;;  %v2234_v58 = vld [vmem:[#allocation2 + $0xa] sm:$0xff] }
 0x334   : > { %4051 = vmatprep.subr.mxu0 %v3039_v21  ;;  %v5227_v24 = vld [vmem:[#allocation2 + $0x16] sm:$0xff]  ;;  %v5229_v25 = vld [vmem:[#allocation2 + $0x1e] sm:$0xff]  ;;  %4021 = vmatprep.subr.mxu1 %v3067_v22 }
 0x335   : > { %4052 = vmatpush3.msra.mxu0 %v3039_v21  ;;  %4008 = vmatprep.mubr.f32.mxu0 %v5227_v24  ;;  %v3091_v18 = vld [vmem:[%s5647_s6 + $0x290] sm:$0xff]  ;;  %v3073_v21 = vld [vmem:[%s5646_s5 + $0x280] sm:$0xff] }
 0x336   : > { %4053 = vmatprep.subr.mxu0 %v3038_v23  ;;  %4009 = vmatmul.mubr.f32.gmra.mxu0 %v5229_v25 }
 0x337   : > { %4054 = vmatpush3.msra.mxu0 %v3038_v23  ;;  %4081 = vmatprep.mubr.f32.mxu0 %v1818_v19  ;;  %v3074_v19 = vld [vmem:[%s5646_s5 + $0x288] sm:$0xff]  ;;  %v2235_v23 = vld [vmem:[#allocation2 + $0x12] sm:$0xff] }
 0x338   : > { %4055 = vmatprep.subr.mxu0 %v3037_v26  ;;  %4022 = vmatpush3.msra.mxu1 %v3067_v22  ;;  %v3089_v22 = vld [vmem:[%s5647_s6 + $0x280] sm:$0xff] }
 0x339   : > { %4056 = vmatpush3.msra.mxu0 %v3037_v26  ;;  %4023 = vmatprep.subr.mxu1 %v3066_v27  ;;  %v3128_v26 = vld [vmem:[%s5651_s10 + $0xf8] sm:$0xff] }
 0x33a   : > { %4057 = vmatprep.subr.mxu0 %v3036_v28  ;;  %4024 = vmatpush3.msra.mxu1 %v3066_v27  ;;  %v3127_v27 = vld [vmem:[%s5651_s10 + $0xf0] sm:$0xff] }
 0x33b   : > { %4058 = vmatpush3.msra.mxu0 %v3036_v28  ;;  %4025 = vmatprep.subr.mxu1 %v3065_v6  ;;  %v3126_v28 = vld [vmem:[%s5651_s10 + $0xe8] sm:$0xff] }
 0x33c   : > { %4059 = vmatprep.subr.mxu0 %v3035_v7  ;;  %4026 = vmatpush3.msra.mxu1 %v3065_v6  ;;  %v3125_v6 = vld [vmem:[%s5651_s10 + $0xe0] sm:$0xff] }
 0x33d   : > { %4060 = vmatpush3.msra.mxu0 %v3035_v7  ;;  %4027 = vmatprep.subr.mxu1 %v3064_v31  ;;  %v3124_v7 = vld [vmem:[%s5651_s10 + $0xd8] sm:$0xff] }
 0x33e   : > { %4061 = vmatprep.subr.mxu0 %v3034_v32  ;;  %4028 = vmatpush3.msra.mxu1 %v3064_v31  ;;  %v3123_v31 = vld [vmem:[%s5651_s10 + $0xd0] sm:$0xff] }
 0x33f   : > { %4062 = vmatpush3.msra.mxu0 %v3034_v32  ;;  %4029 = vmatprep.subr.mxu1 %v3063_v33  ;;  %v3122_v32 = vld [vmem:[%s5651_s10 + $0xc8] sm:$0xff] }
 0x340   : > { %4063 = vmatprep.subr.mxu0 %v3033_v34  ;;  %4030 = vmatpush3.msra.mxu1 %v3063_v33  ;;  %v3121_v33 = vld [vmem:[%s5651_s10 + $0xc0] sm:$0xff] }
 0x341   : > { %4064 = vmatpush3.msra.mxu0 %v3033_v34  ;;  %4031 = vmatprep.subr.mxu1 %v3062_v35  ;;  %v3120_v34 = vld [vmem:[%s5651_s10 + $0xb8] sm:$0xff] }
 0x342   : > { %4065 = vmatprep.subr.mxu0 %v3032_v36  ;;  %4032 = vmatpush3.msra.mxu1 %v3062_v35  ;;  %v3119_v35 = vld [vmem:[%s5651_s10 + $0xb0] sm:$0xff] }
 0x343   : > { %4066 = vmatpush3.msra.mxu0 %v3032_v36  ;;  %4033 = vmatprep.subr.mxu1 %v3061_v37  ;;  %v3118_v36 = vld [vmem:[%s5651_s10 + $0xa8] sm:$0xff] }
 0x344   : > { %4067 = vmatprep.subr.mxu0 %v3031_v38  ;;  %4034 = vmatpush3.msra.mxu1 %v3061_v37  ;;  %v3117_v37 = vld [vmem:[%s5651_s10 + $0xa0] sm:$0xff] }
 0x345   : > { %4068 = vmatpush3.msra.mxu0 %v3031_v38  ;;  %4035 = vmatprep.subr.mxu1 %v3060_v39  ;;  %v3116_v38 = vld [vmem:[%s5651_s10 + $0x98] sm:$0xff] }
 0x346   : > { %4069 = vmatprep.subr.mxu0 %v3030_v40  ;;  %4036 = vmatpush3.msra.mxu1 %v3060_v39  ;;  %v3115_v39 = vld [vmem:[%s5651_s10 + $0x90] sm:$0xff] }
 0x347   : > { %4070 = vmatpush3.msra.mxu0 %v3030_v40  ;;  %4037 = vmatprep.subr.mxu1 %v3059_v41  ;;  %v3114_v40 = vld [vmem:[%s5651_s10 + $0x88] sm:$0xff] }
 0x348   : > { %4071 = vmatprep.subr.mxu0 %v3029_v42  ;;  %4038 = vmatpush3.msra.mxu1 %v3059_v41  ;;  %v3113_v41 = vld [vmem:[%s5651_s10 + $0x80] sm:$0xff] }
 0x349   : > { %4072 = vmatpush3.msra.mxu0 %v3029_v42  ;;  %4039 = vmatprep.subr.mxu1 %v3058_v43  ;;  %v5455_v42 = vld [vmem:[%s5654_s13 + $0x78] sm:$0xff] }
 0x34a   : > { %4073 = vmatprep.subr.mxu0 %v3028_v44  ;;  %4040 = vmatpush3.msra.mxu1 %v3058_v43  ;;  %v5460_v43 = vld [vmem:[%s5654_s13 + $0x70] sm:$0xff] }
 0x34b   : > { %4074 = vmatpush3.msra.mxu0 %v3028_v44  ;;  %4041 = vmatprep.subr.mxu1 %v3057_v47  ;;  %v5467_v44 = vld [vmem:[%s5654_s13 + $0x68] sm:$0xff] }
 0x34c   : > { %4075 = vmatprep.subr.mxu0 %v3027_v48  ;;  %4042 = vmatpush3.msra.mxu1 %v3057_v47  ;;  %v5475_v47 = vld [vmem:[%s5654_s13 + $0x60] sm:$0xff] }
 0x34d   : > { %4076 = vmatpush3.msra.mxu0 %v3027_v48  ;;  %4044 = vmatmul.mubr.f32.vlgmr.msra.gmra.mxu1 %v5191_v0  ;;  %v3082_v0 = vld [vmem:[%s5646_s5 + $0x2c8] sm:$0xff]  ;;  %v5482_v48 = vld [vmem:[%s5654_s13 + $0x58] sm:$0xff] }
 0x34e   : > { %4077 = vmatprep.subr.mxu0 %v3026_v49  ;;  %4087 = vmatprep.subr.mxu1 %v3088_v50 }
 0x34f   : > { %4078 = vmatpush3.msra.mxu0 %v3026_v49  ;;  %4046 = vmatprep.mubr.f32.mxu1 %v5201_v15  ;;  %v3076_v15 = vld [vmem:[%s5646_s5 + $0x298] sm:$0xff]  ;;  %v5489_v49 = vld [vmem:[%s5654_s13 + $0x50] sm:$0xff] }
 0x350   : > { %4079 = vmatprep.subr.mxu0 %v3025_v51  ;;  %4088 = vmatpush3.msra.mxu1 %v3088_v50  ;;  %v5496_v50 = vld [vmem:[%s5654_s13 + $0x48] sm:$0xff] }
 0x351   : > { %4080 = vmatpush3.msra.mxu0 %v3025_v51  ;;  %4089 = vmatprep.subr.mxu1 %v3087_v52  ;;  %v5503_v51 = vld [vmem:[%s5654_s13 + $0x40] sm:$0xff] }
 0x352   : > { %4082 = vmatmul.mubr.f32.vlgmr.msra.gmra.mxu0 %v5215_v20  ;;  %4125 = vmatprep.subr.mxu0 %v3104_v53  ;;  %v3090_v20 = vld [vmem:[%s5647_s6 + $0x288] sm:$0xff] }
 0x353   : > { %4084 = vmatprep.mubr.f32.mxu0 %v5227_v24  ;;  %4126 = vmatpush3.msra.mxu0 %v3104_v53  ;;  %v2236_v24 = vld [vmem:[#allocation2 + $0x1a] sm:$0xff]  ;;  %v5517_v53 = vld [vmem:[%s5654_s13 + $0x30] sm:$0xff] }
 0x354   : > { %4127 = vmatprep.subr.mxu0 %v3103_v54  ;;  %4090 = vmatpush3.msra.mxu1 %v3087_v52  ;;  %v5510_v52 = vld [vmem:[%s5654_s13 + $0x38] sm:$0xff] }
 0x355   : > { %4128 = vmatpush3.msra.mxu0 %v3103_v54  ;;  %4047 = vmatmul.mubr.f32.gmra.mxu1 %v5194_v11  ;;  %v3078_v11 = vld [vmem:[%s5646_s5 + $0x2a8] sm:$0xff] }
 0x356   : > { %4085 = vmatmul.mubr.f32.gmra.mxu0 %v5229_v25  ;;  %4091 = vmatprep.subr.mxu1 %v3086_v55  ;;  %v2237_v25 = vld [vmem:[#allocation2 + $0x22] sm:$0xff] }
 0x357   : > { %4129 = vmatprep.subr.mxu0 %v3102_v56  ;;  %4092 = vmatpush3.msra.mxu1 %v3086_v55  ;;  %v5524_v54 = vld [vmem:[%s5654_s13 + $0x28] sm:$0xff]  ;;  %v5531_v55 = vld [vmem:[%s5654_s13 + $0x20] sm:$0xff] }
 0x358   : > { %4119 = vmatprep.mubr.f32.mxu1 %v2234_v58  ;;  %4130 = vmatpush3.msra.mxu0 %v3102_v56  ;;  %v5537_v56 = vpop.f32.mrf.mxu0 }
 0x359   : > { %4157 = vmatprep.mubr.f32.mxu0 %v2234_v58  ;;  %4093 = vmatprep.subr.mxu1 %v3085_v57 }
 0x35a   : > { %4131 = vmatprep.subr.mxu0 %v3101_v59  ;;  %4094 = vmatpush3.msra.mxu1 %v3085_v57  ;;  %v5539_v57 = vpop.f32.mrf.mxu0 }
 0x35b   : > { %4132 = vmatpush3.msra.mxu0 %v3101_v59  ;;  %4095 = vmatprep.subr.mxu1 %v3084_v60 }
 0x35c   : > { %4133 = vmatprep.subr.mxu0 %v3100_v61  ;;  %4096 = vmatpush3.msra.mxu1 %v3084_v60  ;;  %v5541_v58 = vpop.f32.mrf.mxu0 }
 0x35d   : > { %4134 = vmatpush3.msra.mxu0 %v3100_v61  ;;  %4097 = vmatprep.subr.mxu1 %v3083_v62 }
 0x35e   : > { %4135 = vmatprep.subr.mxu0 %v3099_v63  ;;  %4098 = vmatpush3.msra.mxu1 %v3083_v62  ;;  %v5543_v59 = vpop.f32.mrf.mxu0 }
 0x35f   : > { %4136 = vmatpush3.msra.mxu0 %v3099_v63  ;;  %4099 = vmatprep.subr.mxu1 %v3082_v0 }
 0x360   : > { %4137 = vmatprep.subr.mxu0 %v3098_v1  ;;  %4100 = vmatpush3.msra.mxu1 %v3082_v0 }
 0x361   : > { %4138 = vmatpush3.msra.mxu0 %v3098_v1  ;;  %4101 = vmatprep.subr.mxu1 %v3081_v2 }
 0x362   : > { %4139 = vmatprep.subr.mxu0 %v3097_v4  ;;  %4102 = vmatpush3.msra.mxu1 %v3081_v2 }
 0x363   : > { %4140 = vmatpush3.msra.mxu0 %v3097_v4  ;;  %4103 = vmatprep.subr.mxu1 %v3080_v5 }
 0x364   : > { %4141 = vmatprep.subr.mxu0 %v3096_v10  ;;  %4104 = vmatpush3.msra.mxu1 %v3080_v5 }
 0x365   : > { %4142 = vmatpush3.msra.mxu0 %v3096_v10  ;;  %4105 = vmatprep.subr.mxu1 %v3079_v8 }
 0x366   : > { %4143 = vmatprep.subr.mxu0 %v3095_v9  ;;  %4106 = vmatpush3.msra.mxu1 %v3079_v8 }
 0x367   : > { %4144 = vmatpush3.msra.mxu0 %v3095_v9  ;;  %4107 = vmatprep.subr.mxu1 %v3078_v11 }
 0x368   : > { %4145 = vmatprep.subr.mxu0 %v3094_v14  ;;  %4108 = vmatpush3.msra.mxu1 %v3078_v11 }
 0x369   : > { %4146 = vmatpush3.msra.mxu0 %v3094_v14  ;;  %4109 = vmatprep.subr.mxu1 %v3077_v12 }
 0x36a   : > { %4147 = vmatprep.subr.mxu0 %v3093_v13  ;;  %4110 = vmatpush3.msra.mxu1 %v3077_v12 }
 0x36b   : > { %4148 = vmatpush3.msra.mxu0 %v3093_v13  ;;  %4111 = vmatprep.subr.mxu1 %v3076_v15 }
 0x36c   : > { %4149 = vmatprep.subr.mxu0 %v3092_v16  ;;  %4112 = vmatpush3.msra.mxu1 %v3076_v15 }
 0x36d   : > { %4150 = vmatpush3.msra.mxu0 %v3092_v16  ;;  %4113 = vmatprep.subr.mxu1 %v3075_v17  ;;  %v3108_v16 = vld [vmem:[%s5649_s8 + $0x1] ss:$0 sm:$0xff] }
 0x36e   : > { %4151 = vmatprep.subr.mxu0 %v3091_v18  ;;  %4114 = vmatpush3.msra.mxu1 %v3075_v17 }
 0x36f   : > { %4152 = vmatpush3.msra.mxu0 %v3091_v18  ;;  %4115 = vmatprep.subr.mxu1 %v3074_v19 }
 0x370   : > { %4153 = vmatprep.subr.mxu0 %v3090_v20  ;;  %4116 = vmatpush3.msra.mxu1 %v3074_v19 }
 0x371   : > { %4154 = vmatpush3.msra.mxu0 %v3090_v20  ;;  %4117 = vmatprep.subr.mxu1 %v3073_v21 }
 0x372   : > { %4155 = vmatprep.subr.mxu0 %v3089_v22  ;;  %4118 = vmatpush3.msra.mxu1 %v3073_v21 }
 0x373   : > { %4156 = vmatpush3.msra.mxu0 %v3089_v22  ;;  %4120 = vmatmul.mubr.f32.vlgmr.msra.gmra.mxu1 %v2235_v23 }
 0x374   : > { %4158 = vmatmul.mubr.f32.vlgmr.msra.gmra.mxu0 %v2235_v23  ;;  %4122 = vmatprep.mubr.f32.mxu1 %v2236_v24 }
 0x375   : > { %4160 = vmatprep.mubr.f32.mxu0 %v2236_v24  ;;  %4163 = vmatprep.subr.mxu1 %v3128_v26 }
 0x376   : > { %4164 = vmatpush3.msra.mxu1 %v3128_v26  ;;  %4201 = vmatprep.subr.mxu0 %v5455_v42 }
 0x377   : > { %4123 = vmatmul.mubr.f32.gmra.mxu1 %v2237_v25  ;;  %4165 = vmatprep.subr.mxu1 %v3127_v27 }
 0x378   : > { %4161 = vmatmul.mubr.f32.gmra.mxu0 %v2237_v25  ;;  %4166 = vmatpush3.msra.mxu1 %v3127_v27 }
 0x379   : > { %4167 = vmatprep.subr.mxu1 %v3126_v28  ;;  %4202 = vmatpush3.msra.mxu0 %v5455_v42 }
 0x37a   : > { %4168 = vmatpush3.msra.mxu1 %v3126_v28  ;;  %4203 = vmatprep.subr.mxu0 %v5460_v43 }
 0x37b   : > { %4169 = vmatprep.subr.mxu1 %v3125_v6  ;;  %4204 = vmatpush3.msra.mxu0 %v5460_v43 }
 0x37c   : > { %4170 = vmatpush3.msra.mxu1 %v3125_v6  ;;  %4205 = vmatprep.subr.mxu0 %v5467_v44 }
 0x37d   : > { %4171 = vmatprep.subr.mxu1 %v3124_v7  ;;  %4206 = vmatpush3.msra.mxu0 %v5467_v44 }
 0x37e   : > { %4172 = vmatpush3.msra.mxu1 %v3124_v7  ;;  %4207 = vmatprep.subr.mxu0 %v5475_v47 }
 0x37f   : > { %4173 = vmatprep.subr.mxu1 %v3123_v31  ;;  %4208 = vmatpush3.msra.mxu0 %v5475_v47 }
 0x380   : > { %4174 = vmatpush3.msra.mxu1 %v3123_v31  ;;  %4209 = vmatprep.subr.mxu0 %v5482_v48 }
 0x381   : > { %4175 = vmatprep.subr.mxu1 %v3122_v32  ;;  %4210 = vmatpush3.msra.mxu0 %v5482_v48 }
 0x382   : > { %4176 = vmatpush3.msra.mxu1 %v3122_v32  ;;  %4211 = vmatprep.subr.mxu0 %v5489_v49 }
 0x383   : > { %4177 = vmatprep.subr.mxu1 %v3121_v33  ;;  %4212 = vmatpush3.msra.mxu0 %v5489_v49 }
 0x384   : > { %4178 = vmatpush3.msra.mxu1 %v3121_v33  ;;  %4213 = vmatprep.subr.mxu0 %v5496_v50 }
 0x385   : > { %4179 = vmatprep.subr.mxu1 %v3120_v34  ;;  %4214 = vmatpush3.msra.mxu0 %v5496_v50 }
 0x386   : > { %4180 = vmatpush3.msra.mxu1 %v3120_v34  ;;  %4215 = vmatprep.subr.mxu0 %v5503_v51 }
 0x387   : > { %4181 = vmatprep.subr.mxu1 %v3119_v35  ;;  %4216 = vmatpush3.msra.mxu0 %v5503_v51 }
 0x388   : > { %4182 = vmatpush3.msra.mxu1 %v3119_v35  ;;  %4217 = vmatprep.subr.mxu0 %v5510_v52 }
 0x389   : > { %4183 = vmatprep.subr.mxu1 %v3118_v36  ;;  %4218 = vmatpush3.msra.mxu0 %v5510_v52 }
 0x38a   : > { %4184 = vmatpush3.msra.mxu1 %v3118_v36  ;;  %4219 = vmatprep.subr.mxu0 %v5517_v53 }
 0x38b   : > { %4185 = vmatprep.subr.mxu1 %v3117_v37  ;;  %4220 = vmatpush3.msra.mxu0 %v5517_v53 }
 0x38c   : > { %4186 = vmatpush3.msra.mxu1 %v3117_v37  ;;  %4221 = vmatprep.subr.mxu0 %v5524_v54 }
 0x38d   : > { %4187 = vmatprep.subr.mxu1 %v3116_v38  ;;  %4222 = vmatpush3.msra.mxu0 %v5524_v54 }
 0x38e   : > { %4188 = vmatpush3.msra.mxu1 %v3116_v38  ;;  %4223 = vmatprep.subr.mxu0 %v5531_v55 }
 0x38f   : > { %4189 = vmatprep.subr.mxu1 %v3115_v39  ;;  %4224 = vmatpush3.msra.mxu0 %v5531_v55 }
 0x390   : > { %4190 = vmatpush3.msra.mxu1 %v3115_v39 }
 0x391   : > { %4191 = vmatprep.subr.mxu1 %v3114_v40 }
 0x392   : > { %4192 = vmatpush3.msra.mxu1 %v3114_v40 }
 0x393   : > { %4193 = vmatprep.subr.mxu1 %v3113_v41 }
 0x394   : > { %4194 = vmatpush3.msra.mxu1 %v3113_v41 }
 0x395   : > { %4239 = vmatprep.subr.mxu1 %v5455_v42 }
 0x3ea   : > { %v3969_v61 = vpop.f32.mrf.mxu1 }
 0x3ec   : > { %v1943_v63 = vpop.f32.mrf.mxu1 }
 0x3ee   : > { %v3972_v1 = vpop.f32.mrf.mxu1 }
 0x3f0   : > { %v1953_v5 = vpop.f32.mrf.mxu1 }
 0x3f2   : > { %v4007_v60 = vpop.f32.mrf.mxu0 }
 0x3f3   : > { %v2034_v41 = vadd.f32 %v4007_v60, %v3969_v61 }
 0x3f4   : > { %v2028_v62 = vpop.f32.mrf.mxu0 }
 0x3f5   : > { %v2029_v39 = vadd.f32 %v2028_v62, %v1943_v63 }
 0x3f6   : > { %v4010_v0 = vpop.f32.mrf.mxu0 }
 0x3f8   : > { %v2038_v2 = vpop.f32.mrf.mxu0 }
 0x40d   : > { %v4045_v10 = vpop.f32.mrf.mxu1 }
 0x40f   : > { %v2130_v9 = vpop.f32.mrf.mxu1 }
 0x412   : > { %v4083_v4 = vpop.f32.mrf.mxu0 }
 0x413   : > { %v2221_v13 = vadd.f32 %v4083_v4, %v4045_v10  ;;  %v2039_v10 = vadd.f32 %v2038_v2, %v1953_v5 }
 0x414   : > { %v2215_v8 = vpop.f32.mrf.mxu0 }
 0x415   : > { %v4048_v14 = vpop.f32.mrf.mxu1  ;;  %v2216_v17 = vadd.f32 %v2215_v8, %v2130_v9  ;;  %v3106_v9 = vld [vmem:[%s5662_s21 + $0x1] ss:$0 sm:$0xff] }
 0x416   : > { %v4086_v11 = vpop.f32.mrf.mxu0 }
 0x417   : > { %v2140_v19 = vpop.f32.mrf.mxu1  ;;  %v2231_v21 = vadd.f32 %v4086_v11, %v4048_v14 }
 0x418   : > { %v2225_v12 = vpop.f32.mrf.mxu0 }
 0x419   : > { %v2226_v26 = vadd.f32 %v2225_v12, %v2140_v19 }
 0x433   : > { %v4121_v24 = vpop.f32.mrf.mxu1 }
 0x434   : > { %v4159_v15 = vpop.f32.mrf.mxu0  ;;  %v2341_v8 = vadd.f32 %v4121_v24, %v2034_v41 }
 0x435   : > { %v2447_v18 = vadd.f32 %v4159_v15, %v2221_v13  ;;  %v2321_v34 = vpop.f32.mrf.mxu1  ;;  %v2044_v13 = vadd.f32 %v4010_v0, %v3972_v1 }
 0x436   : > { %v2427_v20 = vpop.f32.mrf.mxu0  ;;  %v2340_v40 = vadd.f32 %v2321_v34, %v2029_v39 }
 0x437   : > { %v2471_v22 = vadd.f32 %v3108_v16, %v2447_v18  ;;  %v2446_v23 = vadd.f32 %v2427_v20, %v2216_v17  ;;  %v4124_v38 = vpop.f32.mrf.mxu1  ;;  %v2459_v17 = vadd.f32 %v3106_v9, %v2341_v8 }
 0x438   : > { %v4162_v25 = vpop.f32.mrf.mxu0  ;;  %v2458_v11 = vadd.f32 %v3106_v9, %v2340_v40  ;;  %v2343_v18 = vadd.f32 %v4124_v38, %v2044_v13  ;;  %v3131_v38 = vld [vmem:[%s5655_s14] ss:$0 sm:$0xff]  ;;  %v2737_v40 = vand.u32 127, %v515_v3 }
 0x439   : > { %v3110_v27 = vmul.f32 -1.442695, %v2471_v22  ;;  %v2470_v28 = vadd.f32 %v3108_v16, %v2446_v23  ;;  %v2449_v6 = vadd.f32 %v4162_v25, %v2231_v21  ;;  %v2331_v4 = vpop.f32.mrf.mxu1 }
 0x43a   : > { %v2437_v7 = vpop.f32.mrf.mxu0  ;;  %v2342_v14 = vadd.f32 %v2331_v4, %v2039_v10  ;;  %v2461_v2 = vadd.f32 %v3106_v9, %v2343_v18  ;;  %vm2738_vm4 = vcmp.lt.s32.totalorder %v2737_v40, 16 }
 0x43b   : > { %4305 = vpow2.f32 %v3110_v27  ;;  %v3109_v31 = vmul.f32 -1.442695, %v2470_v28  ;;  %v2473_v32 = vadd.f32 %v3108_v16, %v2449_v6  ;;  %v2448_v33 = vadd.f32 %v2437_v7, %v2226_v26 }
 0x43c   : > { %v2460_v63 = vadd.f32 %v3106_v9, %v2342_v14 }
 0x43d   : > { %4307 = vpow2.f32 %v3109_v31  ;;  %v3112_v35 = vmul.f32 -1.442695, %v2473_v32  ;;  %v2472_v36 = vadd.f32 %v3108_v16, %v2448_v33 }
 0x43f   : > { %4309 = vpow2.f32 %v3112_v35  ;;  %v3111_v37 = vmul.f32 -1.442695, %v2472_v36 }
 0x441   : > { %4311 = vpow2.f32 %v3111_v37 }
 0x442   : > { %4313 = vtanh.f32 %v2458_v11 }
 0x448   : > { %v4306_v12 = vpop.eup %4305 }
 0x449   : > { %v2491_v15 = vadd.f32 1.0, %v4306_v12 }
 0x44a   : > { %v4308_v16 = vpop.eup %4307 }
 0x44b   : > { %v2490_v62 = vadd.f32 1.0, %v4308_v16  ;;  %4315 = vrcp.f32 %v2491_v15 }
 0x44c   : > { %v4310_v19 = vpop.eup %4309 }
 0x44d   : > { %4317 = vrcp.f32 %v2490_v62  ;;  %v2493_v60 = vadd.f32 1.0, %v4310_v19 }
 0x44e   : > { %v4312_v61 = vpop.eup %4311  ;;  %4319 = vtanh.f32 %v2459_v17 }
 0x44f   : > { %4321 = vtanh.f32 %v2460_v63  ;;  %v2492_v5 = vadd.f32 1.0, %v4312_v61  ;;  %v4314_v0 = vpop.eup %4313 }
 0x450   : > { %4323 = vrcp.f32 %v2493_v60 }
 0x451   : > { %4325 = vrcp.f32 %v2492_v5 }
 0x452   : > { %4327 = vtanh.f32 %v2461_v2 }
 0x458   : > { %v4316_v1 = vpop.eup %4315 }
 0x45a   : > { %v4318_v20 = vpop.eup %4317 }
 0x45b   : > { %v4320_v21 = vpop.eup %4319  ;;  %v2502_v22 = vmul.f32 %v4318_v20, %v4314_v0 }
 0x45c   : > { %v4322_v23 = vpop.eup %4321  ;;  %v2503_v24 = vmul.f32 %v4320_v21, %v4316_v1 }
 0x45d   : > { %v4324_v25 = vpop.eup %4323  ;;  %4195 = vmatprep.mubr.f32.mxu1 %v2502_v22 }
 0x45e   : > { %v4326_v26 = vpop.eup %4325  ;;  %4196 = vmatmul.mubr.f32.vlgmr.msra.gmra.mxu1 %v2503_v24 }
 0x45f   : > { %v4328_v27 = vpop.eup %4327  ;;  %v2504_v28 = vmul.f32 %v4326_v26, %v4322_v23  ;;  %4255 = vmatpush3.msra.mxu1 %v5455_v42  ;;  %v2627_v42 = vld [vmem:[%s5654_s13 + $0x18] sm:$0xff] }
 0x460   : > { %v2505_v6 = vmul.f32 %v4328_v27, %v4324_v25  ;;  %4240 = vmatprep.subr.mxu1 %v5460_v43  ;;  %4225 = vmatprep.subr.mxu0 %v2627_v42 }
 0x461   : > { %4198 = vmatprep.mubr.f32.mxu1 %v2504_v28  ;;  %4256 = vmatpush3.msra.mxu1 %v5460_v43  ;;  %v2626_v43 = vld [vmem:[%s5654_s13 + $0x10] sm:$0xff] }
 0x462   : > { %4199 = vmatmul.mubr.f32.gmra.mxu1 %v2505_v6  ;;  %4241 = vmatprep.subr.mxu1 %v5467_v44 }
 0x463   : > { %4257 = vmatpush3.msra.mxu1 %v5467_v44  ;;  %4226 = vmatpush3.msra.mxu0 %v2627_v42  ;;  %v2625_v44 = vld [vmem:[%s5654_s13 + $0x8] sm:$0xff] }
 0x464   : > { %4242 = vmatprep.subr.mxu1 %v5475_v47  ;;  %4227 = vmatprep.subr.mxu0 %v2626_v43 }
 0x465   : > { %4258 = vmatpush3.msra.mxu1 %v5475_v47  ;;  %4228 = vmatpush3.msra.mxu0 %v2626_v43  ;;  %v2624_v47 = vld [vmem:[%s5654_s13] sm:$0xff] }
 0x466   : > { %4243 = vmatprep.subr.mxu1 %v5482_v48  ;;  %4229 = vmatprep.subr.mxu0 %v2625_v44 }
 0x467   : > { %4259 = vmatpush3.msra.mxu1 %v5482_v48  ;;  %4230 = vmatpush3.msra.mxu0 %v2625_v44  ;;  %v3008_v48 = vld [vmem:[%s5653_s12] ss:$0 sm:$0xff] }
 0x468   : > { %4244 = vmatprep.subr.mxu1 %v5489_v49  ;;  %4231 = vmatprep.subr.mxu0 %v2624_v47  ;;  %v1811_v7 = vadd.f32 %v5541_v58, %v3008_v48  ;;  %v1806_v32 = vadd.f32 %v3008_v48, %v5543_v59 }
 0x469   : > { %4260 = vmatpush3.msra.mxu1 %v5489_v49  ;;  %4232 = vmatpush3.msra.mxu0 %v2624_v47  ;;  %v1801_v49 = vadd.f32 %v5537_v56, %v3008_v48 }
 0x46a   : > { %4245 = vmatprep.subr.mxu1 %v5496_v50 }
 0x46b   : > { %4261 = vmatpush3.msra.mxu1 %v5496_v50 }
 0x46c   : > { %4246 = vmatprep.subr.mxu1 %v5503_v51 }
 0x46d   : > { %4262 = vmatpush3.msra.mxu1 %v5503_v51  ;;  %v1796_v51 = vadd.f32 %v3008_v48, %v5539_v57 }
 0x46e   : > { %4247 = vmatprep.subr.mxu1 %v5510_v52 }
 0x46f   : > { %4263 = vmatpush3.msra.mxu1 %v5510_v52 }
 0x470   : > { %4248 = vmatprep.subr.mxu1 %v5517_v53 }
 0x471   : > { %4264 = vmatpush3.msra.mxu1 %v5517_v53 }
 0x472   : > { %4249 = vmatprep.subr.mxu1 %v5524_v54 }
 0x473   : > { %4265 = vmatpush3.msra.mxu1 %v5524_v54  ;;  %v3130_v54 = vld [vmem:[%s5653_s12 + $0x1] ss:$0 sm:$0xff] }
 0x474   : > { %4250 = vmatprep.subr.mxu1 %v5531_v55 }
 0x475   : > { %4266 = vmatpush3.msra.mxu1 %v5531_v55 }
 0x476   : > { %4251 = vmatprep.subr.mxu1 %v2627_v42 }
 0x477   : > { %4267 = vmatpush3.msra.mxu1 %v2627_v42 }
 0x478   : > { %4252 = vmatprep.subr.mxu1 %v2626_v43 }
 0x479   : > { %4268 = vmatpush3.msra.mxu1 %v2626_v43 }
 0x47a   : > { %4253 = vmatprep.subr.mxu1 %v2625_v44 }
 0x47b   : > { %4269 = vmatpush3.msra.mxu1 %v2625_v44 }
 0x47c   : > { %4254 = vmatprep.subr.mxu1 %v2624_v47 }
 0x47d   : > { %4270 = vmatpush3.msra.mxu1 %v2624_v47 }
 0x51e   : > { %v4197_v50 = vpop.f32.mrf.mxu1 }
 0x51f   : > { %v2609_v52 = vadd.f32 %v4197_v50, %v1801_v49 }
 0x520   : > { %v2589_v53 = vpop.f32.mrf.mxu1 }
 0x521   : > { %v2608_v55 = vadd.f32 %v2589_v53, %v1796_v51  ;;  %v2621_v34 = vadd.f32 %v3130_v54, %v2609_v52 }
 0x522   : > { %v4200_v31 = vpop.f32.mrf.mxu1 }
 0x523   : > { %v2620_v33 = vadd.f32 %v3130_v54, %v2608_v55  ;;  %v2611_v35 = vadd.f32 %v4200_v31, %v1811_v7 }
 0x524   : > { %v2599_v56 = vpop.f32.mrf.mxu1 }
 0x525   : > { %v2610_v36 = vadd.f32 %v2599_v56, %v1806_v32  ;;  %4233 = vmatprep.mubr.f32.mxu0 %v2620_v33  ;;  %v2623_v37 = vadd.f32 %v3130_v54, %v2611_v35 }
 0x526   : > { %4234 = vmatmul.mubr.f32.vlgmr.msra.gmra.mxu0 %v2621_v34 }
 0x527   : > { %v2622_v57 = vadd.f32 %v3130_v54, %v2610_v36 }
 0x529   : > { %4236 = vmatprep.mubr.f32.mxu1 %v2622_v57 }
 0x52a   : > { %4237 = vmatmul.mubr.f32.vlgmr.msra.gmra.mxu1 %v2623_v37 }
 0x5e6   : > { %v4235_v58 = vpop.f32.mrf.mxu0 }
 0x5e7   : > { %v2719_v39 = vadd.f32 %v4235_v58, %v3131_v38 }
 0x5e8   : > { %v2713_v59 = vpop.f32.mrf.mxu0 }
 0x5e9   : > { %v5605_v41 = vmul.f32 %v4542_v30, %v2719_v39  ;;  %v2714_v4 = vadd.f32 %v3131_v38, %v2713_v59 }
 0x5ea   : > { %v4238_v10 = vpop.f32.mrf.mxu1 }
 0x5eb   : > { %2788 = vst [vmem:[%s509_s18 + $0x8] sm:$0xff] %v5605_v41  ;;  %v5609_v8 = vmul.f32 %v4538_v29, %v2714_v4  ;;  %v2729_v9 = vadd.f32 %v4238_v10, %v3131_v38  ;;  %v2740_v29 = vsel %vm2738_vm4, %v5605_v41, -inf }
 0x5ec   : > { %v2723_v11 = vpop.f32.mrf.mxu1 }
 0x5ed   : > { %2787 = vst [vmem:[%s509_s18] sm:$0xff] %v5609_v8  ;;  %v5613_v14 = vmul.f32 %v4575_v46, %v2729_v9  ;;  %v2724_v12 = vadd.f32 %v3131_v38, %v2723_v11  ;;  %v2739_v3 = vsel %vm2738_vm4, %v5609_v8, -inf }
 0x5ee   : > { %2743 = vmax.xlane.f32.xlu0 %v2739_v3 }
 0x5ef   : > { %2790 = vst [vmem:[%s509_s18 + $0x18] sm:$0xff] %v5613_v14  ;;  %v2734_v30 = vmul.f32 %v4571_v45, %v2724_v12  ;;  %v2742_v46 = vsel %vm2738_vm4, %v5613_v14, -inf }
 0x5f1   : > { %2789 = vst [vmem:[%s509_s18 + $0x10] sm:$0xff] %v2734_v30  ;;  %v2741_v13 = vsel %vm2738_vm4, %v2734_v30, -inf }
 0x5f2   : > { %2745 = vmax.xlane.f32.xlu0 %v2740_v29  ;;  %2747 = vmax.xlane.f32.xlu1 %v2741_v13 }
 0x5f6   : > { %2749 = vmax.xlane.f32.xlu1 %v2742_v46 }
 0x677   : > { %v2744_v15 = vpop.xlane.xlu0 %2743 }
 0x678   : > { %v2751_v16 = vsub.f32 %v5609_v8, %v2744_v15 }
 0x67a   : > { %v2755_v17 = vmul.f32 1.442695, %v2751_v16 }
 0x67b   : > { %v2746_v18 = vpop.xlane.xlu0 %2745  ;;  %v2748_v62 = vpop.xlane.xlu1 %2747 }
 0x67c   : > { %4329 = vpow2.f32 %v2755_v17  ;;  %v2752_v45 = vsub.f32 %v5605_v41, %v2746_v18  ;;  %v2753_v63 = vsub.f32 %v2734_v30, %v2748_v62 }
 0x67e   : > { %v2757_v19 = vmul.f32 1.442695, %v2752_v45  ;;  %v2759_v60 = vmul.f32 1.442695, %v2753_v63 }
 0x67f   : > { %v2750_v61 = vpop.xlane.xlu1 %2749 }
 0x680   : > { %4331 = vpow2.f32 %v2757_v19  ;;  %v2754_v2 = vsub.f32 %v5613_v14, %v2750_v61 }
 0x681   : > { %4333 = vpow2.f32 %v2759_v60 }
 0x682   : > { %v2761_v5 = vmul.f32 1.442695, %v2754_v2 }
 0x684   : > { %4335 = vpow2.f32 %v2761_v5 }
 0x689   : > { %v4330_v0 = vpop.eup %4329 }
 0x68a   : > { %v2763_v1 = vsel %vm2738_vm4, %v4330_v0, 0.0 }
 0x68b   : > { %2767 = vadd.xlane.f32.xlu0 %v2763_v1 }
 0x68d   : > { %v4332_v20 = vpop.eup %4331 }
 0x68e   : > { %v4334_v21 = vpop.eup %4333  ;;  %v2764_v22 = vsel %vm2738_vm4, %v4332_v20, 0.0 }
 0x68f   : > { %2769 = vadd.xlane.f32.xlu1 %v2764_v22  ;;  %v2765_v23 = vsel %vm2738_vm4, %v4334_v21, 0.0 }
 0x690   : > { %2771 = vadd.xlane.f32.xlu0 %v2765_v23 }
 0x691   : > { %v4336_v24 = vpop.eup %4335 }
 0x692   : > { %v2766_v25 = vsel %vm2738_vm4, %v4336_v24, 0.0 }
 0x693   : > { %2773 = vadd.xlane.f32.xlu1 %v2766_v25 }
 0x714   : > { %v2768_v26 = vpop.xlane.xlu0 %2767 }
 0x715   : > { %4337 = vlog2.f32 %v2768_v26 }
 0x718   : > { %v2770_v27 = vpop.xlane.xlu1 %2769 }
 0x719   : > { %v2772_v28 = vpop.xlane.xlu0 %2771  ;;  %4339 = vlog2.f32 %v2770_v27 }
 0x71a   : > { %4341 = vlog2.f32 %v2772_v28 }
 0x71c   : > { %v2774_v6 = vpop.xlane.xlu1 %2773 }
 0x71d   : > { %4343 = vlog2.f32 %v2774_v6 }
 0x722   : > { %v4338_v42 = vpop.eup %4337 }
 0x723   : > { %v2776_v43 = vmul.f32 0.6931472, %v4338_v42 }
 0x725   : > { %v2783_v44 = vadd.f32 %v2776_v43, %v2744_v15 }
 0x726   : > { %v4340_v47 = vpop.eup %4339 }
 0x727   : > { %v4342_v48 = vpop.eup %4341  ;;  %v2791_v49 = vsub.f32 %v5609_v8, %v2783_v44  ;;  %v2778_v50 = vmul.f32 0.6931472, %v4340_v47 }
 0x728   : > { %v2780_v51 = vmul.f32 0.6931472, %v4342_v48 }
 0x729   : > { %2795 = vst [vmem:[%s514_s0] sm:$0xff] %v2791_v49  ;;  %v2784_v52 = vadd.f32 %v2778_v50, %v2746_v18 }
 0x72a   : > { %v4344_v53 = vpop.eup %4343  ;;  %v2785_v54 = vadd.f32 %v2780_v51, %v2748_v62 }
 0x72b   : > { %v2792_v55 = vsub.f32 %v5605_v41, %v2784_v52  ;;  %v2782_v7 = vmul.f32 0.6931472, %v4344_v53 }
 0x72c   : > { %v2793_v31 = vsub.f32 %v2734_v30, %v2785_v54 }
 0x72d   : > { %2796 = vst [vmem:[%s514_s0 + $0x8] sm:$0xff] %v2792_v55  ;;  %v2786_v32 = vadd.f32 %v2782_v7, %v2750_v61 }
 0x72e   : > { %2797 = vst [vmem:[%s514_s0 + $0x10] sm:$0xff] %v2793_v31 }
 0x72f   : > { %v2794_v33 = vsub.f32 %v5613_v14, %v2786_v32 }
 0x731   : > { %2798 = vst [vmem:[%s514_s0 + $0x18] sm:$0xff] %v2794_v33 }
 0x732 PF: > { %s33_s26 = sadd.s32 1, %s4369_s26  }
 0x733   : > { %p30_p9 = scmp.ge.s32.totalorder %s33_s26, 4  }
 0x735   :  { %32 = sbr.rel (!%p30_p9) target bundleno = 24 (0x18), region = 134 }

</bundles_post_ra>
